<compile_context>
chip_gen: v6e
topology: v6e:2x2x1
jax: 0.10.0
libtpu: 0.0.40
codegen_flags: <defaults>
</compile_context>

<pallas_src>
import functools

import numpy as np

import jax
import jax.numpy as jnp
from jax.experimental import pallas as pl
from jax.experimental.pallas import tpu as pltpu


def _ukblock_kernel(x_ref, w_ref, p_ref, o_ref, *, h, w, eps, compute_dtype):
    # x_ref: (1, Cin_pad, H*W)        input image (lane-dense flat spatial)
    # w_ref: (1, 4*Ct, 4*Cin_pad)     repacked conv weights (compute_dtype)
    # p_ref: (4*H*W, 4*H*W)           constant 0/1 parity->spatial permutation (f32)
    # o_ref: (1, Ct, 4*H*W)           final NCHW-flat output block for this Cout tile
    hw = h * w
    ct = o_ref.shape[1]

    x = x_ref[0].astype(compute_dtype)                       # (Cin_pad, HW)

    # Boundary masks: (1, HW) only, broadcast inside the selects (review item).
    lane = jax.lax.broadcasted_iota(jnp.int32, (1, hw), 1)
    keep_w = (lane % w) != (w - 1)          # j < W-1: x[., j+1] exists
    keep_h = lane < (h - 1) * w             # i < H-1: x[i+1, .] exists

    # Shifted taps via XLU lane rotations of the flat image (wrap lanes masked).
    s01 = jnp.where(keep_w, pltpu.roll(x, shift=hw - 1, axis=1), 0)      # x[i,   j+1]
    s10 = jnp.where(keep_h, pltpu.roll(x, shift=hw - w, axis=1), 0)      # x[i+1, j  ]
    s11 = jnp.where(keep_h, pltpu.roll(s01, shift=hw - w, axis=1), 0)    # x[i+1, j+1]

    patches = jnp.concatenate([x, s01, s10, s11], axis=0)    # (4*Cin_pad, HW)

    # One MXU matmul (K = 4*Cin_pad) -> all four output-parity planes at once:
    # rows = [even/even, even/odd, odd/even, odd/odd] blocks of Ct channels.
    r = jnp.dot(w_ref[0], patches, preferred_element_type=jnp.float32)   # (4*Ct, HW) f32

    # Fused single-pass InstanceNorm (affine=False).  Per-channel stats pool over
    # all 4 parity planes == the full (2H, 2W) output plane.
    s1 = jnp.sum(r, axis=1, keepdims=True)                   # (4*Ct, 1)
    s2 = jnp.sum(r * r, axis=1, keepdims=True)               # (4*Ct, 1)

    def _fold4(v):                                           # (4*Ct,1) -> (Ct,1)
        return v[0:ct] + v[ct:2 * ct] + v[2 * ct:3 * ct] + v[3 * ct:4 * ct]

    inv_n = 1.0 / (4.0 * hw)
    mean = _fold4(s1) * inv_n                                # (Ct, 1)
    var = jnp.maximum(_fold4(s2) * inv_n - mean * mean, 0.0)  # clamp (review item)
    rstd = jax.lax.rsqrt(var + eps)

    mean4 = jnp.concatenate([mean, mean, mean, mean], axis=0)
    rstd4 = jnp.concatenate([rstd, rstd, rstd, rstd], axis=0)
    y = jnp.maximum((r - mean4) * rstd4, 0.0)                # (4*Ct, HW), ReLU fused

    # Fused parity -> spatial interleave (review item #1): gather the four parity
    # planes on the lane axis and apply one exact constant permutation matmul so
    # o_ref holds the final NCHW row-major layout (no post-kernel XLA transpose).
    planes = jnp.concatenate(
        [y[0:ct], y[ct:2 * ct], y[2 * ct:3 * ct], y[3 * ct:4 * ct]], axis=1)  # (Ct, 4*HW)
    out = jnp.dot(planes, p_ref[...], preferred_element_type=jnp.float32)     # (Ct, 4*HW)
    o_ref[0] = out.astype(o_ref.dtype)


def _interleave_matrix(h, w):
    """(4*H*W, 4*H*W) 0/1 matrix mapping [ee|eo|oe|oo] plane layout (flat H*W each)
    to the row-major (2H, 2W) spatial layout.  Intended for small feature maps;
    see module TODO for the banded production variant."""
    hw = h * w
    a, b, i, j = np.meshgrid(np.arange(2), np.arange(2), np.arange(h), np.arange(w),
                             indexing="ij")
    src = ((2 * a + b) * hw + i * w + j).reshape(-1)
    dst = ((2 * i + a) * (2 * w) + (2 * j + b)).reshape(-1)
    perm = np.zeros((4 * hw, 4 * hw), np.float32)
    perm[src, dst] = 1.0
    return jnp.asarray(perm)


@functools.partial(jax.jit,
                   static_argnames=("eps", "compute_dtype", "out_dtype", "cout_tile"))
def ukblock_forward(x, weight, bias=None, *, eps=1e-5, compute_dtype=jnp.bfloat16,
                    out_dtype=None, cout_tile=None):
    """UKBlock forward.
    x: (N, Cin, H, W); weight: (Cin, Cout, 3, 3) (PyTorch ConvTranspose2d layout);
    bias: (Cout,) -- has no effect (cancelled exactly by InstanceNorm's mean
    subtraction with affine=False), so it is not sent to the kernel.
    Returns (N, Cout, 2H, 2W)."""
    del bias
    n, cin, h, w = x.shape
    cout = weight.shape[1]
    hw = h * w
    out_dtype = x.dtype if out_dtype is None else out_dtype

    ct = cout if cout_tile is None else cout_tile
    assert cout % ct == 0, "cout_tile must divide Cout"
    n_ct = cout // ct

    # Pad Cin to the compute dtype's sublane tile so the in-kernel channel concat
    # is tile aligned (review item).
    sub = 16 if jnp.dtype(compute_dtype).itemsize == 2 else 8
    cin_pad = ((cin + sub - 1) // sub) * sub

    # --- weight repack: per Cout tile, rows = [ee | eo | oe | oo] blocks of Ct ---
    #   out[co,2i  ,2j  ] = sum_ci S00*w[ci,co,1,1]
    #   out[co,2i  ,2j+1] = sum_ci S00*w[ci,co,1,2] + S01*w[ci,co,1,0]
    #   out[co,2i+1,2j  ] = sum_ci S00*w[ci,co,2,1] + S10*w[ci,co,0,1]
    #   out[co,2i+1,2j+1] = sum_ci S00*w[ci,co,2,2] + S01*w[ci,co,2,0]
    #                            + S10*w[ci,co,0,2] + S11*w[ci,co,0,0]
    # where column blocks of the packed weight are [S00|S01|S10|S11] = [x, x(j+1),
    # x(i+1), x(i+1,j+1)].
    wt = jnp.transpose(weight, (1, 0, 2, 3)).astype(jnp.float32)   # (Cout, Cin, 3, 3)
    wt = jnp.pad(wt, ((0, 0), (0, cin_pad - cin), (0, 0), (0, 0)))
    z = jnp.zeros((cout, cin_pad), jnp.float32)
    row_ee = jnp.concatenate([wt[:, :, 1, 1], z,              z,              z             ], axis=1)
    row_eo = jnp.concatenate([wt[:, :, 1, 2], wt[:, :, 1, 0], z,              z             ], axis=1)
    row_oe = jnp.concatenate([wt[:, :, 2, 1], z,              wt[:, :, 0, 1], z             ], axis=1)
    row_oo = jnp.concatenate([wt[:, :, 2, 2], wt[:, :, 2, 0], wt[:, :, 0, 2], wt[:, :, 0, 0]], axis=1)
    rows = jnp.stack([row_ee, row_eo, row_oe, row_oo], axis=0)     # (4, Cout, 4*Cin_pad)
    w_tiled = (rows.reshape(4, n_ct, ct, 4 * cin_pad)
                   .transpose(1, 0, 2, 3)
                   .reshape(n_ct, 4 * ct, 4 * cin_pad)
                   .astype(compute_dtype))                          # (n_ct, 4*Ct, 4*Cin_pad)

    # lane-dense input: last dim H*W; channel dim zero-padded to the sublane tile.
    x_flat = jnp.pad(x.reshape(n, cin, hw), ((0, 0), (0, cin_pad - cin), (0, 0)))

    perm = _interleave_matrix(h, w)                                 # (4*HW, 4*HW) f32

    kernel = functools.partial(_ukblock_kernel, h=h, w=w, eps=eps,
                               compute_dtype=compute_dtype)

    out = pl.pallas_call(
        kernel,
        out_shape=jax.ShapeDtypeStruct((n, cout, 4 * hw), out_dtype),
        grid_spec=pltpu.PrefetchScalarGridSpec(
            num_scalar_prefetch=0,
            grid=(n, n_ct),
            in_specs=[
                pl.BlockSpec((1, cin_pad, hw), lambda b, j: (b, 0, 0)),
                pl.BlockSpec((1, 4 * ct, 4 * cin_pad), lambda b, j: (j, 0, 0)),
                pl.BlockSpec((4 * hw, 4 * hw), lambda b, j: (0, 0)),
            ],
            out_specs=pl.BlockSpec((1, ct, 4 * hw), lambda b, j: (b, j, 0)),
        ),
        compiler_params=pltpu.CompilerParams(
            dimension_semantics=("parallel", "parallel"),
            vmem_limit_bytes=32 * 1024 * 1024,   # well under v7x's 64 MiB physical VMEM
        ),
    )(x_flat, w_tiled, perm)

    # The kernel already wrote NCHW row-major; this reshape is a free view.
    return out.reshape(n, cout, 2 * h, 2 * w)


def _ref_forward(x, weight, bias, eps=1e-5):
    # Pure-JAX reference matching PyTorch ConvTranspose2d(3, stride=2, padding=1,
    # output_padding=1) -> InstanceNorm2d(affine=False) -> ReLU.
    wf = jnp.flip(jnp.transpose(weight, (1, 0, 2, 3)), axis=(2, 3))  # (Cout, Cin, 3, 3)
    y = jax.lax.conv_general_dilated(
        x, wf, window_strides=(1, 1), padding=[(1, 2), (1, 2)],
        lhs_dilation=(2, 2), dimension_numbers=("NCHW", "OIHW", "NCHW"))
    y = y + bias[None, :, None, None]
    m = jnp.mean(y, axis=(2, 3), keepdims=True)
    v = jnp.mean(jnp.square(y - m), axis=(2, 3), keepdims=True)
    return jnp.maximum((y - m) / jnp.sqrt(v + eps), 0.0)


if __name__ == "__main__":
    N, C_IN, C_OUT, H, W = 2, 8, 16, 16, 16
    key = jax.random.PRNGKey(0)
    kx, kw, kb = jax.random.split(key, 3)

    x = jax.random.normal(kx, (N, C_IN, H, W), jnp.float32)
    # PyTorch ConvTranspose2d weight layout: (in_channels, out_channels, kH, kW)
    weight = jax.random.normal(kw, (C_IN, C_OUT, 3, 3), jnp.float32) * 0.2
    bias = jax.random.normal(kb, (C_OUT,), jnp.float32) * 0.1

    ref = _ref_forward(x, weight, bias)

    # Exact-path check (f32 through the MXU), two Cout tiles -> grid (2, 2).
    out_f32 = jax.block_until_ready(
        ukblock_forward(x, weight, bias, compute_dtype=jnp.float32, cout_tile=8))
    assert out_f32.shape == (N, C_OUT, 2 * H, 2 * W), out_f32.shape
    err_f32 = float(jnp.max(jnp.abs(out_f32 - ref)))
    assert err_f32 < 3e-3, f"f32 path max abs err = {err_f32}"

    # Default production path: bf16 MXU operands, f32 accumulation / stats.
    out_bf16 = jax.block_until_ready(
        ukblock_forward(x, weight, bias, cout_tile=8))
    assert out_bf16.shape == (N, C_OUT, 2 * H, 2 * W), out_bf16.shape
    err_bf16 = float(jnp.max(jnp.abs(out_bf16 - ref)))
    assert err_bf16 < 8e-2, f"bf16 path max abs err = {err_bf16}"

    print("KERNEL_OK")
</pallas_src>

<mosaic_0001>
module attributes {stable_mosaic.version = 11 : i64} {
  func.func @_ukblock_kernel(%arg0: i32, %arg1: i32, %arg2: memref<1x8x256xf32, #tpu.memory_space<vmem>>, %arg3: memref<1x32x32xf32, #tpu.memory_space<vmem>>, %arg4: memref<1024x1024xf32, #tpu.memory_space<vmem>>, %arg5: memref<1x8x1024xf32, #tpu.memory_space<vmem>>) attributes {dimension_semantics = [#tpu.dimension_semantics<parallel>, #tpu.dimension_semantics<parallel>], iteration_bounds = array<i64: 2, 2>, scalar_prefetch = 0 : i64, scratch_operands = 0 : i64, tpu.core_type = #tpu.core_type<tc>, window_params = [{transform_indices = @transform_0, window_bounds = array<i64: 1, 8, 256>}, {transform_indices = @transform_1, window_bounds = array<i64: 1, 32, 32>}, {pipeline_mode = #tpu.pipeline_mode<synchronous>, transform_indices = @transform_2, window_bounds = array<i64: 1024, 1024>}, {transform_indices = @transform_3, window_bounds = array<i64: 1, 8, 1024>}]} {
    %c0 = arith.constant 0 : index
    %c0_0 = arith.constant 0 : index
    %c0_1 = arith.constant 0 : index
    %0 = vector.load %arg2[%c0, %c0_0, %c0_1] : memref<1x8x256xf32, #tpu.memory_space<vmem>>, vector<1x8x256xf32>
    %1 = vector.shape_cast %0 : vector<1x8x256xf32> to vector<8x256xf32>
    %2 = tpu.iota {dimensions = array<i32: 1>} : vector<1x256xi32>
    %c16_i32 = arith.constant 16 : i32
    %c0_i32 = arith.constant 0 : i32
    %3 = arith.cmpi eq, %c16_i32, %c0_i32 : i32
    %c1_i32 = arith.constant 1 : i32
    %4 = arith.select %3, %c1_i32, %c16_i32 : i32
    %5 = vector.broadcast %4 : i32 to vector<1x256xi32>
    %6 = arith.remsi %2, %5 : vector<1x256xi32>
    %c0_i32_2 = arith.constant 0 : i32
    %7 = vector.broadcast %c0_i32_2 : i32 to vector<1x256xi32>
    %8 = arith.cmpi ne, %6, %7 : vector<1x256xi32>
    %c0_i32_3 = arith.constant 0 : i32
    %9 = vector.broadcast %c0_i32_3 : i32 to vector<1x256xi32>
    %10 = arith.cmpi slt, %6, %9 : vector<1x256xi32>
    %c0_i32_4 = arith.constant 0 : i32
    %11 = arith.cmpi slt, %4, %c0_i32_4 : i32
    %12 = vector.broadcast %11 : i1 to vector<1x256xi1>
    %13 = vector.broadcast %12 : vector<1x256xi1> to vector<1x256xi1>
    %14 = arith.xori %10, %13 : vector<1x256xi1>
    %15 = arith.andi %14, %8 : vector<1x256xi1>
    %16 = vector.broadcast %4 : i32 to vector<1x256xi32>
    %17 = arith.addi %6, %16 : vector<1x256xi32>
    %18 = arith.select %15, %17, %6 : vector<1x256xi1>, vector<1x256xi32>
    %c15_i32 = arith.constant 15 : i32
    %19 = vector.broadcast %c15_i32 : i32 to vector<1x256xi32>
    %20 = arith.cmpi ne, %18, %19 : vector<1x256xi32>
    %c240_i32 = arith.constant 240 : i32
    %21 = vector.broadcast %c240_i32 : i32 to vector<1x256xi32>
    %22 = arith.cmpi slt, %2, %21 : vector<1x256xi32>
    %c255_i32 = arith.constant 255 : i32
    %23 = tpu.dynamic_rotate %1 by %c255_i32 dim 1 : vector<8x256xf32>, i32 -> vector<8x256xf32>
    %c0_i32_5 = arith.constant 0 : i32
    %24 = arith.sitofp %c0_i32_5 : i32 to f32
    %25 = vector.shape_cast %20 : vector<1x256xi1> to vector<1x256xi1>
    %26 = vector.broadcast %25 : vector<1x256xi1> to vector<8x256xi1>
    %27 = vector.broadcast %24 : f32 to vector<8x256xf32>
    %28 = arith.select %26, %23, %27 : vector<8x256xi1>, vector<8x256xf32>
    %c240_i32_6 = arith.constant 240 : i32
    %29 = tpu.dynamic_rotate %1 by %c240_i32_6 dim 1 : vector<8x256xf32>, i32 -> vector<8x256xf32>
    %c0_i32_7 = arith.constant 0 : i32
    %30 = arith.sitofp %c0_i32_7 : i32 to f32
    %31 = vector.shape_cast %22 : vector<1x256xi1> to vector<1x256xi1>
    %32 = vector.broadcast %31 : vector<1x256xi1> to vector<8x256xi1>
    %33 = vector.broadcast %30 : f32 to vector<8x256xf32>
    %34 = arith.select %32, %29, %33 : vector<8x256xi1>, vector<8x256xf32>
    %c240_i32_8 = arith.constant 240 : i32
    %35 = tpu.dynamic_rotate %28 by %c240_i32_8 dim 1 : vector<8x256xf32>, i32 -> vector<8x256xf32>
    %c0_i32_9 = arith.constant 0 : i32
    %36 = arith.sitofp %c0_i32_9 : i32 to f32
    %37 = vector.shape_cast %22 : vector<1x256xi1> to vector<1x256xi1>
    %38 = vector.broadcast %37 : vector<1x256xi1> to vector<8x256xi1>
    %39 = vector.broadcast %36 : f32 to vector<8x256xf32>
    %40 = arith.select %38, %35, %39 : vector<8x256xi1>, vector<8x256xf32>
    %41 = tpu.concatenate %1, %28, %34, %40 in 0 : vector<8x256xf32>, vector<8x256xf32>, vector<8x256xf32>, vector<8x256xf32> -> vector<32x256xf32>
    %c0_10 = arith.constant 0 : index
    %c0_11 = arith.constant 0 : index
    %c0_12 = arith.constant 0 : index
    %42 = vector.load %arg3[%c0_10, %c0_11, %c0_12] : memref<1x32x32xf32, #tpu.memory_space<vmem>>, vector<1x32x32xf32>
    %43 = vector.shape_cast %42 : vector<1x32x32xf32> to vector<32x32xf32>
    %cst = arith.constant dense<0.000000e+00> : vector<32x256xf32>
    %44 = tpu.matmul %43, %41, %cst {dimension_numbers = #tpu.dot_dimension_numbers<[1], [0], [0], [1], [0, 0, 1, 1], [], []>} : vector<32x32xf32>, vector<32x256xf32>, vector<32x256xf32> -> vector<32x256xf32>
    %cst_13 = arith.constant dense<0.000000e+00> : vector<32xf32>
    %45 = vector.multi_reduction <add>, %44, %cst_13 [1] : vector<32x256xf32> to vector<32xf32>
    %46 = vector.shape_cast %45 : vector<32xf32> to vector<32x1xf32>
    %47 = arith.mulf %44, %44 : vector<32x256xf32>
    %cst_14 = arith.constant dense<0.000000e+00> : vector<32xf32>
    %48 = vector.multi_reduction <add>, %47, %cst_14 [1] : vector<32x256xf32> to vector<32xf32>
    %49 = vector.shape_cast %48 : vector<32xf32> to vector<32x1xf32>
    %50 = vector.extract_strided_slice %46 {offsets = [0, 0], sizes = [8, 1], strides = [1, 1]} : vector<32x1xf32> to vector<8x1xf32>
    %51 = vector.extract_strided_slice %46 {offsets = [8, 0], sizes = [8, 1], strides = [1, 1]} : vector<32x1xf32> to vector<8x1xf32>
    %52 = arith.addf %50, %51 : vector<8x1xf32>
    %53 = vector.extract_strided_slice %46 {offsets = [16, 0], sizes = [8, 1], strides = [1, 1]} : vector<32x1xf32> to vector<8x1xf32>
    %54 = arith.addf %52, %53 : vector<8x1xf32>
    %55 = vector.extract_strided_slice %46 {offsets = [24, 0], sizes = [8, 1], strides = [1, 1]} : vector<32x1xf32> to vector<8x1xf32>
    %56 = arith.addf %54, %55 : vector<8x1xf32>
    %cst_15 = arith.constant 9.765625E-4 : f32
    %57 = vector.broadcast %cst_15 : f32 to vector<8x1xf32>
    %58 = arith.mulf %56, %57 : vector<8x1xf32>
    %59 = vector.extract_strided_slice %49 {offsets = [0, 0], sizes = [8, 1], strides = [1, 1]} : vector<32x1xf32> to vector<8x1xf32>
    %60 = vector.extract_strided_slice %49 {offsets = [8, 0], sizes = [8, 1], strides = [1, 1]} : vector<32x1xf32> to vector<8x1xf32>
    %61 = arith.addf %59, %60 : vector<8x1xf32>
    %62 = vector.extract_strided_slice %49 {offsets = [16, 0], sizes = [8, 1], strides = [1, 1]} : vector<32x1xf32> to vector<8x1xf32>
    %63 = arith.addf %61, %62 : vector<8x1xf32>
    %64 = vector.extract_strided_slice %49 {offsets = [24, 0], sizes = [8, 1], strides = [1, 1]} : vector<32x1xf32> to vector<8x1xf32>
    %65 = arith.addf %63, %64 : vector<8x1xf32>
    %cst_16 = arith.constant 9.765625E-4 : f32
    %66 = vector.broadcast %cst_16 : f32 to vector<8x1xf32>
    %67 = arith.mulf %65, %66 : vector<8x1xf32>
    %68 = arith.mulf %58, %58 : vector<8x1xf32>
    %69 = arith.subf %67, %68 : vector<8x1xf32>
    %cst_17 = arith.constant 0.000000e+00 : f32
    %70 = vector.broadcast %cst_17 : f32 to vector<8x1xf32>
    %71 = arith.maximumf %69, %70 : vector<8x1xf32>
    %cst_18 = arith.constant 9.99999974E-6 : f32
    %72 = vector.broadcast %cst_18 : f32 to vector<8x1xf32>
    %73 = arith.addf %71, %72 : vector<8x1xf32>
    %74 = math.rsqrt %73 : vector<8x1xf32>
    %75 = tpu.concatenate %58, %58, %58, %58 in 0 : vector<8x1xf32>, vector<8x1xf32>, vector<8x1xf32>, vector<8x1xf32> -> vector<32x1xf32>
    %76 = tpu.concatenate %74, %74, %74, %74 in 0 : vector<8x1xf32>, vector<8x1xf32>, vector<8x1xf32>, vector<8x1xf32> -> vector<32x1xf32>
    %77 = vector.broadcast %75 : vector<32x1xf32> to vector<32x256xf32>
    %78 = arith.subf %44, %77 : vector<32x256xf32>
    %79 = vector.broadcast %76 : vector<32x1xf32> to vector<32x256xf32>
    %80 = arith.mulf %78, %79 : vector<32x256xf32>
    %cst_19 = arith.constant 0.000000e+00 : f32
    %81 = vector.broadcast %cst_19 : f32 to vector<32x256xf32>
    %82 = arith.maximumf %80, %81 : vector<32x256xf32>
    %83 = vector.extract_strided_slice %82 {offsets = [0, 0], sizes = [8, 256], strides = [1, 1]} : vector<32x256xf32> to vector<8x256xf32>
    %84 = vector.extract_strided_slice %82 {offsets = [8, 0], sizes = [8, 256], strides = [1, 1]} : vector<32x256xf32> to vector<8x256xf32>
    %85 = vector.extract_strided_slice %82 {offsets = [16, 0], sizes = [8, 256], strides = [1, 1]} : vector<32x256xf32> to vector<8x256xf32>
    %86 = vector.extract_strided_slice %82 {offsets = [24, 0], sizes = [8, 256], strides = [1, 1]} : vector<32x256xf32> to vector<8x256xf32>
    %87 = tpu.concatenate %83, %84, %85, %86 in 1 : vector<8x256xf32>, vector<8x256xf32>, vector<8x256xf32>, vector<8x256xf32> -> vector<8x1024xf32>
    %c0_20 = arith.constant 0 : index
    %c0_21 = arith.constant 0 : index
    %88 = vector.load %arg4[%c0_20, %c0_21] : memref<1024x1024xf32, #tpu.memory_space<vmem>>, vector<1024x1024xf32>
    %cst_22 = arith.constant dense<0.000000e+00> : vector<8x1024xf32>
    %89 = tpu.matmul %87, %88, %cst_22 {dimension_numbers = #tpu.dot_dimension_numbers<[1], [0], [0], [1], [0, 0, 1, 1], [], []>} : vector<8x1024xf32>, vector<1024x1024xf32>, vector<8x1024xf32> -> vector<8x1024xf32>
    %c0_23 = arith.constant 0 : index
    %c0_24 = arith.constant 0 : index
    %c0_25 = arith.constant 0 : index
    %90 = vector.load %arg5[%c0_23, %c0_24, %c0_25] : memref<1x8x1024xf32, #tpu.memory_space<vmem>>, vector<1x8x1024xf32>
    %91 = vector.shape_cast %90 : vector<1x8x1024xf32> to vector<8x1024xf32>
    %92 = vector.shape_cast %89 : vector<8x1024xf32> to vector<1x8x1024xf32>
    tpu.vector_store %arg5[%c0_23, %c0_24, %c0_25], %92 {strides = array<i32>} : memref<1x8x1024xf32, #tpu.memory_space<vmem>>, vector<1x8x1024xf32>,
    return
  }
  func.func @transform_0(%arg0: i32, %arg1: i32) -> (i32, i32, i32) {
    %c0_i32 = arith.constant 0 : i32
    %c0_i32_0 = arith.constant 0 : i32
    %c0_i32_1 = arith.constant 0 : i32
    return %arg0, %c0_i32, %c0_i32_0 : i32, i32, i32
  }
  func.func @transform_1(%arg0: i32, %arg1: i32) -> (i32, i32, i32) {
    %c0_i32 = arith.constant 0 : i32
    %c0_i32_0 = arith.constant 0 : i32
    %c0_i32_1 = arith.constant 0 : i32
    return %arg1, %c0_i32, %c0_i32_0 : i32, i32, i32
  }
  func.func @transform_2(%arg0: i32, %arg1: i32) -> (i32, i32) {
    %c0_i32 = arith.constant 0 : i32
    %c0_i32_0 = arith.constant 0 : i32
    %c0_i32_1 = arith.constant 0 : i32
    return %c0_i32, %c0_i32_0 : i32, i32
  }
  func.func @transform_3(%arg0: i32, %arg1: i32) -> (i32, i32, i32) {
    %c0_i32 = arith.constant 0 : i32
    %c0_i32_0 = arith.constant 0 : i32
    return %arg0, %arg1, %c0_i32 : i32, i32, i32
  }
}

</mosaic_0001>

<bundles_post_ra>
// kernel: ukblock_forward.1
= control target key start
LH: loop header
LB: loop body
LE: loop exit
PB: predicated region body
PF: predicated region fallthrough
CT: control target
= control target key end

     0   :  { %8 = vsyncpa [#allocation3], 0  ;;  %s2943_s12 = smov 0   ;;  %s2945_s13 = smov 0   ;;  %s3177_s0 = inlined_call_operand.vmem [shape: f32[2,8,256], index: 0, kind: input, shape index: {}]   ;;  %s3178_s1 = inlined_call_operand.vmem [shape: f32[2,32,32], index: 1, kind: input, shape index: {}]   ;;  %s3179_s2 = inlined_call_operand.hbm [shape: f32[1024,1024], index: 2, kind: input, shape index: {}]   ;;  %s3180_s3 = inlined_call_operand.vmem [shape: f32[2,16,1024], index: 3, kind: output, shape index: {}]  }
   0x1   :  { %s2947_s14 = smov 0   ;;  %s2949_s15 = smov 0  }
   0x2   :  { %s2951_s16 = smov 0  }
   0x3 LB: > { %s2759_s17 = sadd.s32 4294967295, %s2914_s16   ;;  %s23_s18 = sadd.s32 1, %s2906_s14  ;;  %s2914_s16 = sphi %s2951_s16, %s14_s16   ;;  %s2910_s15 = sphi %s2949_s15, %s3191_s15   ;;  %s2906_s14 = sphi %s2947_s14, %s3190_s14   ;;  %s2902_s13 = sphi %s2945_s13, %s3189_s13   ;;  %s2898_s12 = sphi %s2943_s12, %s3188_s12  }
   0x4   : > { %p24_p0 = scmp.ge.s32.totalorder %s23_s18, 2  ;;  %s26_s19 = sadd.s32 1, %s2910_s15 }
   0x5   : > { %p2761_p1 = scmp.ge.s32.totalorder %s2914_s16, 1  ;;  %p132_p2 = scmp.lt.s32.totalorder %s2914_s16, 5 }
   0x6   : > { %s3193_s18 = smov (%p24_p0, %s23_s18), 0  ;;  %s3195_s19 = smov (!%p24_p0, %s26_s19), %s2910_s15 }
   0x7   : > { %p2976_p3 = pnand %p2761_p1, %p132_p2  ;;  %p28_p4 = scmp.ge.s32.totalorder %s3195_s19, 2 }
   0x8   : > { %p2980_p5 = scmp.eq.s32.totalorder %s2759_s17, 0  ;;  %s2916_s22 = smov [#allocation2]  }
   0x9   : > { %p2789_p6 = pneg %p2976_p3  ;;  %s3197_s19 = smov (%p28_p4, %s3195_s19), 0 }
   0xa   : > { %s144_s23 = sshll.u32 %s2916_s22, 4  ;;  %s145_s23 = int_to_ptr.vmem [resolvable:$true] %s144_s23 }
   0xb   : > { %p2990_p7 = pnand %p2980_p5, %p2789_p6  ;;  %s2857_s25 = scalar_lea.vmem %s145_s23, 131072 }
   0xc   : > { %p2858_p9 = scmp.ne.s32.totalorder %s145_s23, %s2857_s25  ;;  %p2865_p12 = scmp.lt.s32.totalorder %s145_s23, %s145_s23 }
   0xd   : > { %p2848_p8 = pneg %p2990_p7  ;;  %p2866_p13 = scmp.lt.s32.totalorder %s2857_s25, %s2857_s25 }
   0xf   : > { %p2860_p10 = pnand %p2858_p9, %p2848_p8  ;;  %p2867_p0 = por %p2866_p13, %p2865_p12 }
  0x11   : > { %p2861_p11 = pneg %p2860_p10 }
  0x13   : > { %p2868_p1 = pnand %p2867_p0, %p2861_p11 }
  0x15   : > { %2871 = shalt.err (!%p2868_p1)
}
  0x16   : > { %s2917_s26 = smov 1024   ;;  %s2918_s27 = smov 64  }
  0x17   : > { %2792 = dma.hbm_to_vmem [thread:$0]  (!%p2990_p7), %s3179_s2, 131072, %s145_s23, [#allocation3], %s2917_s26, %s2917_s26, %s2918_s27  }
  0x18   : > { %176 = sbr.rel (%p2976_p3) target bundleno = 1452 (0x5ac), region = 32 }
  0x1d   : > { %2893 = dma.done.wait (%p2980_p5), [#allocation3], 131072  }
  0x1e   : > { %2895 = vsyncadd (%p2980_p5), [#allocation3], 4294836224  ;;  %p209_p2 = scmp.lt.s32.totalorder %s2902_s13, 1  ;;  %s2919_s7 = smov 127   ;;  %v230_v2 = vlaneseq  ;;  %v2921_v14 = vmov 0.0   ;;  %vm299_vm5 = vcmask 261120  }
  0x1f   : > { %s2920_s8 = smov 112   ;;  %376 = vmatprep.mubr.f32.mxu0 %v2921_v14  ;;  %p214_p3 = scmp.lt.s32.totalorder %s2898_s12, 1  ;;  %v2922_v52 = vmov 0   ;;  %v601_v53 = vld [vmem:[#allocation2 + $0x3c8] sm:$0xff]  ;;  %v600_v55 = vld [vmem:[#allocation2 + $0x3c0] sm:$0xff] }
  0x20   : > { %s3199_s13 = smov (!%p209_p2, %s2902_s13), 1  ;;  %v231_v3 = vand.u32 127, %v230_v2  ;;  %2842 = vset.pattern.permute.xlu1 %v2922_v52  ;;  %2843 = vset.pattern.permute.xlu0 %v2922_v52  ;;  %v857_v54 = vld [vmem:[#allocation2 + $0xbc8] sm:$0xff]  ;;  %v856_v56 = vld [vmem:[#allocation2 + $0xbc0] sm:$0xff] }
  0x21   : > { %s2783_s30 = sshll.u32 %s3199_s13, 4  ;;  %s3201_s12 = smov (!%p214_p3, %s2898_s12), 1  ;;  %1504 = vmatprep.subr.mxu1 %v601_v53  ;;  %v593_v57 = vld [vmem:[#allocation2 + $0x388] sm:$0xff]  ;;  %v592_v59 = vld [vmem:[#allocation2 + $0x380] sm:$0xff] }
  0x22   : > { %s213_s6 = scalar_lea.vmem %s3177_s0, %s2783_s30  ;;  %v237_v4 = vand.u32 15, %v231_v3  ;;  %v232_v5 = vadd.s32 128, %v231_v3  ;;  %vm265_vm0 = vcmp.lt.s32.totalorder %v231_v3, 127  ;;  %vm278_vm3 = vcmp.lt.s32.totalorder %v231_v3, 112  ;;  %s2784_s9 = sshll.u32 %s3201_s12, 5  ;;  %v849_v58 = vld [vmem:[#allocation2 + $0xb88] sm:$0xff]  ;;  %1505 = vmatpush1.msra.mxu1 %v600_v55 }
  0x23   : > { %v228_v0 = vld [vmem:[%s213_s6] sm:$0xff]  ;;  %v229_v1 = vld [vmem:[%s213_s6 + $0x8] sm:$0xff]  ;;  %s218_s17 = scalar_lea.vmem %s3178_s1, %s2784_s9  ;;  %1506 = vmatprep.subr.mxu1 %v593_v57  ;;  %s2770_s20 = sshll.u32 %s3201_s12, 3 }
  0x24   : > { %261 = vrot.lane.b32.xlu0 %v228_v0, %s2919_s7  ;;  %vm3017_vm1 = vcmp.ne.s32.totalorder %v237_v4, 15  ;;  %v244_v8 = vand.u32 15, %v232_v5  ;;  %vm260_vm4 = vcmp.lt.s32.totalorder %v232_v5, 240  ;;  %v295_v24 = vld [vmem:[%s218_s17] sm:$0xff]  ;;  %v296_v25 = vld [vmem:[%s218_s17 + $0x8] sm:$0xff]  ;;  %v297_v26 = vld [vmem:[%s218_s17 + $0x10] sm:$0xff]  ;;  %1507 = vmatpush1.msra.mxu1 %v592_v59  ;;  %s3132_s21 = sadd.s32 %s2783_s30, %s2770_s20 }
  0x25   : > { %v298_v27 = vld [vmem:[%s218_s17 + $0x18] sm:$0xff]  ;;  %v848_v60 = vld [vmem:[#allocation2 + $0xb80] sm:$0xff]  ;;  %v585_v61 = vld [vmem:[#allocation2 + $0x348] sm:$0xff]  ;;  %s2772_s12 = sshll.u32 %s3132_s21, 3 }
  0x26   : > { %vm3023_vm2 = vcmp.ne.s32.totalorder %v244_v8, 15  ;;  %v841_v62 = vld [vmem:[#allocation2 + $0xb48] sm:$0xff]  ;;  %v584_v63 = vld [vmem:[#allocation2 + $0x340] sm:$0xff]  ;;  %1508 = vmatprep.subr.mxu1 %v585_v61  ;;  %s3138_s23 = scalar_lea.vmem %s3180_s3, %s2772_s12 }
  0x27   : > { %v833_v2 = vld [vmem:[#allocation2 + $0xb08] sm:$0xff]  ;;  %v576_v3 = vld [vmem:[#allocation2 + $0x300] sm:$0xff]  ;;  %1509 = vmatpush1.msra.mxu1 %v584_v63 }
  0x28   : > { %263 = vrot.lane.b32.xlu0 %v229_v1, %s2919_s7  ;;  %v832_v4 = vld [vmem:[#allocation2 + $0xb00] sm:$0xff]  ;;  %v569_v5 = vld [vmem:[#allocation2 + $0x2c8] sm:$0xff] }
  0x29   : > { %v568_v7 = vld [vmem:[#allocation2 + $0x2c0] sm:$0xff]  ;;  %v553_v13 = vld [vmem:[#allocation2 + $0x248] sm:$0xff] }
  0x2a   : > { %v824_v8 = vld [vmem:[#allocation2 + $0xac0] sm:$0xff]  ;;  %v489_v53 = vld [vmem:[#allocation2 + $0x48] sm:$0xff] }
  0x2b   : > { %v752_v52 = vld [vmem:[#allocation2 + $0x880] sm:$0xff]  ;;  %v481_v57 = vld [vmem:[#allocation2 + $0x8] sm:$0xff] }
  0x2c   : > { %274 = vrot.lane.b32.xlu0 %v228_v0, %s2920_s8  ;;  %v488_v55 = vld [vmem:[#allocation2 + $0x40] sm:$0xff]  ;;  %v729_v61 = vld [vmem:[#allocation2 + $0x7c8] sm:$0xff] }
  0x2d   : > { %v480_v59 = vld [vmem:[#allocation2] sm:$0xff] }
  0x2e   : > { %v728_v63 = vld [vmem:[#allocation2 + $0x7c0] sm:$0xff] }
  0x96   : > { %v262_v6 = vpop.permute.xlu0 %261 }
  0x9a   : > { %v264_v9 = vpop.permute.xlu0 %263 }
  0x9b   : > { %v266_v10 = vsel %vm265_vm0, %v262_v6, %v264_v9  ;;  %v267_v12 = vsel %vm265_vm0, %v264_v9, %v262_v6  ;;  %v825_v6 = vld [vmem:[#allocation2 + $0xac8] sm:$0xff] }
  0x9c   : > { %v272_v11 = vsel %vm3017_vm1, %v266_v10, 0.0  ;;  %v273_v15 = vsel %vm3023_vm2, %v267_v12, 0.0  ;;  %v561_v9 = vld [vmem:[#allocation2 + $0x288] sm:$0xff] }
  0x9d   : > { %287 = vrot.lane.b32.xlu1 %v272_v11, %s2920_s8  ;;  %v560_v11 = vld [vmem:[#allocation2 + $0x280] sm:$0xff] }
  0x9e   : > { %v275_v20 = vpop.permute.xlu0 %274 }
  0xa1   : > { %289 = vrot.lane.b32.xlu1 %v273_v15, %s2920_s8  ;;  %v552_v15 = vld [vmem:[#allocation2 + $0x240] sm:$0xff] }
  0xa5   : > { %276 = vrot.lane.b32.xlu1 %v229_v1, %s2920_s8 }
 0x10f   : > { %v288_v16 = vpop.permute.xlu1 %287 }
 0x113   : > { %v290_v17 = vpop.permute.xlu1 %289 }
 0x114   : > { %v292_v18 = vsel %vm278_vm3, %v290_v17, %v288_v16  ;;  %v291_v19 = vsel %vm278_vm3, %v288_v16, %v290_v17  ;;  %v808_v16 = vld [vmem:[#allocation2 + $0xa40] sm:$0xff]  ;;  %v545_v17 = vld [vmem:[#allocation2 + $0x208] sm:$0xff] }
 0x115   : > { %2773 = vmatprep.subr.msk.mxu0 %vm260_vm4, %v292_v18  ;;  %v801_v18 = vld [vmem:[#allocation2 + $0xa08] sm:$0xff] }
 0x116   : > { %337 = vmatpush1.msra.mxu0 %v291_v19  ;;  %v544_v19 = vld [vmem:[#allocation2 + $0x200] sm:$0xff] }
 0x117   : > { %v277_v21 = vpop.permute.xlu1 %276 }
 0x118   : > { %v280_v22 = vsel %vm278_vm3, %v277_v21, %v275_v20  ;;  %v279_v23 = vsel %vm278_vm3, %v275_v20, %v277_v21  ;;  %v800_v20 = vld [vmem:[#allocation2 + $0xa00] sm:$0xff]  ;;  %v537_v21 = vld [vmem:[#allocation2 + $0x1c8] sm:$0xff] }
 0x119   : > { %2774 = vmatprep.subr.msk.mxu0 %vm260_vm4, %v280_v22  ;;  %v793_v22 = vld [vmem:[#allocation2 + $0x9c8] sm:$0xff] }
 0x11a   : > { %339 = vmatpush1.msra.mxu0 %v279_v23  ;;  %v536_v23 = vld [vmem:[#allocation2 + $0x1c0] sm:$0xff] }
 0x11b   : > { %2775 = vmatprep.subr.msk.mxu0 %vm3023_vm2, %v267_v12  ;;  %v816_v12 = vld [vmem:[#allocation2 + $0xa80] sm:$0xff] }
 0x11c   : > { %2776 = vmatpush1.msk.msra.mxu0 %vm3017_vm1, %v266_v10  ;;  %v817_v10 = vld [vmem:[#allocation2 + $0xa88] sm:$0xff] }
 0x11d   : > { %342 = vmatprep.subr.mxu0 %v229_v1  ;;  %v577_v1 = vld [vmem:[#allocation2 + $0x308] sm:$0xff] }
 0x11e   : > { %343 = vmatpush1.msra.mxu0 %v228_v0  ;;  %v840_v0 = vld [vmem:[#allocation2 + $0xb40] sm:$0xff]  ;;  %1510 = vmatprep.subr.mxu1 %v577_v1  ;;  %v721_v1 = vld [vmem:[#allocation2 + $0x788] sm:$0xff] }
 0x11f   : > { %2777 = vmatmul.mubr.msk.f32.vlgmr.msra.gmra.mxu0 %vm299_vm5, %v295_v24  ;;  %1575 = vmatprep.subr.mxu0 %v857_v54  ;;  %v792_v24 = vld [vmem:[#allocation2 + $0x9c0] sm:$0xff]  ;;  %v745_v54 = vld [vmem:[#allocation2 + $0x848] sm:$0xff] }
 0x120   : > { %382 = vmatprep.mubr.f32.mxu0 %v2921_v14  ;;  %1576 = vmatpush1.msra.mxu0 %v856_v56  ;;  %v744_v56 = vld [vmem:[#allocation2 + $0x840] sm:$0xff] }
 0x121   : > { %1577 = vmatprep.subr.mxu0 %v849_v58  ;;  %1511 = vmatpush1.msra.mxu1 %v576_v3  ;;  %v737_v58 = vld [vmem:[#allocation2 + $0x808] sm:$0xff]  ;;  %v720_v3 = vld [vmem:[#allocation2 + $0x780] sm:$0xff] }
 0x122   : > { %1578 = vmatpush1.msra.mxu0 %v848_v60  ;;  %1512 = vmatprep.subr.mxu1 %v569_v5  ;;  %v736_v60 = vld [vmem:[#allocation2 + $0x800] sm:$0xff] }
 0x123   : > { %2778 = vmatmul.mubr.msk.f32.gmra.mxu0 %vm299_vm5, %v296_v25  ;;  %1579 = vmatprep.subr.mxu0 %v841_v62  ;;  %v529_v25 = vld [vmem:[#allocation2 + $0x188] sm:$0xff] }
 0x124   : > { %388 = vmatprep.mubr.f32.mxu0 %v2921_v14  ;;  %1580 = vmatpush1.msra.mxu0 %v840_v0  ;;  %v985_v62 = vld [vmem:[#allocation2 + $0xfc8] sm:$0xff]  ;;  %v984_v0 = vld [vmem:[#allocation2 + $0xfc0] sm:$0xff] }
 0x125   : > { %1581 = vmatprep.subr.mxu0 %v833_v2  ;;  %1513 = vmatpush1.msra.mxu1 %v568_v7  ;;  %v977_v2 = vld [vmem:[#allocation2 + $0xf88] sm:$0xff] }
 0x126   : > { %1582 = vmatpush1.msra.mxu0 %v832_v4  ;;  %1514 = vmatprep.subr.mxu1 %v561_v9  ;;  %v976_v4 = vld [vmem:[#allocation2 + $0xf80] sm:$0xff] }
 0x127   : > { %2779 = vmatmul.mubr.msk.f32.gmra.mxu0 %vm299_vm5, %v297_v26  ;;  %1583 = vmatprep.subr.mxu0 %v825_v6  ;;  %v785_v26 = vld [vmem:[#allocation2 + $0x988] sm:$0xff] }
 0x128   : > { %394 = vmatprep.mubr.f32.mxu0 %v2921_v14  ;;  %1584 = vmatpush1.msra.mxu0 %v824_v8  ;;  %v809_v14 = vld [vmem:[#allocation2 + $0xa48] sm:$0xff] }
 0x129   : > { %1585 = vmatprep.subr.mxu0 %v817_v10  ;;  %1515 = vmatpush1.msra.mxu1 %v560_v11 }
 0x12a   : > { %1586 = vmatpush1.msra.mxu0 %v816_v12  ;;  %1516 = vmatprep.subr.mxu1 %v553_v13 }
 0x12b   : > { %2780 = vmatmul.mubr.msk.f32.gmra.mxu0 %vm299_vm5, %v298_v27  ;;  %1587 = vmatprep.subr.mxu0 %v809_v14  ;;  %v528_v27 = vld [vmem:[#allocation2 + $0x180] sm:$0xff]  ;;  %v713_v14 = vld [vmem:[#allocation2 + $0x748] sm:$0xff] }
 0x12c   : > { %1517 = vmatpush1.msra.mxu1 %v552_v15  ;;  %1588 = vmatpush1.msra.mxu0 %v808_v16  ;;  %v969_v15 = vld [vmem:[#allocation2 + $0xf48] sm:$0xff]  ;;  %v712_v16 = vld [vmem:[#allocation2 + $0x740] sm:$0xff] }
 0x12d   : > { %1518 = vmatprep.subr.mxu1 %v545_v17  ;;  %1589 = vmatprep.subr.mxu0 %v801_v18 }
 0x12e   : > { %1519 = vmatpush1.msra.mxu1 %v544_v19  ;;  %1590 = vmatpush1.msra.mxu0 %v800_v20  ;;  %v968_v19 = vld [vmem:[#allocation2 + $0xf40] sm:$0xff]  ;;  %v705_v20 = vld [vmem:[#allocation2 + $0x708] sm:$0xff] }
 0x12f   : > { %1520 = vmatprep.subr.mxu1 %v537_v21  ;;  %1591 = vmatprep.subr.mxu0 %v793_v22  ;;  %v961_v21 = vld [vmem:[#allocation2 + $0xf08] sm:$0xff]  ;;  %v704_v22 = vld [vmem:[#allocation2 + $0x700] sm:$0xff] }
 0x130   : > { %1521 = vmatpush1.msra.mxu1 %v536_v23  ;;  %1592 = vmatpush1.msra.mxu0 %v792_v24  ;;  %v960_v23 = vld [vmem:[#allocation2 + $0xf00] sm:$0xff]  ;;  %v697_v24 = vld [vmem:[#allocation2 + $0x6c8] sm:$0xff] }
 0x131   : > { %1522 = vmatprep.subr.mxu1 %v529_v25  ;;  %1593 = vmatprep.subr.mxu0 %v785_v26 }
 0x132   : > { %1523 = vmatpush1.msra.mxu1 %v528_v27  ;;  %v953_v27 = vld [vmem:[#allocation2 + $0xec8] sm:$0xff] }
 0x1df   : > { %v3041_v28 = vpop.f32.mrf.mxu0 }
 0x1e0   : > { %v413_v33 = vmul.f32 %v3041_v28, %v3041_v28 }
 0x1e1   : > { %v3043_v29 = vpop.f32.mrf.mxu0 }
 0x1e2   : > { %v401_v30 = vadd.f32 %v3043_v29, %v3041_v28  ;;  %v414_v31 = vmul.f32 %v3043_v29, %v3043_v29 }
 0x1e3   : > { %v3049_v32 = vpop.f32.mrf.mxu0 }
 0x1e4   : > { %402 = vadd.xlane.f32.xlu0 %v401_v30  ;;  %v421_v35 = vadd.f32 %v414_v31, %v413_v33  ;;  %v415_v39 = vmul.f32 %v3049_v32, %v3049_v32  ;;  %v784_v30 = vld [vmem:[#allocation2 + $0x980] sm:$0xff]  ;;  %v521_v31 = vld [vmem:[#allocation2 + $0x148] sm:$0xff] }
 0x1e5   : > { %v3053_v34 = vpop.f32.mrf.mxu0  ;;  %v777_v33 = vld [vmem:[#allocation2 + $0x948] sm:$0xff]  ;;  %1594 = vmatpush1.msra.mxu0 %v784_v30  ;;  %1524 = vmatprep.subr.mxu1 %v521_v31  ;;  %v696_v30 = vld [vmem:[#allocation2 + $0x6c0] sm:$0xff] }
 0x1e6   : > { %v404_v36 = vadd.f32 %v3053_v34, %v3049_v32  ;;  %v416_v37 = vmul.f32 %v3053_v34, %v3053_v34  ;;  %1595 = vmatprep.subr.mxu0 %v777_v33  ;;  %v952_v33 = vld [vmem:[#allocation2 + $0xec0] sm:$0xff] }
 0x1e7   : > { %v3059_v38 = vpop.f32.mrf.mxu0 }
 0x1e8   : > { %422 = vadd.xlane.f32.xlu0 %v421_v35  ;;  %405 = vadd.xlane.f32.xlu1 %v404_v36  ;;  %v424_v41 = vadd.f32 %v416_v37, %v415_v39  ;;  %v417_v45 = vmul.f32 %v3059_v38, %v3059_v38  ;;  %v520_v35 = vld [vmem:[#allocation2 + $0x140] sm:$0xff]  ;;  %v513_v37 = vld [vmem:[#allocation2 + $0x108] sm:$0xff] }
 0x1e9   : > { %v3063_v40 = vpop.f32.mrf.mxu0  ;;  %v776_v36 = vld [vmem:[#allocation2 + $0x940] sm:$0xff]  ;;  %v769_v39 = vld [vmem:[#allocation2 + $0x908] sm:$0xff]  ;;  %1525 = vmatpush1.msra.mxu1 %v520_v35 }
 0x1ea   : > { %v407_v42 = vadd.f32 %v3063_v40, %v3059_v38  ;;  %v418_v43 = vmul.f32 %v3063_v40, %v3063_v40  ;;  %1596 = vmatpush1.msra.mxu0 %v776_v36  ;;  %1526 = vmatprep.subr.mxu1 %v513_v37  ;;  %v689_v35 = vld [vmem:[#allocation2 + $0x688] sm:$0xff] }
 0x1eb   : > { %v3069_v44 = vpop.f32.mrf.mxu0  ;;  %1597 = vmatprep.subr.mxu0 %v769_v39  ;;  %v945_v37 = vld [vmem:[#allocation2 + $0xe88] sm:$0xff]  ;;  %v688_v39 = vld [vmem:[#allocation2 + $0x680] sm:$0xff] }
 0x1ec   : > { %425 = vadd.xlane.f32.xlu1 %v424_v41  ;;  %408 = vadd.xlane.f32.xlu0 %v407_v42  ;;  %v427_v47 = vadd.f32 %v418_v43, %v417_v45  ;;  %v419_v50 = vmul.f32 %v3069_v44, %v3069_v44  ;;  %v512_v41 = vld [vmem:[#allocation2 + $0x100] sm:$0xff]  ;;  %v505_v43 = vld [vmem:[#allocation2 + $0xc8] sm:$0xff] }
 0x1ed   : > { %v3073_v46 = vpop.f32.mrf.mxu0  ;;  %v768_v42 = vld [vmem:[#allocation2 + $0x900] sm:$0xff]  ;;  %v761_v45 = vld [vmem:[#allocation2 + $0x8c8] sm:$0xff]  ;;  %1527 = vmatpush1.msra.mxu1 %v512_v41 }
 0x1ee   : > { %v410_v48 = vadd.f32 %v3073_v46, %v3069_v44  ;;  %v420_v49 = vmul.f32 %v3073_v46, %v3073_v46  ;;  %1598 = vmatpush1.msra.mxu0 %v768_v42  ;;  %1528 = vmatprep.subr.mxu1 %v505_v43  ;;  %v944_v41 = vld [vmem:[#allocation2 + $0xe80] sm:$0xff]  ;;  %v681_v42 = vld [vmem:[#allocation2 + $0x648] sm:$0xff] }
 0x1ef   : > { %1599 = vmatprep.subr.mxu0 %v761_v45 }
 0x1f0   : > { %428 = vadd.xlane.f32.xlu1 %v427_v47  ;;  %411 = vadd.xlane.f32.xlu0 %v410_v48  ;;  %v430_v51 = vadd.f32 %v420_v49, %v419_v50  ;;  %v504_v47 = vld [vmem:[#allocation2 + $0xc0] sm:$0xff]  ;;  %v497_v49 = vld [vmem:[#allocation2 + $0x88] sm:$0xff] }
 0x1f1   : > { %v760_v48 = vld [vmem:[#allocation2 + $0x8c0] sm:$0xff]  ;;  %v753_v50 = vld [vmem:[#allocation2 + $0x888] sm:$0xff]  ;;  %1529 = vmatpush1.msra.mxu1 %v504_v47 }
 0x1f2   : > { %1600 = vmatpush1.msra.mxu0 %v760_v48  ;;  %1530 = vmatprep.subr.mxu1 %v497_v49  ;;  %v937_v47 = vld [vmem:[#allocation2 + $0xe48] sm:$0xff]  ;;  %v680_v48 = vld [vmem:[#allocation2 + $0x640] sm:$0xff] }
 0x1f3   : > { %1601 = vmatprep.subr.mxu0 %v753_v50  ;;  %v936_v49 = vld [vmem:[#allocation2 + $0xe40] sm:$0xff]  ;;  %v673_v50 = vld [vmem:[#allocation2 + $0x608] sm:$0xff] }
 0x1f4   : > { %431 = vadd.xlane.f32.xlu0 %v430_v51  ;;  %v496_v51 = vld [vmem:[#allocation2 + $0x80] sm:$0xff]  ;;  %1602 = vmatpush1.msra.mxu0 %v752_v52  ;;  %v929_v52 = vld [vmem:[#allocation2 + $0xe08] sm:$0xff] }
 0x1f5   : > { %1531 = vmatpush1.msra.mxu1 %v496_v51  ;;  %1603 = vmatprep.subr.mxu0 %v745_v54  ;;  %v928_v54 = vld [vmem:[#allocation2 + $0xe00] sm:$0xff] }
 0x1f6   : > { %1532 = vmatprep.subr.mxu1 %v489_v53  ;;  %1604 = vmatpush1.msra.mxu0 %v744_v56  ;;  %v672_v53 = vld [vmem:[#allocation2 + $0x600] sm:$0xff] }
 0x1f7   : > { %1533 = vmatpush1.msra.mxu1 %v488_v55  ;;  %1605 = vmatprep.subr.mxu0 %v737_v58  ;;  %v665_v55 = vld [vmem:[#allocation2 + $0x5c8] sm:$0xff]  ;;  %v664_v58 = vld [vmem:[#allocation2 + $0x5c0] sm:$0xff] }
 0x1f8   : > { %1534 = vmatprep.subr.mxu1 %v481_v57  ;;  %1606 = vmatpush1.msra.mxu0 %v736_v60  ;;  %v921_v57 = vld [vmem:[#allocation2 + $0xdc8] sm:$0xff] }
 0x1f9   : > { %1535 = vmatpush1.msra.mxu1 %v480_v59  ;;  %1607 = vmatprep.subr.mxu0 %v985_v62  ;;  %v920_v59 = vld [vmem:[#allocation2 + $0xdc0] sm:$0xff]  ;;  %v657_v60 = vld [vmem:[#allocation2 + $0x588] sm:$0xff] }
 0x1fa   : > { %1536 = vmatprep.subr.mxu1 %v729_v61  ;;  %1608 = vmatpush2.msra.mxu0 %v984_v0  ;;  %v913_v62 = vld [vmem:[#allocation2 + $0xd88] sm:$0xff]  ;;  %v912_v0 = vld [vmem:[#allocation2 + $0xd80] sm:$0xff] }
 0x1fb   : > { %1537 = vmatpush2.msra.mxu1 %v728_v63  ;;  %1609 = vmatprep.subr.mxu0 %v977_v2  ;;  %v656_v63 = vld [vmem:[#allocation2 + $0x580] sm:$0xff]  ;;  %v905_v2 = vld [vmem:[#allocation2 + $0xd48] sm:$0xff] }
 0x1fc   : > { %1538 = vmatprep.subr.mxu1 %v721_v1  ;;  %1610 = vmatpush2.msra.mxu0 %v976_v4  ;;  %v649_v1 = vld [vmem:[#allocation2 + $0x548] sm:$0xff]  ;;  %v904_v4 = vld [vmem:[#allocation2 + $0xd40] sm:$0xff] }
 0x1fd   : > { %1539 = vmatpush2.msra.mxu1 %v720_v3  ;;  %1611 = vmatprep.subr.mxu0 %v969_v15  ;;  %v648_v3 = vld [vmem:[#allocation2 + $0x540] sm:$0xff] }
 0x1fe   : > { %1540 = vmatprep.subr.mxu1 %v713_v14  ;;  %1612 = vmatpush2.msra.mxu0 %v968_v19  ;;  %v881_v14 = vld [vmem:[#allocation2 + $0xc88] sm:$0xff]  ;;  %v624_v15 = vld [vmem:[#allocation2 + $0x480] sm:$0xff] }
 0x1ff   : > { %1541 = vmatpush2.msra.mxu1 %v712_v16  ;;  %1613 = vmatprep.subr.mxu0 %v961_v21  ;;  %v880_v16 = vld [vmem:[#allocation2 + $0xc80] sm:$0xff]  ;;  %v609_v21 = vld [vmem:[#allocation2 + $0x408] sm:$0xff] }
 0x200   : > { %1542 = vmatprep.subr.mxu1 %v705_v20  ;;  %1614 = vmatpush2.msra.mxu0 %v960_v23  ;;  %v616_v19 = vld [vmem:[#allocation2 + $0x440] sm:$0xff] }
 0x201   : > { %1543 = vmatpush2.msra.mxu1 %v704_v22  ;;  %1615 = vmatprep.subr.mxu0 %v953_v27  ;;  %v872_v20 = vld [vmem:[#allocation2 + $0xc40] sm:$0xff]  ;;  %v865_v22 = vld [vmem:[#allocation2 + $0xc08] sm:$0xff] }
 0x202   : > { %1544 = vmatprep.subr.mxu1 %v697_v24  ;;  %1616 = vmatpush2.msra.mxu0 %v952_v33  ;;  %v608_v23 = vld [vmem:[#allocation2 + $0x400] sm:$0xff]  ;;  %v1369_v27 = vld [vmem:[#allocation2 + $0x1bc8] sm:$0xff] }
 0x203   : > { %1545 = vmatpush2.msra.mxu1 %v696_v30  ;;  %1617 = vmatprep.subr.mxu0 %v945_v37  ;;  %v864_v24 = vld [vmem:[#allocation2 + $0xc00] sm:$0xff] }
 0x204   : > { %1546 = vmatprep.subr.mxu1 %v689_v35  ;;  %1618 = vmatpush2.msra.mxu0 %v944_v41 }
 0x205   : > { %1547 = vmatpush2.msra.mxu1 %v688_v39  ;;  %1619 = vmatprep.subr.mxu0 %v937_v47 }
 0x206   : > { %1548 = vmatprep.subr.mxu1 %v681_v42  ;;  %1620 = vmatpush2.msra.mxu0 %v936_v49 }
 0x207   : > { %1549 = vmatpush2.msra.mxu1 %v680_v48  ;;  %1621 = vmatprep.subr.mxu0 %v929_v52  ;;  %v1105_v52 = vld [vmem:[#allocation2 + $0x1388] sm:$0xff] }
 0x208   : > { %1550 = vmatprep.subr.mxu1 %v673_v50  ;;  %1622 = vmatpush2.msra.mxu0 %v928_v54  ;;  %v1361_v54 = vld [vmem:[#allocation2 + $0x1b88] sm:$0xff] }
 0x209   : > { %1551 = vmatpush2.msra.mxu1 %v672_v53  ;;  %1623 = vmatprep.subr.mxu0 %v921_v57  ;;  %v1360_v57 = vld [vmem:[#allocation2 + $0x1b80] sm:$0xff] }
 0x20a   : > { %1552 = vmatprep.subr.mxu1 %v665_v55  ;;  %1624 = vmatpush2.msra.mxu0 %v920_v59  ;;  %v1353_v59 = vld [vmem:[#allocation2 + $0x1b48] sm:$0xff] }
 0x20b   : > { %1553 = vmatpush2.msra.mxu1 %v664_v58  ;;  %1625 = vmatprep.subr.mxu0 %v913_v62  ;;  %v1097_v58 = vld [vmem:[#allocation2 + $0x1348] sm:$0xff] }
 0x20c   : > { %1554 = vmatprep.subr.mxu1 %v657_v60  ;;  %1626 = vmatpush2.msra.mxu0 %v912_v0  ;;  %v1096_v60 = vld [vmem:[#allocation2 + $0x1340] sm:$0xff]  ;;  %v1089_v62 = vld [vmem:[#allocation2 + $0x1308] sm:$0xff] }
 0x20d   : > { %1555 = vmatpush2.msra.mxu1 %v656_v63  ;;  %1627 = vmatprep.subr.mxu0 %v905_v2  ;;  %v1345_v63 = vld [vmem:[#allocation2 + $0x1b08] sm:$0xff]  ;;  %v1088_v0 = vld [vmem:[#allocation2 + $0x1300] sm:$0xff] }
 0x20e   : > { %1556 = vmatprep.subr.mxu1 %v649_v1  ;;  %1628 = vmatpush2.msra.mxu0 %v904_v4  ;;  %v1344_v1 = vld [vmem:[#allocation2 + $0x1b00] sm:$0xff]  ;;  %v1081_v2 = vld [vmem:[#allocation2 + $0x12c8] sm:$0xff] }
 0x20f   : > { %1557 = vmatpush2.msra.mxu1 %v648_v3  ;;  %v1337_v3 = vld [vmem:[#allocation2 + $0x1ac8] sm:$0xff]  ;;  %v1080_v4 = vld [vmem:[#allocation2 + $0x12c0] sm:$0xff] }
 0x26d   : > { %v403_v5 = vpop.xlane.xlu0 %402 }
 0x271   : > { %v423_v6 = vpop.xlane.xlu0 %422  ;;  %v406_v7 = vpop.xlane.xlu1 %405 }
 0x272   : > { %v433_v10 = vadd.f32 %v406_v7, %v403_v5  ;;  %v641_v5 = vld [vmem:[#allocation2 + $0x508] sm:$0xff]  ;;  %v640_v7 = vld [vmem:[#allocation2 + $0x500] sm:$0xff] }
 0x273   : > { %1558 = vmatprep.subr.mxu1 %v641_v5  ;;  %v1336_v5 = vld [vmem:[#allocation2 + $0x1ac0] sm:$0xff] }
 0x274   : > { %1559 = vmatpush2.msra.mxu1 %v640_v7  ;;  %v1329_v7 = vld [vmem:[#allocation2 + $0x1a88] sm:$0xff] }
 0x275   : > { %v426_v8 = vpop.xlane.xlu1 %425  ;;  %v409_v9 = vpop.xlane.xlu0 %408 }
 0x276   : > { %v434_v11 = vadd.f32 %v433_v10, %v409_v9  ;;  %v437_v17 = vadd.f32 %v426_v8, %v423_v6  ;;  %v897_v6 = vld [vmem:[#allocation2 + $0xd08] sm:$0xff]  ;;  %v896_v8 = vld [vmem:[#allocation2 + $0xd00] sm:$0xff] }
 0x277   : > { %v633_v9 = vld [vmem:[#allocation2 + $0x4c8] sm:$0xff]  ;;  %1629 = vmatprep.subr.mxu0 %v897_v6 }
 0x278   : > { %v889_v10 = vld [vmem:[#allocation2 + $0xcc8] sm:$0xff]  ;;  %1630 = vmatpush2.msra.mxu0 %v896_v8  ;;  %1560 = vmatprep.subr.mxu1 %v633_v9  ;;  %v1072_v8 = vld [vmem:[#allocation2 + $0x1280] sm:$0xff] }
 0x279   : > { %v429_v12 = vpop.xlane.xlu1 %428  ;;  %v412_v13 = vpop.xlane.xlu0 %411  ;;  %1631 = vmatprep.subr.mxu0 %v889_v10  ;;  %v1073_v6 = vld [vmem:[#allocation2 + $0x1288] sm:$0xff]  ;;  %v1328_v9 = vld [vmem:[#allocation2 + $0x1a80] sm:$0xff] }
 0x27a   : > { %v435_v18 = vadd.f32 %v434_v11, %v412_v13  ;;  %v438_v25 = vadd.f32 %v437_v17, %v429_v12  ;;  %v632_v11 = vld [vmem:[#allocation2 + $0x4c0] sm:$0xff]  ;;  %v625_v13 = vld [vmem:[#allocation2 + $0x488] sm:$0xff] }
 0x27b   : > { %v888_v12 = vld [vmem:[#allocation2 + $0xcc0] sm:$0xff]  ;;  %1561 = vmatpush2.msra.mxu1 %v632_v11  ;;  %v617_v17 = vld [vmem:[#allocation2 + $0x448] sm:$0xff] }
 0x27c   : > { %v436_v26 = vmul.f32 0.0009765625, %v435_v18  ;;  %1632 = vmatpush2.msra.mxu0 %v888_v12  ;;  %1562 = vmatprep.subr.mxu1 %v625_v13  ;;  %v873_v18 = vld [vmem:[#allocation2 + $0xc48] sm:$0xff]  ;;  %v1064_v12 = vld [vmem:[#allocation2 + $0x1240] sm:$0xff] }
 0x27d   : > { %v432_v31 = vpop.xlane.xlu0 %431  ;;  %1633 = vmatprep.subr.mxu0 %v881_v14  ;;  %1563 = vmatpush2.msra.mxu1 %v624_v15  ;;  %v1065_v10 = vld [vmem:[#allocation2 + $0x1248] sm:$0xff]  ;;  %v1320_v13 = vld [vmem:[#allocation2 + $0x1a40] sm:$0xff] }
 0x27e   : > { %v439_v36 = vadd.f32 %v438_v25, %v432_v31  ;;  %448 = vperm.xlu1 %2842, %v436_v26   ;;  %v441_v43 = vmul.f32 %v436_v26, %v436_v26  ;;  %1634 = vmatpush2.msra.mxu0 %v880_v16  ;;  %v1113_v26 = vld [vmem:[#allocation2 + $0x13c8] sm:$0xff]  ;;  %v1056_v16 = vld [vmem:[#allocation2 + $0x1200] sm:$0xff] }
 0x27f   : > { %1564 = vmatprep.subr.mxu1 %v617_v17  ;;  %1635 = vmatprep.subr.mxu0 %v873_v18  ;;  %v1321_v11 = vld [vmem:[#allocation2 + $0x1a48] sm:$0xff]  ;;  %v1312_v17 = vld [vmem:[#allocation2 + $0x1a00] sm:$0xff] }
 0x280   : > { %v440_v45 = vmul.f32 0.0009765625, %v439_v36  ;;  %1565 = vmatpush2.msra.mxu1 %v616_v19  ;;  %1636 = vmatpush2.msra.mxu0 %v872_v20  ;;  %v1057_v14 = vld [vmem:[#allocation2 + $0x1208] sm:$0xff]  ;;  %v1048_v20 = vld [vmem:[#allocation2 + $0x11c0] sm:$0xff] }
 0x281   : > { %1566 = vmatprep.subr.mxu1 %v609_v21  ;;  %1637 = vmatprep.subr.mxu0 %v865_v22  ;;  %v1313_v15 = vld [vmem:[#allocation2 + $0x1a08] sm:$0xff]  ;;  %v1304_v21 = vld [vmem:[#allocation2 + $0x19c0] sm:$0xff] }
 0x282   : > { %v442_v51 = vsub.f32 %v440_v45, %v441_v43  ;;  %1567 = vmatpush2.msra.mxu1 %v608_v23  ;;  %1638 = vmatpush2.msra.mxu0 %v864_v24  ;;  %v1049_v18 = vld [vmem:[#allocation2 + $0x11c8] sm:$0xff]  ;;  %v1040_v24 = vld [vmem:[#allocation2 + $0x1180] sm:$0xff] }
 0x283   : > { %1646 = vmatprep.subr.mxu1 %v1113_v26  ;;  %1717 = vmatprep.subr.mxu0 %v1369_v27  ;;  %v1305_v19 = vld [vmem:[#allocation2 + $0x19c8] sm:$0xff] }
 0x284   : > { %v443_v56 = vmax.f32 %v442_v51, 0.0  ;;  %v1041_v22 = vld [vmem:[#allocation2 + $0x1188] sm:$0xff] }
 0x285   : > { %v1297_v23 = vld [vmem:[#allocation2 + $0x1988] sm:$0xff] }
 0x286   : > { %v444_v61 = vadd.f32 1e-05, %v443_v56  ;;  %v1104_v56 = vld [vmem:[#allocation2 + $0x1380] sm:$0xff]  ;;  %v1033_v26 = vld [vmem:[#allocation2 + $0x1148] sm:$0xff] }
 0x287   : > { %v1289_v27 = vld [vmem:[#allocation2 + $0x1948] sm:$0xff] }
 0x288   : > { %2844 = vrsqrt.f32 %v444_v61  ;;  %v1352_v61 = vld [vmem:[#allocation2 + $0x1b40] sm:$0xff] }
 0x295   : > { %v2845_v25 = vpop.eup %2844 }
 0x296   : > { %461 = vperm.xlu0 %2843, %v2845_v25   ;;  %v1296_v25 = vld [vmem:[#allocation2 + $0x1980] sm:$0xff] }
 0x2f9   : > { %v449_v30 = vpop.permute.xlu1 %448 }
 0x2fa   : > { %v452_v31 = vsub.f32 %v3043_v29, %v449_v30  ;;  %v454_v33 = vsub.f32 %v3053_v34, %v449_v30  ;;  %v451_v35 = vsub.f32 %v3041_v28, %v449_v30  ;;  %v453_v36 = vsub.f32 %v3049_v32, %v449_v30 }
 0x2fb   : > { %v456_v39 = vsub.f32 %v3063_v40, %v449_v30  ;;  %v458_v41 = vsub.f32 %v3073_v46, %v449_v30  ;;  %v455_v42 = vsub.f32 %v3059_v38, %v449_v30  ;;  %v457_v43 = vsub.f32 %v3069_v44, %v449_v30  ;;  %v1112_v38 = vld [vmem:[#allocation2 + $0x13c0] sm:$0xff] }
 0x2fc   : > { %v1368_v44 = vld [vmem:[#allocation2 + $0x1bc0] sm:$0xff] }
 0x2fd   : > { %v1032_v30 = vld [vmem:[#allocation2 + $0x1140] sm:$0xff] }
 0x311   : > { %v462_v37 = vpop.permute.xlu0 %461 }
 0x312   : > { %v465_v45 = vmul.f32 %v462_v37, %v452_v31  ;;  %v467_v47 = vmul.f32 %v462_v37, %v454_v33  ;;  %v464_v48 = vmul.f32 %v462_v37, %v451_v35  ;;  %v466_v49 = vmul.f32 %v462_v37, %v453_v36  ;;  %v1288_v31 = vld [vmem:[#allocation2 + $0x1940] sm:$0xff]  ;;  %v1025_v33 = vld [vmem:[#allocation2 + $0x1108] sm:$0xff] }
 0x313   : > { %v469_v29 = vmul.f32 %v462_v37, %v456_v39  ;;  %v471_v50 = vmul.f32 %v462_v37, %v458_v41  ;;  %v3089_v34 = vmul.f32 %v462_v37, %v455_v42  ;;  %v3091_v28 = vmul.f32 %v462_v37, %v457_v43  ;;  %v1281_v35 = vld [vmem:[#allocation2 + $0x1908] sm:$0xff]  ;;  %v1024_v36 = vld [vmem:[#allocation2 + $0x1100] sm:$0xff] }
 0x314   : > { %v3093_v32 = vmax.f32 %v465_v45, 0.0  ;;  %v3095_v51 = vmax.f32 %v467_v47, 0.0  ;;  %v3097_v40 = vmax.f32 %v464_v48, 0.0  ;;  %v3099_v46 = vmax.f32 %v466_v49, 0.0  ;;  %v1280_v37 = vld [vmem:[#allocation2 + $0x1900] sm:$0xff]  ;;  %v1017_v39 = vld [vmem:[#allocation2 + $0x10c8] sm:$0xff] }
 0x315   : > { %v3105_v53 = vmax.f32 %v469_v29, 0.0  ;;  %v3107_v55 = vmax.f32 %v471_v50, 0.0  ;;  %v1273_v41 = vld [vmem:[#allocation2 + $0x18c8] sm:$0xff]  ;;  %v1016_v42 = vld [vmem:[#allocation2 + $0x10c0] sm:$0xff] }
 0x316   : > { %1568 = vmatprep.mubr.f32.mxu1 %v3093_v32  ;;  %1639 = vmatprep.mubr.f32.mxu0 %v3095_v51  ;;  %v1272_v43 = vld [vmem:[#allocation2 + $0x18c0] sm:$0xff]  ;;  %v1009_v45 = vld [vmem:[#allocation2 + $0x1088] sm:$0xff] }
 0x317   : > { %1569 = vmatmul.mubr.f32.vlgmr.msra.gmra.mxu1 %v3097_v40  ;;  %1640 = vmatmul.mubr.f32.vlgmr.msra.gmra.mxu0 %v3099_v46  ;;  %v1265_v47 = vld [vmem:[#allocation2 + $0x1888] sm:$0xff]  ;;  %v1008_v48 = vld [vmem:[#allocation2 + $0x1080] sm:$0xff] }
 0x318   : > { %1647 = vmatpush1.msra.mxu1 %v1112_v38  ;;  %1718 = vmatpush1.msra.mxu0 %v1368_v44  ;;  %v1264_v49 = vld [vmem:[#allocation2 + $0x1880] sm:$0xff]  ;;  %v1001_v29 = vld [vmem:[#allocation2 + $0x1048] sm:$0xff] }
 0x319   : > { %1648 = vmatprep.subr.mxu1 %v1105_v52  ;;  %1710 = vmatprep.mubr.f32.mxu1 %v3105_v53  ;;  %v1257_v50 = vld [vmem:[#allocation2 + $0x1848] sm:$0xff]  ;;  %v1000_v38 = vld [vmem:[#allocation2 + $0x1040] sm:$0xff] }
 0x31a   : > { %1719 = vmatprep.subr.mxu0 %v1361_v54  ;;  %1781 = vmatprep.mubr.f32.mxu0 %v3107_v55  ;;  %v1256_v44 = vld [vmem:[#allocation2 + $0x1840] sm:$0xff]  ;;  %v993_v52 = vld [vmem:[#allocation2 + $0x1008] sm:$0xff] }
 0x31b   : > { %1649 = vmatpush1.msra.mxu1 %v1104_v56  ;;  %1720 = vmatpush1.msra.mxu0 %v1360_v57  ;;  %v1249_v54 = vld [vmem:[#allocation2 + $0x1808] sm:$0xff]  ;;  %v992_v56 = vld [vmem:[#allocation2 + $0x1000] sm:$0xff] }
 0x31c   : > { %1650 = vmatprep.subr.mxu1 %v1097_v58  ;;  %1721 = vmatprep.subr.mxu0 %v1353_v59  ;;  %v1248_v57 = vld [vmem:[#allocation2 + $0x1800] sm:$0xff]  ;;  %v1241_v58 = vld [vmem:[#allocation2 + $0x17c8] sm:$0xff] }
 0x31d   : > { %1651 = vmatpush1.msra.mxu1 %v1096_v60  ;;  %1722 = vmatpush1.msra.mxu0 %v1352_v61  ;;  %v1497_v59 = vld [vmem:[#allocation2 + $0x1fc8] sm:$0xff]  ;;  %v1240_v60 = vld [vmem:[#allocation2 + $0x17c0] sm:$0xff] }
 0x31e   : > { %1652 = vmatprep.subr.mxu1 %v1089_v62  ;;  %1723 = vmatprep.subr.mxu0 %v1345_v63  ;;  %v1496_v61 = vld [vmem:[#allocation2 + $0x1fc0] sm:$0xff]  ;;  %v1233_v62 = vld [vmem:[#allocation2 + $0x1788] sm:$0xff] }
 0x31f   : > { %1653 = vmatpush1.msra.mxu1 %v1088_v0  ;;  %1724 = vmatpush1.msra.mxu0 %v1344_v1  ;;  %v1489_v63 = vld [vmem:[#allocation2 + $0x1f88] sm:$0xff]  ;;  %v1232_v0 = vld [vmem:[#allocation2 + $0x1780] sm:$0xff] }
 0x320   : > { %1654 = vmatprep.subr.mxu1 %v1081_v2  ;;  %1725 = vmatprep.subr.mxu0 %v1337_v3  ;;  %v1488_v1 = vld [vmem:[#allocation2 + $0x1f80] sm:$0xff]  ;;  %v1225_v2 = vld [vmem:[#allocation2 + $0x1748] sm:$0xff] }
 0x321   : > { %1655 = vmatpush1.msra.mxu1 %v1080_v4  ;;  %1726 = vmatpush1.msra.mxu0 %v1336_v5  ;;  %v1481_v3 = vld [vmem:[#allocation2 + $0x1f48] sm:$0xff]  ;;  %v1224_v4 = vld [vmem:[#allocation2 + $0x1740] sm:$0xff] }
 0x322   : > { %1656 = vmatprep.subr.mxu1 %v1073_v6  ;;  %1727 = vmatprep.subr.mxu0 %v1329_v7  ;;  %v1480_v5 = vld [vmem:[#allocation2 + $0x1f40] sm:$0xff]  ;;  %v1217_v6 = vld [vmem:[#allocation2 + $0x1708] sm:$0xff] }
 0x323   : > { %1657 = vmatpush1.msra.mxu1 %v1072_v8  ;;  %1728 = vmatpush1.msra.mxu0 %v1328_v9  ;;  %v1473_v7 = vld [vmem:[#allocation2 + $0x1f08] sm:$0xff]  ;;  %v1216_v8 = vld [vmem:[#allocation2 + $0x1700] sm:$0xff] }
 0x324   : > { %1658 = vmatprep.subr.mxu1 %v1065_v10  ;;  %1729 = vmatprep.subr.mxu0 %v1321_v11  ;;  %v1472_v9 = vld [vmem:[#allocation2 + $0x1f00] sm:$0xff]  ;;  %v1209_v10 = vld [vmem:[#allocation2 + $0x16c8] sm:$0xff] }
 0x325   : > { %1659 = vmatpush1.msra.mxu1 %v1064_v12  ;;  %1730 = vmatpush1.msra.mxu0 %v1320_v13  ;;  %v1465_v11 = vld [vmem:[#allocation2 + $0x1ec8] sm:$0xff]  ;;  %v1208_v12 = vld [vmem:[#allocation2 + $0x16c0] sm:$0xff] }
 0x326   : > { %1660 = vmatprep.subr.mxu1 %v1057_v14  ;;  %1731 = vmatprep.subr.mxu0 %v1313_v15  ;;  %v1464_v13 = vld [vmem:[#allocation2 + $0x1ec0] sm:$0xff]  ;;  %v1201_v14 = vld [vmem:[#allocation2 + $0x1688] sm:$0xff] }
 0x327   : > { %1661 = vmatpush1.msra.mxu1 %v1056_v16  ;;  %1732 = vmatpush1.msra.mxu0 %v1312_v17  ;;  %v1457_v15 = vld [vmem:[#allocation2 + $0x1e88] sm:$0xff]  ;;  %v1200_v16 = vld [vmem:[#allocation2 + $0x1680] sm:$0xff] }
 0x328   : > { %1662 = vmatprep.subr.mxu1 %v1049_v18  ;;  %1733 = vmatprep.subr.mxu0 %v1305_v19  ;;  %v1456_v17 = vld [vmem:[#allocation2 + $0x1e80] sm:$0xff]  ;;  %v1193_v18 = vld [vmem:[#allocation2 + $0x1648] sm:$0xff] }
 0x329   : > { %1663 = vmatpush1.msra.mxu1 %v1048_v20  ;;  %1734 = vmatpush1.msra.mxu0 %v1304_v21  ;;  %v1449_v19 = vld [vmem:[#allocation2 + $0x1e48] sm:$0xff]  ;;  %v1192_v20 = vld [vmem:[#allocation2 + $0x1640] sm:$0xff] }
 0x32a   : > { %1664 = vmatprep.subr.mxu1 %v1041_v22  ;;  %1735 = vmatprep.subr.mxu0 %v1297_v23  ;;  %v1448_v21 = vld [vmem:[#allocation2 + $0x1e40] sm:$0xff]  ;;  %v1185_v22 = vld [vmem:[#allocation2 + $0x1608] sm:$0xff] }
 0x32b   : > { %1665 = vmatpush1.msra.mxu1 %v1040_v24  ;;  %1736 = vmatpush1.msra.mxu0 %v1296_v25  ;;  %v1441_v23 = vld [vmem:[#allocation2 + $0x1e08] sm:$0xff]  ;;  %v1184_v24 = vld [vmem:[#allocation2 + $0x1600] sm:$0xff] }
 0x32c   : > { %1666 = vmatprep.subr.mxu1 %v1033_v26  ;;  %1737 = vmatprep.subr.mxu0 %v1289_v27  ;;  %v1440_v25 = vld [vmem:[#allocation2 + $0x1e00] sm:$0xff]  ;;  %v1177_v26 = vld [vmem:[#allocation2 + $0x15c8] sm:$0xff] }
 0x32d   : > { %1667 = vmatpush1.msra.mxu1 %v1032_v30  ;;  %1738 = vmatpush1.msra.mxu0 %v1288_v31  ;;  %v1433_v27 = vld [vmem:[#allocation2 + $0x1dc8] sm:$0xff]  ;;  %v1176_v30 = vld [vmem:[#allocation2 + $0x15c0] sm:$0xff] }
 0x32e   : > { %1668 = vmatprep.subr.mxu1 %v1025_v33  ;;  %1739 = vmatprep.subr.mxu0 %v1281_v35  ;;  %v1432_v31 = vld [vmem:[#allocation2 + $0x1dc0] sm:$0xff]  ;;  %v1169_v33 = vld [vmem:[#allocation2 + $0x1588] sm:$0xff] }
 0x32f   : > { %1669 = vmatpush1.msra.mxu1 %v1024_v36  ;;  %1740 = vmatpush1.msra.mxu0 %v1280_v37  ;;  %v1425_v35 = vld [vmem:[#allocation2 + $0x1d88] sm:$0xff]  ;;  %v1168_v36 = vld [vmem:[#allocation2 + $0x1580] sm:$0xff] }
 0x330   : > { %1670 = vmatprep.subr.mxu1 %v1017_v39  ;;  %1741 = vmatprep.subr.mxu0 %v1273_v41  ;;  %v1424_v37 = vld [vmem:[#allocation2 + $0x1d80] sm:$0xff]  ;;  %v1161_v39 = vld [vmem:[#allocation2 + $0x1548] sm:$0xff] }
 0x331   : > { %1671 = vmatpush1.msra.mxu1 %v1016_v42  ;;  %1742 = vmatpush1.msra.mxu0 %v1272_v43  ;;  %v1417_v41 = vld [vmem:[#allocation2 + $0x1d48] sm:$0xff]  ;;  %v1160_v42 = vld [vmem:[#allocation2 + $0x1540] sm:$0xff] }
 0x332   : > { %1672 = vmatprep.subr.mxu1 %v1009_v45  ;;  %1743 = vmatprep.subr.mxu0 %v1265_v47  ;;  %v1416_v43 = vld [vmem:[#allocation2 + $0x1d40] sm:$0xff]  ;;  %v1153_v45 = vld [vmem:[#allocation2 + $0x1508] sm:$0xff] }
 0x333   : > { %1673 = vmatpush1.msra.mxu1 %v1008_v48  ;;  %1744 = vmatpush1.msra.mxu0 %v1264_v49  ;;  %v1409_v47 = vld [vmem:[#allocation2 + $0x1d08] sm:$0xff]  ;;  %v1152_v48 = vld [vmem:[#allocation2 + $0x1500] sm:$0xff] }
 0x334   : > { %1674 = vmatprep.subr.mxu1 %v1001_v29  ;;  %1745 = vmatprep.subr.mxu0 %v1257_v50  ;;  %v1408_v49 = vld [vmem:[#allocation2 + $0x1d00] sm:$0xff]  ;;  %v1145_v29 = vld [vmem:[#allocation2 + $0x14c8] sm:$0xff] }
 0x335   : > { %1675 = vmatpush1.msra.mxu1 %v1000_v38  ;;  %1746 = vmatpush1.msra.mxu0 %v1256_v44  ;;  %v1401_v50 = vld [vmem:[#allocation2 + $0x1cc8] sm:$0xff]  ;;  %v1144_v38 = vld [vmem:[#allocation2 + $0x14c0] sm:$0xff] }
 0x336   : > { %1676 = vmatprep.subr.mxu1 %v993_v52  ;;  %1747 = vmatprep.subr.mxu0 %v1249_v54  ;;  %v1400_v44 = vld [vmem:[#allocation2 + $0x1cc0] sm:$0xff]  ;;  %v1137_v52 = vld [vmem:[#allocation2 + $0x1488] sm:$0xff] }
 0x337   : > { %1677 = vmatpush1.msra.mxu1 %v992_v56  ;;  %1748 = vmatpush1.msra.mxu0 %v1248_v57  ;;  %v1393_v54 = vld [vmem:[#allocation2 + $0x1c88] sm:$0xff]  ;;  %v1136_v56 = vld [vmem:[#allocation2 + $0x1480] sm:$0xff] }
 0x338   : > { %1678 = vmatprep.subr.mxu1 %v1241_v58  ;;  %1749 = vmatprep.subr.mxu0 %v1497_v59  ;;  %v1392_v57 = vld [vmem:[#allocation2 + $0x1c80] sm:$0xff]  ;;  %v1129_v58 = vld [vmem:[#allocation2 + $0x1448] sm:$0xff] }
 0x339   : > { %1679 = vmatpush2.msra.mxu1 %v1240_v60  ;;  %1750 = vmatpush2.msra.mxu0 %v1496_v61  ;;  %v1385_v59 = vld [vmem:[#allocation2 + $0x1c48] sm:$0xff]  ;;  %v1128_v60 = vld [vmem:[#allocation2 + $0x1440] sm:$0xff] }
 0x33a   : > { %1680 = vmatprep.subr.mxu1 %v1233_v62  ;;  %1751 = vmatprep.subr.mxu0 %v1489_v63  ;;  %v1384_v61 = vld [vmem:[#allocation2 + $0x1c40] sm:$0xff]  ;;  %v1121_v62 = vld [vmem:[#allocation2 + $0x1408] sm:$0xff] }
 0x33b   : > { %1681 = vmatpush2.msra.mxu1 %v1232_v0  ;;  %1752 = vmatpush2.msra.mxu0 %v1488_v1  ;;  %v1377_v63 = vld [vmem:[#allocation2 + $0x1c08] sm:$0xff]  ;;  %v1120_v0 = vld [vmem:[#allocation2 + $0x1400] sm:$0xff] }
 0x33c   : > { %1682 = vmatprep.subr.mxu1 %v1225_v2  ;;  %1753 = vmatprep.subr.mxu0 %v1481_v3  ;;  %v1376_v1 = vld [vmem:[#allocation2 + $0x1c00] sm:$0xff]  ;;  %v3112_v2 = vmax.f32 %v3089_v34, 0.0  ;;  %v3115_v3 = vmax.f32 %v3091_v28, 0.0  ;;  %v594_v34 = vld [vmem:[#allocation2 + $0x390] sm:$0xff] }
 0x33d   : > { %1683 = vmatpush2.msra.mxu1 %v1224_v4  ;;  %1754 = vmatpush2.msra.mxu0 %v1480_v5  ;;  %v603_v4 = vld [vmem:[#allocation2 + $0x3d8] sm:$0xff]  ;;  %v850_v28 = vld [vmem:[#allocation2 + $0xb90] sm:$0xff] }
 0x33e   : > { %1684 = vmatprep.subr.mxu1 %v1217_v6  ;;  %1755 = vmatprep.subr.mxu0 %v1473_v7  ;;  %v859_v5 = vld [vmem:[#allocation2 + $0xbd8] sm:$0xff]  ;;  %v602_v6 = vld [vmem:[#allocation2 + $0x3d0] sm:$0xff] }
 0x33f   : > { %1685 = vmatpush2.msra.mxu1 %v1216_v8  ;;  %1756 = vmatpush2.msra.mxu0 %v1472_v9  ;;  %v858_v7 = vld [vmem:[#allocation2 + $0xbd0] sm:$0xff]  ;;  %v595_v8 = vld [vmem:[#allocation2 + $0x398] sm:$0xff] }
 0x340   : > { %1686 = vmatprep.subr.mxu1 %v1209_v10  ;;  %1757 = vmatprep.subr.mxu0 %v1465_v11  ;;  %v851_v9 = vld [vmem:[#allocation2 + $0xb98] sm:$0xff] }
 0x341   : > { %1687 = vmatpush2.msra.mxu1 %v1208_v12  ;;  %1758 = vmatpush2.msra.mxu0 %v1464_v13  ;;  %v587_v10 = vld [vmem:[#allocation2 + $0x358] sm:$0xff]  ;;  %v586_v12 = vld [vmem:[#allocation2 + $0x350] sm:$0xff] }
 0x342   : > { %1688 = vmatprep.subr.mxu1 %v1201_v14  ;;  %1759 = vmatprep.subr.mxu0 %v1457_v15  ;;  %v843_v11 = vld [vmem:[#allocation2 + $0xb58] sm:$0xff]  ;;  %v842_v13 = vld [vmem:[#allocation2 + $0xb50] sm:$0xff] }
 0x343   : > { %1689 = vmatpush2.msra.mxu1 %v1200_v16  ;;  %1760 = vmatpush2.msra.mxu0 %v1456_v17  ;;  %v579_v14 = vld [vmem:[#allocation2 + $0x318] sm:$0xff]  ;;  %v578_v16 = vld [vmem:[#allocation2 + $0x310] sm:$0xff] }
 0x344   : > { %1690 = vmatprep.subr.mxu1 %v1193_v18  ;;  %1761 = vmatprep.subr.mxu0 %v1449_v19  ;;  %v835_v15 = vld [vmem:[#allocation2 + $0xb18] sm:$0xff]  ;;  %v834_v17 = vld [vmem:[#allocation2 + $0xb10] sm:$0xff] }
 0x345   : > { %1691 = vmatpush2.msra.mxu1 %v1192_v20  ;;  %1762 = vmatpush2.msra.mxu0 %v1448_v21  ;;  %v571_v18 = vld [vmem:[#allocation2 + $0x2d8] sm:$0xff]  ;;  %v570_v20 = vld [vmem:[#allocation2 + $0x2d0] sm:$0xff] }
 0x346   : > { %1692 = vmatprep.subr.mxu1 %v1185_v22  ;;  %1763 = vmatprep.subr.mxu0 %v1441_v23  ;;  %v827_v19 = vld [vmem:[#allocation2 + $0xad8] sm:$0xff]  ;;  %v826_v21 = vld [vmem:[#allocation2 + $0xad0] sm:$0xff] }
 0x347   : > { %1693 = vmatpush2.msra.mxu1 %v1184_v24  ;;  %1764 = vmatpush2.msra.mxu0 %v1440_v25  ;;  %v563_v22 = vld [vmem:[#allocation2 + $0x298] sm:$0xff]  ;;  %v562_v24 = vld [vmem:[#allocation2 + $0x290] sm:$0xff] }
 0x348   : > { %1694 = vmatprep.subr.mxu1 %v1177_v26  ;;  %1765 = vmatprep.subr.mxu0 %v1433_v27  ;;  %v819_v23 = vld [vmem:[#allocation2 + $0xa98] sm:$0xff]  ;;  %v818_v25 = vld [vmem:[#allocation2 + $0xa90] sm:$0xff] }
 0x349   : > { %1695 = vmatpush2.msra.mxu1 %v1176_v30  ;;  %1766 = vmatpush2.msra.mxu0 %v1432_v31  ;;  %v555_v26 = vld [vmem:[#allocation2 + $0x258] sm:$0xff]  ;;  %v554_v30 = vld [vmem:[#allocation2 + $0x250] sm:$0xff] }
 0x34a   : > { %1696 = vmatprep.subr.mxu1 %v1169_v33  ;;  %1767 = vmatprep.subr.mxu0 %v1425_v35  ;;  %v811_v27 = vld [vmem:[#allocation2 + $0xa58] sm:$0xff]  ;;  %v810_v31 = vld [vmem:[#allocation2 + $0xa50] sm:$0xff] }
 0x34b   : > { %1697 = vmatpush2.msra.mxu1 %v1168_v36  ;;  %1768 = vmatpush2.msra.mxu0 %v1424_v37  ;;  %v547_v33 = vld [vmem:[#allocation2 + $0x218] sm:$0xff]  ;;  %v546_v36 = vld [vmem:[#allocation2 + $0x210] sm:$0xff] }
 0x34c   : > { %1698 = vmatprep.subr.mxu1 %v1161_v39  ;;  %1769 = vmatprep.subr.mxu0 %v1417_v41  ;;  %v803_v35 = vld [vmem:[#allocation2 + $0xa18] sm:$0xff]  ;;  %v802_v37 = vld [vmem:[#allocation2 + $0xa10] sm:$0xff] }
 0x34d   : > { %1699 = vmatpush2.msra.mxu1 %v1160_v42  ;;  %1770 = vmatpush2.msra.mxu0 %v1416_v43  ;;  %v539_v39 = vld [vmem:[#allocation2 + $0x1d8] sm:$0xff]  ;;  %v538_v42 = vld [vmem:[#allocation2 + $0x1d0] sm:$0xff] }
 0x34e   : > { %1700 = vmatprep.subr.mxu1 %v1153_v45  ;;  %1771 = vmatprep.subr.mxu0 %v1409_v47  ;;  %v795_v41 = vld [vmem:[#allocation2 + $0x9d8] sm:$0xff]  ;;  %v794_v43 = vld [vmem:[#allocation2 + $0x9d0] sm:$0xff] }
 0x34f   : > { %1701 = vmatpush2.msra.mxu1 %v1152_v48  ;;  %1772 = vmatpush2.msra.mxu0 %v1408_v49  ;;  %v531_v45 = vld [vmem:[#allocation2 + $0x198] sm:$0xff]  ;;  %v530_v48 = vld [vmem:[#allocation2 + $0x190] sm:$0xff] }
 0x350   : > { %1702 = vmatprep.subr.mxu1 %v1145_v29  ;;  %1773 = vmatprep.subr.mxu0 %v1401_v50  ;;  %v787_v47 = vld [vmem:[#allocation2 + $0x998] sm:$0xff]  ;;  %v786_v49 = vld [vmem:[#allocation2 + $0x990] sm:$0xff] }
 0x351   : > { %1703 = vmatpush2.msra.mxu1 %v1144_v38  ;;  %1774 = vmatpush2.msra.mxu0 %v1400_v44  ;;  %v523_v29 = vld [vmem:[#allocation2 + $0x158] sm:$0xff]  ;;  %v522_v38 = vld [vmem:[#allocation2 + $0x150] sm:$0xff] }
 0x352   : > { %1704 = vmatprep.subr.mxu1 %v1137_v52  ;;  %1775 = vmatprep.subr.mxu0 %v1393_v54  ;;  %v779_v50 = vld [vmem:[#allocation2 + $0x958] sm:$0xff]  ;;  %v778_v44 = vld [vmem:[#allocation2 + $0x950] sm:$0xff] }
 0x353   : > { %1705 = vmatpush2.msra.mxu1 %v1136_v56  ;;  %1776 = vmatpush2.msra.mxu0 %v1392_v57  ;;  %v515_v52 = vld [vmem:[#allocation2 + $0x118] sm:$0xff]  ;;  %v514_v56 = vld [vmem:[#allocation2 + $0x110] sm:$0xff] }
 0x354   : > { %1706 = vmatprep.subr.mxu1 %v1129_v58  ;;  %1777 = vmatprep.subr.mxu0 %v1385_v59  ;;  %v771_v54 = vld [vmem:[#allocation2 + $0x918] sm:$0xff]  ;;  %v770_v57 = vld [vmem:[#allocation2 + $0x910] sm:$0xff] }
 0x355   : > { %1707 = vmatpush2.msra.mxu1 %v1128_v60  ;;  %1778 = vmatpush2.msra.mxu0 %v1384_v61  ;;  %v507_v58 = vld [vmem:[#allocation2 + $0xd8] sm:$0xff]  ;;  %v506_v60 = vld [vmem:[#allocation2 + $0xd0] sm:$0xff] }
 0x356   : > { %1708 = vmatprep.subr.mxu1 %v1121_v62  ;;  %1779 = vmatprep.subr.mxu0 %v1377_v63  ;;  %v763_v59 = vld [vmem:[#allocation2 + $0x8d8] sm:$0xff]  ;;  %v762_v61 = vld [vmem:[#allocation2 + $0x8d0] sm:$0xff] }
 0x357   : > { %1709 = vmatpush2.msra.mxu1 %v1120_v0  ;;  %1780 = vmatpush2.msra.mxu0 %v1376_v1  ;;  %v499_v62 = vld [vmem:[#allocation2 + $0x98] sm:$0xff]  ;;  %v498_v0 = vld [vmem:[#allocation2 + $0x90] sm:$0xff] }
 0x358   : > { %1711 = vmatmul.mubr.f32.vlgmr.msra.gmra.mxu1 %v3112_v2  ;;  %1782 = vmatmul.mubr.f32.vlgmr.msra.gmra.mxu0 %v3115_v3  ;;  %v755_v63 = vld [vmem:[#allocation2 + $0x898] sm:$0xff]  ;;  %v754_v1 = vld [vmem:[#allocation2 + $0x890] sm:$0xff] }
 0x359   : > { %1788 = vmatprep.subr.mxu1 %v603_v4  ;;  %1859 = vmatprep.subr.mxu0 %v859_v5  ;;  %v491_v4 = vld [vmem:[#allocation2 + $0x58] sm:$0xff] }
 0x35a   : > { %1789 = vmatpush1.msra.mxu1 %v602_v6  ;;  %1852 = vmatprep.mubr.f32.mxu1 %v3093_v32  ;;  %v747_v5 = vld [vmem:[#allocation2 + $0x858] sm:$0xff]  ;;  %v490_v6 = vld [vmem:[#allocation2 + $0x50] sm:$0xff] }
 0x35b   : > { %1860 = vmatpush1.msra.mxu0 %v858_v7  ;;  %1923 = vmatprep.mubr.f32.mxu0 %v3095_v51  ;;  %v746_v7 = vld [vmem:[#allocation2 + $0x850] sm:$0xff] }
 0x35c   : > { %1790 = vmatprep.subr.mxu1 %v595_v8  ;;  %1861 = vmatprep.subr.mxu0 %v851_v9  ;;  %v483_v8 = vld [vmem:[#allocation2 + $0x18] sm:$0xff] }
 0x35d   : > { %1791 = vmatpush1.msra.mxu1 %v594_v34  ;;  %1862 = vmatpush1.msra.mxu0 %v850_v28  ;;  %v739_v9 = vld [vmem:[#allocation2 + $0x818] sm:$0xff]  ;;  %v482_v34 = vld [vmem:[#allocation2 + $0x10] sm:$0xff] }
 0x35e   : > { %1792 = vmatprep.subr.mxu1 %v587_v10  ;;  %1863 = vmatprep.subr.mxu0 %v843_v11  ;;  %v738_v28 = vld [vmem:[#allocation2 + $0x810] sm:$0xff]  ;;  %v731_v10 = vld [vmem:[#allocation2 + $0x7d8] sm:$0xff] }
 0x35f   : > { %1793 = vmatpush1.msra.mxu1 %v586_v12  ;;  %1864 = vmatpush1.msra.mxu0 %v842_v13  ;;  %v987_v11 = vld [vmem:[#allocation2 + $0xfd8] sm:$0xff]  ;;  %v730_v12 = vld [vmem:[#allocation2 + $0x7d0] sm:$0xff] }
 0x360   : > { %1794 = vmatprep.subr.mxu1 %v579_v14  ;;  %1865 = vmatprep.subr.mxu0 %v835_v15  ;;  %v986_v13 = vld [vmem:[#allocation2 + $0xfd0] sm:$0xff]  ;;  %v723_v14 = vld [vmem:[#allocation2 + $0x798] sm:$0xff] }
 0x361   : > { %1795 = vmatpush1.msra.mxu1 %v578_v16  ;;  %1866 = vmatpush1.msra.mxu0 %v834_v17  ;;  %v979_v15 = vld [vmem:[#allocation2 + $0xf98] sm:$0xff]  ;;  %v722_v16 = vld [vmem:[#allocation2 + $0x790] sm:$0xff] }
 0x362   : > { %1796 = vmatprep.subr.mxu1 %v571_v18  ;;  %1867 = vmatprep.subr.mxu0 %v827_v19  ;;  %v978_v17 = vld [vmem:[#allocation2 + $0xf90] sm:$0xff]  ;;  %v715_v18 = vld [vmem:[#allocation2 + $0x758] sm:$0xff] }
 0x363   : > { %1797 = vmatpush1.msra.mxu1 %v570_v20  ;;  %1868 = vmatpush1.msra.mxu0 %v826_v21  ;;  %v971_v19 = vld [vmem:[#allocation2 + $0xf58] sm:$0xff]  ;;  %v714_v20 = vld [vmem:[#allocation2 + $0x750] sm:$0xff] }
 0x364   : > { %1798 = vmatprep.subr.mxu1 %v563_v22  ;;  %1869 = vmatprep.subr.mxu0 %v819_v23  ;;  %v970_v21 = vld [vmem:[#allocation2 + $0xf50] sm:$0xff]  ;;  %v707_v22 = vld [vmem:[#allocation2 + $0x718] sm:$0xff] }
 0x365   : > { %1799 = vmatpush1.msra.mxu1 %v562_v24  ;;  %1870 = vmatpush1.msra.mxu0 %v818_v25  ;;  %v963_v23 = vld [vmem:[#allocation2 + $0xf18] sm:$0xff]  ;;  %v706_v24 = vld [vmem:[#allocation2 + $0x710] sm:$0xff] }
 0x366   : > { %1800 = vmatprep.subr.mxu1 %v555_v26  ;;  %1871 = vmatprep.subr.mxu0 %v811_v27  ;;  %v962_v25 = vld [vmem:[#allocation2 + $0xf10] sm:$0xff]  ;;  %v699_v26 = vld [vmem:[#allocation2 + $0x6d8] sm:$0xff] }
 0x367   : > { %1801 = vmatpush1.msra.mxu1 %v554_v30  ;;  %1872 = vmatpush1.msra.mxu0 %v810_v31  ;;  %v955_v27 = vld [vmem:[#allocation2 + $0xed8] sm:$0xff]  ;;  %v698_v30 = vld [vmem:[#allocation2 + $0x6d0] sm:$0xff] }
 0x368   : > { %1802 = vmatprep.subr.mxu1 %v547_v33  ;;  %1873 = vmatprep.subr.mxu0 %v803_v35  ;;  %v954_v31 = vld [vmem:[#allocation2 + $0xed0] sm:$0xff]  ;;  %v691_v33 = vld [vmem:[#allocation2 + $0x698] sm:$0xff] }
 0x369   : > { %1803 = vmatpush1.msra.mxu1 %v546_v36  ;;  %1874 = vmatpush1.msra.mxu0 %v802_v37  ;;  %v947_v35 = vld [vmem:[#allocation2 + $0xe98] sm:$0xff]  ;;  %v690_v36 = vld [vmem:[#allocation2 + $0x690] sm:$0xff] }
 0x36a   : > { %1804 = vmatprep.subr.mxu1 %v539_v39  ;;  %1875 = vmatprep.subr.mxu0 %v795_v41  ;;  %v946_v37 = vld [vmem:[#allocation2 + $0xe90] sm:$0xff]  ;;  %v683_v39 = vld [vmem:[#allocation2 + $0x658] sm:$0xff] }
 0x36b   : > { %1805 = vmatpush1.msra.mxu1 %v538_v42  ;;  %1876 = vmatpush1.msra.mxu0 %v794_v43  ;;  %v939_v41 = vld [vmem:[#allocation2 + $0xe58] sm:$0xff]  ;;  %v682_v42 = vld [vmem:[#allocation2 + $0x650] sm:$0xff] }
 0x36c   : > { %1806 = vmatprep.subr.mxu1 %v531_v45  ;;  %1877 = vmatprep.subr.mxu0 %v787_v47  ;;  %v938_v43 = vld [vmem:[#allocation2 + $0xe50] sm:$0xff]  ;;  %v675_v45 = vld [vmem:[#allocation2 + $0x618] sm:$0xff] }
 0x36d   : > { %1807 = vmatpush1.msra.mxu1 %v530_v48  ;;  %1878 = vmatpush1.msra.mxu0 %v786_v49  ;;  %v931_v47 = vld [vmem:[#allocation2 + $0xe18] sm:$0xff]  ;;  %v674_v48 = vld [vmem:[#allocation2 + $0x610] sm:$0xff] }
 0x36e   : > { %1808 = vmatprep.subr.mxu1 %v523_v29  ;;  %1879 = vmatprep.subr.mxu0 %v779_v50  ;;  %v930_v49 = vld [vmem:[#allocation2 + $0xe10] sm:$0xff]  ;;  %v667_v29 = vld [vmem:[#allocation2 + $0x5d8] sm:$0xff] }
 0x36f   : > { %1809 = vmatpush1.msra.mxu1 %v522_v38  ;;  %1880 = vmatpush1.msra.mxu0 %v778_v44  ;;  %v923_v50 = vld [vmem:[#allocation2 + $0xdd8] sm:$0xff]  ;;  %v666_v38 = vld [vmem:[#allocation2 + $0x5d0] sm:$0xff] }
 0x370   : > { %1810 = vmatprep.subr.mxu1 %v515_v52  ;;  %1881 = vmatprep.subr.mxu0 %v771_v54  ;;  %v922_v44 = vld [vmem:[#allocation2 + $0xdd0] sm:$0xff]  ;;  %v659_v52 = vld [vmem:[#allocation2 + $0x598] sm:$0xff] }
 0x371   : > { %1811 = vmatpush1.msra.mxu1 %v514_v56  ;;  %1882 = vmatpush1.msra.mxu0 %v770_v57  ;;  %v915_v54 = vld [vmem:[#allocation2 + $0xd98] sm:$0xff]  ;;  %v658_v56 = vld [vmem:[#allocation2 + $0x590] sm:$0xff] }
 0x372   : > { %1812 = vmatprep.subr.mxu1 %v507_v58  ;;  %1883 = vmatprep.subr.mxu0 %v763_v59  ;;  %v914_v57 = vld [vmem:[#allocation2 + $0xd90] sm:$0xff]  ;;  %v651_v58 = vld [vmem:[#allocation2 + $0x558] sm:$0xff] }
 0x373   : > { %1813 = vmatpush1.msra.mxu1 %v506_v60  ;;  %1884 = vmatpush1.msra.mxu0 %v762_v61  ;;  %v907_v59 = vld [vmem:[#allocation2 + $0xd58] sm:$0xff]  ;;  %v650_v60 = vld [vmem:[#allocation2 + $0x550] sm:$0xff] }
 0x374   : > { %1814 = vmatprep.subr.mxu1 %v499_v62  ;;  %1885 = vmatprep.subr.mxu0 %v755_v63  ;;  %v906_v61 = vld [vmem:[#allocation2 + $0xd50] sm:$0xff]  ;;  %v643_v62 = vld [vmem:[#allocation2 + $0x518] sm:$0xff] }
 0x375   : > { %1815 = vmatpush1.msra.mxu1 %v498_v0  ;;  %1886 = vmatpush1.msra.mxu0 %v754_v1  ;;  %v899_v63 = vld [vmem:[#allocation2 + $0xd18] sm:$0xff]  ;;  %v642_v0 = vld [vmem:[#allocation2 + $0x510] sm:$0xff] }
 0x376   : > { %1816 = vmatprep.subr.mxu1 %v491_v4  ;;  %1887 = vmatprep.subr.mxu0 %v747_v5  ;;  %v898_v1 = vld [vmem:[#allocation2 + $0xd10] sm:$0xff]  ;;  %v635_v4 = vld [vmem:[#allocation2 + $0x4d8] sm:$0xff] }
 0x377   : > { %1817 = vmatpush1.msra.mxu1 %v490_v6  ;;  %1888 = vmatpush1.msra.mxu0 %v746_v7  ;;  %v891_v5 = vld [vmem:[#allocation2 + $0xcd8] sm:$0xff]  ;;  %v634_v6 = vld [vmem:[#allocation2 + $0x4d0] sm:$0xff] }
 0x378   : > { %1818 = vmatprep.subr.mxu1 %v483_v8  ;;  %1889 = vmatprep.subr.mxu0 %v739_v9  ;;  %v890_v7 = vld [vmem:[#allocation2 + $0xcd0] sm:$0xff]  ;;  %v627_v8 = vld [vmem:[#allocation2 + $0x498] sm:$0xff] }
 0x379   : > { %1819 = vmatpush1.msra.mxu1 %v482_v34  ;;  %1890 = vmatpush1.msra.mxu0 %v738_v28  ;;  %v883_v9 = vld [vmem:[#allocation2 + $0xc98] sm:$0xff]  ;;  %v626_v34 = vld [vmem:[#allocation2 + $0x490] sm:$0xff] }
 0x37a   : > { %1820 = vmatprep.subr.mxu1 %v731_v10  ;;  %1891 = vmatprep.subr.mxu0 %v987_v11  ;;  %v882_v28 = vld [vmem:[#allocation2 + $0xc90] sm:$0xff]  ;;  %v619_v10 = vld [vmem:[#allocation2 + $0x458] sm:$0xff] }
 0x37b   : > { %1821 = vmatpush2.msra.mxu1 %v730_v12  ;;  %1892 = vmatpush2.msra.mxu0 %v986_v13  ;;  %v875_v11 = vld [vmem:[#allocation2 + $0xc58] sm:$0xff]  ;;  %v618_v12 = vld [vmem:[#allocation2 + $0x450] sm:$0xff] }
 0x37c   : > { %1822 = vmatprep.subr.mxu1 %v723_v14  ;;  %1893 = vmatprep.subr.mxu0 %v979_v15  ;;  %v874_v13 = vld [vmem:[#allocation2 + $0xc50] sm:$0xff]  ;;  %v611_v14 = vld [vmem:[#allocation2 + $0x418] sm:$0xff] }
 0x37d   : > { %1823 = vmatpush2.msra.mxu1 %v722_v16  ;;  %1894 = vmatpush2.msra.mxu0 %v978_v17  ;;  %v867_v15 = vld [vmem:[#allocation2 + $0xc18] sm:$0xff]  ;;  %v610_v16 = vld [vmem:[#allocation2 + $0x410] sm:$0xff] }
 0x37e   : > { %1824 = vmatprep.subr.mxu1 %v715_v18  ;;  %1895 = vmatprep.subr.mxu0 %v971_v19  ;;  %v866_v17 = vld [vmem:[#allocation2 + $0xc10] sm:$0xff]  ;;  %v1115_v18 = vld [vmem:[#allocation2 + $0x13d8] sm:$0xff] }
 0x37f   : > { %1825 = vmatpush2.msra.mxu1 %v714_v20  ;;  %1896 = vmatpush2.msra.mxu0 %v970_v21  ;;  %v1371_v19 = vld [vmem:[#allocation2 + $0x1bd8] sm:$0xff]  ;;  %v1114_v20 = vld [vmem:[#allocation2 + $0x13d0] sm:$0xff] }
 0x380   : > { %1826 = vmatprep.subr.mxu1 %v707_v22  ;;  %1897 = vmatprep.subr.mxu0 %v963_v23  ;;  %v1370_v21 = vld [vmem:[#allocation2 + $0x1bd0] sm:$0xff]  ;;  %v1107_v22 = vld [vmem:[#allocation2 + $0x1398] sm:$0xff] }
 0x381   : > { %1827 = vmatpush2.msra.mxu1 %v706_v24  ;;  %1898 = vmatpush2.msra.mxu0 %v962_v25  ;;  %v1363_v23 = vld [vmem:[#allocation2 + $0x1b98] sm:$0xff]  ;;  %v1106_v24 = vld [vmem:[#allocation2 + $0x1390] sm:$0xff] }
 0x382   : > { %1828 = vmatprep.subr.mxu1 %v699_v26  ;;  %1899 = vmatprep.subr.mxu0 %v955_v27  ;;  %v1362_v25 = vld [vmem:[#allocation2 + $0x1b90] sm:$0xff]  ;;  %v1099_v26 = vld [vmem:[#allocation2 + $0x1358] sm:$0xff] }
 0x383   : > { %1829 = vmatpush2.msra.mxu1 %v698_v30  ;;  %1900 = vmatpush2.msra.mxu0 %v954_v31  ;;  %v1355_v27 = vld [vmem:[#allocation2 + $0x1b58] sm:$0xff]  ;;  %v1098_v30 = vld [vmem:[#allocation2 + $0x1350] sm:$0xff] }
 0x384   : > { %1830 = vmatprep.subr.mxu1 %v691_v33  ;;  %1901 = vmatprep.subr.mxu0 %v947_v35  ;;  %v1354_v31 = vld [vmem:[#allocation2 + $0x1b50] sm:$0xff]  ;;  %v1091_v33 = vld [vmem:[#allocation2 + $0x1318] sm:$0xff] }
 0x385   : > { %1831 = vmatpush2.msra.mxu1 %v690_v36  ;;  %1902 = vmatpush2.msra.mxu0 %v946_v37  ;;  %v1347_v35 = vld [vmem:[#allocation2 + $0x1b18] sm:$0xff]  ;;  %v1090_v36 = vld [vmem:[#allocation2 + $0x1310] sm:$0xff] }
 0x386   : > { %1832 = vmatprep.subr.mxu1 %v683_v39  ;;  %1903 = vmatprep.subr.mxu0 %v939_v41  ;;  %v1346_v37 = vld [vmem:[#allocation2 + $0x1b10] sm:$0xff]  ;;  %v1083_v39 = vld [vmem:[#allocation2 + $0x12d8] sm:$0xff] }
 0x387   : > { %1833 = vmatpush2.msra.mxu1 %v682_v42  ;;  %1904 = vmatpush2.msra.mxu0 %v938_v43  ;;  %v1339_v41 = vld [vmem:[#allocation2 + $0x1ad8] sm:$0xff]  ;;  %v1082_v42 = vld [vmem:[#allocation2 + $0x12d0] sm:$0xff] }
 0x388   : > { %1834 = vmatprep.subr.mxu1 %v675_v45  ;;  %1905 = vmatprep.subr.mxu0 %v931_v47  ;;  %v1338_v43 = vld [vmem:[#allocation2 + $0x1ad0] sm:$0xff]  ;;  %v1075_v45 = vld [vmem:[#allocation2 + $0x1298] sm:$0xff] }
 0x389   : > { %1835 = vmatpush2.msra.mxu1 %v674_v48  ;;  %1906 = vmatpush2.msra.mxu0 %v930_v49  ;;  %v1331_v47 = vld [vmem:[#allocation2 + $0x1a98] sm:$0xff]  ;;  %v1074_v48 = vld [vmem:[#allocation2 + $0x1290] sm:$0xff] }
 0x38a   : > { %1836 = vmatprep.subr.mxu1 %v667_v29  ;;  %1907 = vmatprep.subr.mxu0 %v923_v50  ;;  %v1330_v49 = vld [vmem:[#allocation2 + $0x1a90] sm:$0xff]  ;;  %v1067_v29 = vld [vmem:[#allocation2 + $0x1258] sm:$0xff] }
 0x38b   : > { %1837 = vmatpush2.msra.mxu1 %v666_v38  ;;  %1908 = vmatpush2.msra.mxu0 %v922_v44  ;;  %v1323_v50 = vld [vmem:[#allocation2 + $0x1a58] sm:$0xff]  ;;  %v1066_v38 = vld [vmem:[#allocation2 + $0x1250] sm:$0xff] }
 0x38c   : > { %1838 = vmatprep.subr.mxu1 %v659_v52  ;;  %1909 = vmatprep.subr.mxu0 %v915_v54  ;;  %v1322_v44 = vld [vmem:[#allocation2 + $0x1a50] sm:$0xff]  ;;  %v1059_v52 = vld [vmem:[#allocation2 + $0x1218] sm:$0xff] }
 0x38d   : > { %1839 = vmatpush2.msra.mxu1 %v658_v56  ;;  %1910 = vmatpush2.msra.mxu0 %v914_v57  ;;  %v1315_v54 = vld [vmem:[#allocation2 + $0x1a18] sm:$0xff]  ;;  %v1058_v56 = vld [vmem:[#allocation2 + $0x1210] sm:$0xff] }
 0x38e   : > { %1840 = vmatprep.subr.mxu1 %v651_v58  ;;  %1911 = vmatprep.subr.mxu0 %v907_v59  ;;  %v1314_v57 = vld [vmem:[#allocation2 + $0x1a10] sm:$0xff]  ;;  %v1051_v58 = vld [vmem:[#allocation2 + $0x11d8] sm:$0xff] }
 0x38f   : > { %1841 = vmatpush2.msra.mxu1 %v650_v60  ;;  %1912 = vmatpush2.msra.mxu0 %v906_v61  ;;  %v1307_v59 = vld [vmem:[#allocation2 + $0x19d8] sm:$0xff]  ;;  %v1050_v60 = vld [vmem:[#allocation2 + $0x11d0] sm:$0xff] }
 0x390   : > { %1842 = vmatprep.subr.mxu1 %v643_v62  ;;  %1913 = vmatprep.subr.mxu0 %v899_v63  ;;  %v1306_v61 = vld [vmem:[#allocation2 + $0x19d0] sm:$0xff]  ;;  %v1043_v62 = vld [vmem:[#allocation2 + $0x1198] sm:$0xff] }
 0x391   : > { %1843 = vmatpush2.msra.mxu1 %v642_v0  ;;  %1914 = vmatpush2.msra.mxu0 %v898_v1  ;;  %v1299_v63 = vld [vmem:[#allocation2 + $0x1998] sm:$0xff]  ;;  %v1042_v0 = vld [vmem:[#allocation2 + $0x1190] sm:$0xff] }
 0x392   : > { %1844 = vmatprep.subr.mxu1 %v635_v4  ;;  %1915 = vmatprep.subr.mxu0 %v891_v5  ;;  %v1298_v1 = vld [vmem:[#allocation2 + $0x1990] sm:$0xff]  ;;  %v1035_v4 = vld [vmem:[#allocation2 + $0x1158] sm:$0xff] }
 0x393   : > { %1845 = vmatpush2.msra.mxu1 %v634_v6  ;;  %1916 = vmatpush2.msra.mxu0 %v890_v7  ;;  %v1291_v5 = vld [vmem:[#allocation2 + $0x1958] sm:$0xff]  ;;  %v1034_v6 = vld [vmem:[#allocation2 + $0x1150] sm:$0xff] }
 0x394   : > { %1846 = vmatprep.subr.mxu1 %v627_v8  ;;  %1917 = vmatprep.subr.mxu0 %v883_v9  ;;  %v1290_v7 = vld [vmem:[#allocation2 + $0x1950] sm:$0xff]  ;;  %v1027_v8 = vld [vmem:[#allocation2 + $0x1118] sm:$0xff] }
 0x395   : > { %1847 = vmatpush2.msra.mxu1 %v626_v34  ;;  %1918 = vmatpush2.msra.mxu0 %v882_v28  ;;  %v1283_v9 = vld [vmem:[#allocation2 + $0x1918] sm:$0xff]  ;;  %v1026_v34 = vld [vmem:[#allocation2 + $0x1110] sm:$0xff] }
 0x396   : > { %1848 = vmatprep.subr.mxu1 %v619_v10  ;;  %1919 = vmatprep.subr.mxu0 %v875_v11  ;;  %v1282_v28 = vld [vmem:[#allocation2 + $0x1910] sm:$0xff]  ;;  %v1019_v10 = vld [vmem:[#allocation2 + $0x10d8] sm:$0xff] }
 0x397   : > { %1849 = vmatpush2.msra.mxu1 %v618_v12  ;;  %1920 = vmatpush2.msra.mxu0 %v874_v13  ;;  %v1275_v11 = vld [vmem:[#allocation2 + $0x18d8] sm:$0xff]  ;;  %v1018_v12 = vld [vmem:[#allocation2 + $0x10d0] sm:$0xff] }
 0x398   : > { %1850 = vmatprep.subr.mxu1 %v611_v14  ;;  %1921 = vmatprep.subr.mxu0 %v867_v15  ;;  %v1274_v13 = vld [vmem:[#allocation2 + $0x18d0] sm:$0xff]  ;;  %v1011_v14 = vld [vmem:[#allocation2 + $0x1098] sm:$0xff] }
 0x399   : > { %1851 = vmatpush2.msra.mxu1 %v610_v16  ;;  %1922 = vmatpush2.msra.mxu0 %v866_v17  ;;  %v1267_v15 = vld [vmem:[#allocation2 + $0x1898] sm:$0xff]  ;;  %v1010_v16 = vld [vmem:[#allocation2 + $0x1090] sm:$0xff] }
 0x39a   : > { %1853 = vmatmul.mubr.f32.vlgmr.msra.gmra.mxu1 %v3097_v40  ;;  %1924 = vmatmul.mubr.f32.vlgmr.msra.gmra.mxu0 %v3099_v46  ;;  %v1266_v17 = vld [vmem:[#allocation2 + $0x1890] sm:$0xff] }
 0x39b   : > { %1930 = vmatprep.subr.mxu1 %v1115_v18  ;;  %2001 = vmatprep.subr.mxu0 %v1371_v19  ;;  %v1003_v18 = vld [vmem:[#allocation2 + $0x1058] sm:$0xff] }
 0x39c   : > { %1931 = vmatpush1.msra.mxu1 %v1114_v20  ;;  %1994 = vmatprep.mubr.f32.mxu1 %v3105_v53  ;;  %v1259_v19 = vld [vmem:[#allocation2 + $0x1858] sm:$0xff]  ;;  %v1002_v20 = vld [vmem:[#allocation2 + $0x1050] sm:$0xff] }
 0x39d   : > { %2002 = vmatpush1.msra.mxu0 %v1370_v21  ;;  %2065 = vmatprep.mubr.f32.mxu0 %v3107_v55  ;;  %v1258_v21 = vld [vmem:[#allocation2 + $0x1850] sm:$0xff] }
 0x39e   : > { %1932 = vmatprep.subr.mxu1 %v1107_v22  ;;  %2003 = vmatprep.subr.mxu0 %v1363_v23  ;;  %v995_v22 = vld [vmem:[#allocation2 + $0x1018] sm:$0xff] }
 0x39f   : > { %1933 = vmatpush1.msra.mxu1 %v1106_v24  ;;  %2004 = vmatpush1.msra.mxu0 %v1362_v25  ;;  %v1251_v23 = vld [vmem:[#allocation2 + $0x1818] sm:$0xff]  ;;  %v994_v24 = vld [vmem:[#allocation2 + $0x1010] sm:$0xff] }
 0x3a0   : > { %1934 = vmatprep.subr.mxu1 %v1099_v26  ;;  %2005 = vmatprep.subr.mxu0 %v1355_v27  ;;  %v1250_v25 = vld [vmem:[#allocation2 + $0x1810] sm:$0xff]  ;;  %v1243_v26 = vld [vmem:[#allocation2 + $0x17d8] sm:$0xff] }
 0x3a1   : > { %1935 = vmatpush1.msra.mxu1 %v1098_v30  ;;  %2006 = vmatpush1.msra.mxu0 %v1354_v31  ;;  %v1499_v27 = vld [vmem:[#allocation2 + $0x1fd8] sm:$0xff]  ;;  %v1242_v30 = vld [vmem:[#allocation2 + $0x17d0] sm:$0xff] }
 0x3a2   : > { %1936 = vmatprep.subr.mxu1 %v1091_v33  ;;  %2007 = vmatprep.subr.mxu0 %v1347_v35  ;;  %v1498_v31 = vld [vmem:[#allocation2 + $0x1fd0] sm:$0xff]  ;;  %v1235_v33 = vld [vmem:[#allocation2 + $0x1798] sm:$0xff] }
 0x3a3   : > { %1937 = vmatpush1.msra.mxu1 %v1090_v36  ;;  %2008 = vmatpush1.msra.mxu0 %v1346_v37  ;;  %v1491_v35 = vld [vmem:[#allocation2 + $0x1f98] sm:$0xff]  ;;  %v1234_v36 = vld [vmem:[#allocation2 + $0x1790] sm:$0xff] }
 0x3a4   : > { %1938 = vmatprep.subr.mxu1 %v1083_v39  ;;  %2009 = vmatprep.subr.mxu0 %v1339_v41  ;;  %v1490_v37 = vld [vmem:[#allocation2 + $0x1f90] sm:$0xff]  ;;  %v1227_v39 = vld [vmem:[#allocation2 + $0x1758] sm:$0xff] }
 0x3a5   : > { %1939 = vmatpush1.msra.mxu1 %v1082_v42  ;;  %2010 = vmatpush1.msra.mxu0 %v1338_v43  ;;  %v1483_v41 = vld [vmem:[#allocation2 + $0x1f58] sm:$0xff]  ;;  %v1226_v42 = vld [vmem:[#allocation2 + $0x1750] sm:$0xff] }
 0x3a6   : > { %1940 = vmatprep.subr.mxu1 %v1075_v45  ;;  %2011 = vmatprep.subr.mxu0 %v1331_v47  ;;  %v1482_v43 = vld [vmem:[#allocation2 + $0x1f50] sm:$0xff]  ;;  %v1219_v45 = vld [vmem:[#allocation2 + $0x1718] sm:$0xff] }
 0x3a7   : > { %1941 = vmatpush1.msra.mxu1 %v1074_v48  ;;  %2012 = vmatpush1.msra.mxu0 %v1330_v49  ;;  %v1475_v47 = vld [vmem:[#allocation2 + $0x1f18] sm:$0xff]  ;;  %v1218_v48 = vld [vmem:[#allocation2 + $0x1710] sm:$0xff] }
 0x3a8   : > { %1942 = vmatprep.subr.mxu1 %v1067_v29  ;;  %2013 = vmatprep.subr.mxu0 %v1323_v50  ;;  %v1474_v49 = vld [vmem:[#allocation2 + $0x1f10] sm:$0xff]  ;;  %v1211_v29 = vld [vmem:[#allocation2 + $0x16d8] sm:$0xff] }
 0x3a9   : > { %1943 = vmatpush1.msra.mxu1 %v1066_v38  ;;  %2014 = vmatpush1.msra.mxu0 %v1322_v44  ;;  %v1467_v50 = vld [vmem:[#allocation2 + $0x1ed8] sm:$0xff]  ;;  %v1210_v38 = vld [vmem:[#allocation2 + $0x16d0] sm:$0xff] }
 0x3aa   : > { %1944 = vmatprep.subr.mxu1 %v1059_v52  ;;  %2015 = vmatprep.subr.mxu0 %v1315_v54  ;;  %v1466_v44 = vld [vmem:[#allocation2 + $0x1ed0] sm:$0xff]  ;;  %v1203_v52 = vld [vmem:[#allocation2 + $0x1698] sm:$0xff] }
 0x3ab   : > { %1945 = vmatpush1.msra.mxu1 %v1058_v56  ;;  %2016 = vmatpush1.msra.mxu0 %v1314_v57  ;;  %v1459_v54 = vld [vmem:[#allocation2 + $0x1e98] sm:$0xff]  ;;  %v1202_v56 = vld [vmem:[#allocation2 + $0x1690] sm:$0xff] }
 0x3ac   : > { %1946 = vmatprep.subr.mxu1 %v1051_v58  ;;  %2017 = vmatprep.subr.mxu0 %v1307_v59  ;;  %v1458_v57 = vld [vmem:[#allocation2 + $0x1e90] sm:$0xff]  ;;  %v1195_v58 = vld [vmem:[#allocation2 + $0x1658] sm:$0xff] }
 0x3ad   : > { %1947 = vmatpush1.msra.mxu1 %v1050_v60  ;;  %2018 = vmatpush1.msra.mxu0 %v1306_v61  ;;  %v1451_v59 = vld [vmem:[#allocation2 + $0x1e58] sm:$0xff]  ;;  %v1194_v60 = vld [vmem:[#allocation2 + $0x1650] sm:$0xff] }
 0x3ae   : > { %1948 = vmatprep.subr.mxu1 %v1043_v62  ;;  %2019 = vmatprep.subr.mxu0 %v1299_v63  ;;  %v1450_v61 = vld [vmem:[#allocation2 + $0x1e50] sm:$0xff]  ;;  %v1187_v62 = vld [vmem:[#allocation2 + $0x1618] sm:$0xff] }
 0x3af   : > { %1949 = vmatpush1.msra.mxu1 %v1042_v0  ;;  %2020 = vmatpush1.msra.mxu0 %v1298_v1  ;;  %v1443_v63 = vld [vmem:[#allocation2 + $0x1e18] sm:$0xff]  ;;  %v1186_v0 = vld [vmem:[#allocation2 + $0x1610] sm:$0xff] }
 0x3b0   : > { %1950 = vmatprep.subr.mxu1 %v1035_v4  ;;  %2021 = vmatprep.subr.mxu0 %v1291_v5  ;;  %v1442_v1 = vld [vmem:[#allocation2 + $0x1e10] sm:$0xff]  ;;  %v1179_v4 = vld [vmem:[#allocation2 + $0x15d8] sm:$0xff] }
 0x3b1   : > { %1951 = vmatpush1.msra.mxu1 %v1034_v6  ;;  %2022 = vmatpush1.msra.mxu0 %v1290_v7  ;;  %v1435_v5 = vld [vmem:[#allocation2 + $0x1dd8] sm:$0xff]  ;;  %v1178_v6 = vld [vmem:[#allocation2 + $0x15d0] sm:$0xff] }
 0x3b2   : > { %1952 = vmatprep.subr.mxu1 %v1027_v8  ;;  %2023 = vmatprep.subr.mxu0 %v1283_v9  ;;  %v1434_v7 = vld [vmem:[#allocation2 + $0x1dd0] sm:$0xff]  ;;  %v1171_v8 = vld [vmem:[#allocation2 + $0x1598] sm:$0xff] }
 0x3b3   : > { %1953 = vmatpush1.msra.mxu1 %v1026_v34  ;;  %2024 = vmatpush1.msra.mxu0 %v1282_v28  ;;  %v1427_v9 = vld [vmem:[#allocation2 + $0x1d98] sm:$0xff]  ;;  %v1170_v34 = vld [vmem:[#allocation2 + $0x1590] sm:$0xff] }
 0x3b4   : > { %1954 = vmatprep.subr.mxu1 %v1019_v10  ;;  %2025 = vmatprep.subr.mxu0 %v1275_v11  ;;  %v1426_v28 = vld [vmem:[#allocation2 + $0x1d90] sm:$0xff]  ;;  %v1163_v10 = vld [vmem:[#allocation2 + $0x1558] sm:$0xff] }
 0x3b5   : > { %1955 = vmatpush1.msra.mxu1 %v1018_v12  ;;  %2026 = vmatpush1.msra.mxu0 %v1274_v13  ;;  %v1419_v11 = vld [vmem:[#allocation2 + $0x1d58] sm:$0xff]  ;;  %v1162_v12 = vld [vmem:[#allocation2 + $0x1550] sm:$0xff] }
 0x3b6   : > { %1956 = vmatprep.subr.mxu1 %v1011_v14  ;;  %2027 = vmatprep.subr.mxu0 %v1267_v15  ;;  %v1418_v13 = vld [vmem:[#allocation2 + $0x1d50] sm:$0xff]  ;;  %v1155_v14 = vld [vmem:[#allocation2 + $0x1518] sm:$0xff] }
 0x3b7   : > { %1957 = vmatpush1.msra.mxu1 %v1010_v16  ;;  %2028 = vmatpush1.msra.mxu0 %v1266_v17  ;;  %v1411_v15 = vld [vmem:[#allocation2 + $0x1d18] sm:$0xff]  ;;  %v1154_v16 = vld [vmem:[#allocation2 + $0x1510] sm:$0xff] }
 0x3b8   : > { %1958 = vmatprep.subr.mxu1 %v1003_v18  ;;  %2029 = vmatprep.subr.mxu0 %v1259_v19  ;;  %v1410_v17 = vld [vmem:[#allocation2 + $0x1d10] sm:$0xff]  ;;  %v1147_v18 = vld [vmem:[#allocation2 + $0x14d8] sm:$0xff] }
 0x3b9   : > { %1959 = vmatpush1.msra.mxu1 %v1002_v20  ;;  %2030 = vmatpush1.msra.mxu0 %v1258_v21  ;;  %v1403_v19 = vld [vmem:[#allocation2 + $0x1cd8] sm:$0xff]  ;;  %v1146_v20 = vld [vmem:[#allocation2 + $0x14d0] sm:$0xff] }
 0x3ba   : > { %1960 = vmatprep.subr.mxu1 %v995_v22  ;;  %2031 = vmatprep.subr.mxu0 %v1251_v23  ;;  %v1402_v21 = vld [vmem:[#allocation2 + $0x1cd0] sm:$0xff]  ;;  %v1139_v22 = vld [vmem:[#allocation2 + $0x1498] sm:$0xff] }
 0x3bb   : > { %1961 = vmatpush1.msra.mxu1 %v994_v24  ;;  %2032 = vmatpush1.msra.mxu0 %v1250_v25  ;;  %v1395_v23 = vld [vmem:[#allocation2 + $0x1c98] sm:$0xff]  ;;  %v1138_v24 = vld [vmem:[#allocation2 + $0x1490] sm:$0xff] }
 0x3bc   : > { %1962 = vmatprep.subr.mxu1 %v1243_v26  ;;  %2033 = vmatprep.subr.mxu0 %v1499_v27  ;;  %v1394_v25 = vld [vmem:[#allocation2 + $0x1c90] sm:$0xff]  ;;  %v1131_v26 = vld [vmem:[#allocation2 + $0x1458] sm:$0xff] }
 0x3bd   : > { %1963 = vmatpush2.msra.mxu1 %v1242_v30  ;;  %2034 = vmatpush2.msra.mxu0 %v1498_v31  ;;  %v1387_v27 = vld [vmem:[#allocation2 + $0x1c58] sm:$0xff]  ;;  %v1130_v30 = vld [vmem:[#allocation2 + $0x1450] sm:$0xff] }
 0x3be   : > { %1964 = vmatprep.subr.mxu1 %v1235_v33  ;;  %2035 = vmatprep.subr.mxu0 %v1491_v35  ;;  %v1386_v31 = vld [vmem:[#allocation2 + $0x1c50] sm:$0xff]  ;;  %v1123_v33 = vld [vmem:[#allocation2 + $0x1418] sm:$0xff] }
 0x3bf   : > { %1965 = vmatpush2.msra.mxu1 %v1234_v36  ;;  %2036 = vmatpush2.msra.mxu0 %v1490_v37  ;;  %v1379_v35 = vld [vmem:[#allocation2 + $0x1c18] sm:$0xff]  ;;  %v1122_v36 = vld [vmem:[#allocation2 + $0x1410] sm:$0xff] }
 0x3c0   : > { %1966 = vmatprep.subr.mxu1 %v1227_v39  ;;  %2037 = vmatprep.subr.mxu0 %v1483_v41  ;;  %v1378_v37 = vld [vmem:[#allocation2 + $0x1c10] sm:$0xff]  ;;  %v605_v39 = vld [vmem:[#allocation2 + $0x3e8] sm:$0xff] }
 0x3c1   : > { %1967 = vmatpush2.msra.mxu1 %v1226_v42  ;;  %2038 = vmatpush2.msra.mxu0 %v1482_v43  ;;  %v861_v41 = vld [vmem:[#allocation2 + $0xbe8] sm:$0xff]  ;;  %v604_v42 = vld [vmem:[#allocation2 + $0x3e0] sm:$0xff] }
 0x3c2   : > { %1968 = vmatprep.subr.mxu1 %v1219_v45  ;;  %2039 = vmatprep.subr.mxu0 %v1475_v47  ;;  %v860_v43 = vld [vmem:[#allocation2 + $0xbe0] sm:$0xff]  ;;  %v597_v45 = vld [vmem:[#allocation2 + $0x3a8] sm:$0xff] }
 0x3c3   : > { %1969 = vmatpush2.msra.mxu1 %v1218_v48  ;;  %2040 = vmatpush2.msra.mxu0 %v1474_v49  ;;  %v853_v47 = vld [vmem:[#allocation2 + $0xba8] sm:$0xff]  ;;  %v596_v48 = vld [vmem:[#allocation2 + $0x3a0] sm:$0xff] }
 0x3c4   : > { %1970 = vmatprep.subr.mxu1 %v1211_v29  ;;  %2041 = vmatprep.subr.mxu0 %v1467_v50  ;;  %v852_v49 = vld [vmem:[#allocation2 + $0xba0] sm:$0xff]  ;;  %v589_v29 = vld [vmem:[#allocation2 + $0x368] sm:$0xff] }
 0x3c5   : > { %1971 = vmatpush2.msra.mxu1 %v1210_v38  ;;  %2042 = vmatpush2.msra.mxu0 %v1466_v44  ;;  %v845_v50 = vld [vmem:[#allocation2 + $0xb68] sm:$0xff]  ;;  %v588_v38 = vld [vmem:[#allocation2 + $0x360] sm:$0xff] }
 0x3c6   : > { %1972 = vmatprep.subr.mxu1 %v1203_v52  ;;  %2043 = vmatprep.subr.mxu0 %v1459_v54  ;;  %v844_v44 = vld [vmem:[#allocation2 + $0xb60] sm:$0xff]  ;;  %v581_v52 = vld [vmem:[#allocation2 + $0x328] sm:$0xff] }
 0x3c7   : > { %1973 = vmatpush2.msra.mxu1 %v1202_v56  ;;  %2044 = vmatpush2.msra.mxu0 %v1458_v57  ;;  %v837_v54 = vld [vmem:[#allocation2 + $0xb28] sm:$0xff]  ;;  %v580_v56 = vld [vmem:[#allocation2 + $0x320] sm:$0xff] }
 0x3c8   : > { %1974 = vmatprep.subr.mxu1 %v1195_v58  ;;  %2045 = vmatprep.subr.mxu0 %v1451_v59  ;;  %v836_v57 = vld [vmem:[#allocation2 + $0xb20] sm:$0xff]  ;;  %v573_v58 = vld [vmem:[#allocation2 + $0x2e8] sm:$0xff] }
 0x3c9   : > { %1975 = vmatpush2.msra.mxu1 %v1194_v60  ;;  %2046 = vmatpush2.msra.mxu0 %v1450_v61  ;;  %v829_v59 = vld [vmem:[#allocation2 + $0xae8] sm:$0xff]  ;;  %v572_v60 = vld [vmem:[#allocation2 + $0x2e0] sm:$0xff] }
 0x3ca   : > { %1976 = vmatprep.subr.mxu1 %v1187_v62  ;;  %2047 = vmatprep.subr.mxu0 %v1443_v63  ;;  %v828_v61 = vld [vmem:[#allocation2 + $0xae0] sm:$0xff]  ;;  %v565_v62 = vld [vmem:[#allocation2 + $0x2a8] sm:$0xff] }
 0x3cb   : > { %1977 = vmatpush2.msra.mxu1 %v1186_v0  ;;  %2048 = vmatpush2.msra.mxu0 %v1442_v1  ;;  %v821_v63 = vld [vmem:[#allocation2 + $0xaa8] sm:$0xff]  ;;  %v564_v0 = vld [vmem:[#allocation2 + $0x2a0] sm:$0xff] }
 0x3cc   : > { %1978 = vmatprep.subr.mxu1 %v1179_v4  ;;  %2049 = vmatprep.subr.mxu0 %v1435_v5  ;;  %v820_v1 = vld [vmem:[#allocation2 + $0xaa0] sm:$0xff]  ;;  %v557_v4 = vld [vmem:[#allocation2 + $0x268] sm:$0xff] }
 0x3cd   : > { %1979 = vmatpush2.msra.mxu1 %v1178_v6  ;;  %2050 = vmatpush2.msra.mxu0 %v1434_v7  ;;  %v813_v5 = vld [vmem:[#allocation2 + $0xa68] sm:$0xff]  ;;  %v556_v6 = vld [vmem:[#allocation2 + $0x260] sm:$0xff] }
 0x3ce   : > { %1980 = vmatprep.subr.mxu1 %v1171_v8  ;;  %2051 = vmatprep.subr.mxu0 %v1427_v9  ;;  %v812_v7 = vld [vmem:[#allocation2 + $0xa60] sm:$0xff]  ;;  %v549_v8 = vld [vmem:[#allocation2 + $0x228] sm:$0xff] }
 0x3cf   : > { %1981 = vmatpush2.msra.mxu1 %v1170_v34  ;;  %2052 = vmatpush2.msra.mxu0 %v1426_v28  ;;  %v805_v9 = vld [vmem:[#allocation2 + $0xa28] sm:$0xff]  ;;  %v548_v34 = vld [vmem:[#allocation2 + $0x220] sm:$0xff] }
 0x3d0   : > { %1982 = vmatprep.subr.mxu1 %v1163_v10  ;;  %2053 = vmatprep.subr.mxu0 %v1419_v11  ;;  %v804_v28 = vld [vmem:[#allocation2 + $0xa20] sm:$0xff]  ;;  %v541_v10 = vld [vmem:[#allocation2 + $0x1e8] sm:$0xff] }
 0x3d1   : > { %1983 = vmatpush2.msra.mxu1 %v1162_v12  ;;  %2054 = vmatpush2.msra.mxu0 %v1418_v13  ;;  %v797_v11 = vld [vmem:[#allocation2 + $0x9e8] sm:$0xff]  ;;  %v540_v12 = vld [vmem:[#allocation2 + $0x1e0] sm:$0xff] }
 0x3d2   : > { %1984 = vmatprep.subr.mxu1 %v1155_v14  ;;  %2055 = vmatprep.subr.mxu0 %v1411_v15  ;;  %v796_v13 = vld [vmem:[#allocation2 + $0x9e0] sm:$0xff]  ;;  %v533_v14 = vld [vmem:[#allocation2 + $0x1a8] sm:$0xff] }
 0x3d3   : > { %1985 = vmatpush2.msra.mxu1 %v1154_v16  ;;  %2056 = vmatpush2.msra.mxu0 %v1410_v17  ;;  %v789_v15 = vld [vmem:[#allocation2 + $0x9a8] sm:$0xff]  ;;  %v532_v16 = vld [vmem:[#allocation2 + $0x1a0] sm:$0xff] }
 0x3d4   : > { %1986 = vmatprep.subr.mxu1 %v1147_v18  ;;  %2057 = vmatprep.subr.mxu0 %v1403_v19  ;;  %v788_v17 = vld [vmem:[#allocation2 + $0x9a0] sm:$0xff]  ;;  %v525_v18 = vld [vmem:[#allocation2 + $0x168] sm:$0xff] }
 0x3d5   : > { %1987 = vmatpush2.msra.mxu1 %v1146_v20  ;;  %2058 = vmatpush2.msra.mxu0 %v1402_v21  ;;  %v781_v19 = vld [vmem:[#allocation2 + $0x968] sm:$0xff]  ;;  %v524_v20 = vld [vmem:[#allocation2 + $0x160] sm:$0xff] }
 0x3d6   : > { %1988 = vmatprep.subr.mxu1 %v1139_v22  ;;  %2059 = vmatprep.subr.mxu0 %v1395_v23  ;;  %v780_v21 = vld [vmem:[#allocation2 + $0x960] sm:$0xff]  ;;  %v517_v22 = vld [vmem:[#allocation2 + $0x128] sm:$0xff] }
 0x3d7   : > { %1989 = vmatpush2.msra.mxu1 %v1138_v24  ;;  %2060 = vmatpush2.msra.mxu0 %v1394_v25  ;;  %v773_v23 = vld [vmem:[#allocation2 + $0x928] sm:$0xff]  ;;  %v516_v24 = vld [vmem:[#allocation2 + $0x120] sm:$0xff] }
 0x3d8   : > { %1990 = vmatprep.subr.mxu1 %v1131_v26  ;;  %2061 = vmatprep.subr.mxu0 %v1387_v27  ;;  %v772_v25 = vld [vmem:[#allocation2 + $0x920] sm:$0xff]  ;;  %v509_v26 = vld [vmem:[#allocation2 + $0xe8] sm:$0xff] }
 0x3d9   : > { %1991 = vmatpush2.msra.mxu1 %v1130_v30  ;;  %2062 = vmatpush2.msra.mxu0 %v1386_v31  ;;  %v765_v27 = vld [vmem:[#allocation2 + $0x8e8] sm:$0xff]  ;;  %v508_v30 = vld [vmem:[#allocation2 + $0xe0] sm:$0xff] }
 0x3da   : > { %1992 = vmatprep.subr.mxu1 %v1123_v33  ;;  %2063 = vmatprep.subr.mxu0 %v1379_v35  ;;  %v764_v31 = vld [vmem:[#allocation2 + $0x8e0] sm:$0xff]  ;;  %v501_v33 = vld [vmem:[#allocation2 + $0xa8] sm:$0xff] }
 0x3db   : > { %1993 = vmatpush2.msra.mxu1 %v1122_v36  ;;  %2064 = vmatpush2.msra.mxu0 %v1378_v37  ;;  %v757_v35 = vld [vmem:[#allocation2 + $0x8a8] sm:$0xff]  ;;  %v500_v36 = vld [vmem:[#allocation2 + $0xa0] sm:$0xff] }
 0x3dc   : > { %1995 = vmatmul.mubr.f32.vlgmr.msra.gmra.mxu1 %v3112_v2  ;;  %2066 = vmatmul.mubr.f32.vlgmr.msra.gmra.mxu0 %v3115_v3  ;;  %v756_v37 = vld [vmem:[#allocation2 + $0x8a0] sm:$0xff] }
 0x3dd   : > { %2072 = vmatprep.subr.mxu1 %v605_v39  ;;  %2143 = vmatprep.subr.mxu0 %v861_v41  ;;  %v493_v39 = vld [vmem:[#allocation2 + $0x68] sm:$0xff] }
 0x3de   : > { %2073 = vmatpush1.msra.mxu1 %v604_v42  ;;  %2136 = vmatprep.mubr.f32.mxu1 %v3093_v32  ;;  %v749_v41 = vld [vmem:[#allocation2 + $0x868] sm:$0xff]  ;;  %v492_v42 = vld [vmem:[#allocation2 + $0x60] sm:$0xff] }
 0x3df   : > { %2144 = vmatpush1.msra.mxu0 %v860_v43  ;;  %2207 = vmatprep.mubr.f32.mxu0 %v3095_v51  ;;  %v748_v43 = vld [vmem:[#allocation2 + $0x860] sm:$0xff] }
 0x3e0   : > { %2074 = vmatprep.subr.mxu1 %v597_v45  ;;  %2145 = vmatprep.subr.mxu0 %v853_v47  ;;  %v485_v45 = vld [vmem:[#allocation2 + $0x28] sm:$0xff] }
 0x3e1   : > { %2075 = vmatpush1.msra.mxu1 %v596_v48  ;;  %2146 = vmatpush1.msra.mxu0 %v852_v49  ;;  %v741_v47 = vld [vmem:[#allocation2 + $0x828] sm:$0xff]  ;;  %v484_v48 = vld [vmem:[#allocation2 + $0x20] sm:$0xff] }
 0x3e2   : > { %2076 = vmatprep.subr.mxu1 %v589_v29  ;;  %2147 = vmatprep.subr.mxu0 %v845_v50  ;;  %v740_v49 = vld [vmem:[#allocation2 + $0x820] sm:$0xff]  ;;  %v733_v29 = vld [vmem:[#allocation2 + $0x7e8] sm:$0xff] }
 0x3e3   : > { %2077 = vmatpush1.msra.mxu1 %v588_v38  ;;  %2148 = vmatpush1.msra.mxu0 %v844_v44  ;;  %v989_v50 = vld [vmem:[#allocation2 + $0xfe8] sm:$0xff]  ;;  %v732_v38 = vld [vmem:[#allocation2 + $0x7e0] sm:$0xff] }
 0x3e4   : > { %2078 = vmatprep.subr.mxu1 %v581_v52  ;;  %2149 = vmatprep.subr.mxu0 %v837_v54  ;;  %v988_v44 = vld [vmem:[#allocation2 + $0xfe0] sm:$0xff]  ;;  %v725_v52 = vld [vmem:[#allocation2 + $0x7a8] sm:$0xff] }
 0x3e5   : > { %2079 = vmatpush1.msra.mxu1 %v580_v56  ;;  %2150 = vmatpush1.msra.mxu0 %v836_v57  ;;  %v981_v54 = vld [vmem:[#allocation2 + $0xfa8] sm:$0xff]  ;;  %v724_v56 = vld [vmem:[#allocation2 + $0x7a0] sm:$0xff] }
 0x3e6   : > { %2080 = vmatprep.subr.mxu1 %v573_v58  ;;  %2151 = vmatprep.subr.mxu0 %v829_v59  ;;  %v980_v57 = vld [vmem:[#allocation2 + $0xfa0] sm:$0xff]  ;;  %v717_v58 = vld [vmem:[#allocation2 + $0x768] sm:$0xff] }
 0x3e7   : > { %2081 = vmatpush1.msra.mxu1 %v572_v60  ;;  %2152 = vmatpush1.msra.mxu0 %v828_v61  ;;  %v973_v59 = vld [vmem:[#allocation2 + $0xf68] sm:$0xff]  ;;  %v716_v60 = vld [vmem:[#allocation2 + $0x760] sm:$0xff] }
 0x3e8   : > { %2082 = vmatprep.subr.mxu1 %v565_v62  ;;  %2153 = vmatprep.subr.mxu0 %v821_v63  ;;  %v972_v61 = vld [vmem:[#allocation2 + $0xf60] sm:$0xff]  ;;  %v709_v62 = vld [vmem:[#allocation2 + $0x728] sm:$0xff] }
 0x3e9   : > { %2083 = vmatpush1.msra.mxu1 %v564_v0  ;;  %2154 = vmatpush1.msra.mxu0 %v820_v1  ;;  %v965_v63 = vld [vmem:[#allocation2 + $0xf28] sm:$0xff]  ;;  %v708_v0 = vld [vmem:[#allocation2 + $0x720] sm:$0xff] }
 0x3ea   : > { %2084 = vmatprep.subr.mxu1 %v557_v4  ;;  %2155 = vmatprep.subr.mxu0 %v813_v5  ;;  %v964_v1 = vld [vmem:[#allocation2 + $0xf20] sm:$0xff]  ;;  %v701_v4 = vld [vmem:[#allocation2 + $0x6e8] sm:$0xff] }
 0x3eb   : > { %2085 = vmatpush1.msra.mxu1 %v556_v6  ;;  %2156 = vmatpush1.msra.mxu0 %v812_v7  ;;  %v957_v5 = vld [vmem:[#allocation2 + $0xee8] sm:$0xff]  ;;  %v700_v6 = vld [vmem:[#allocation2 + $0x6e0] sm:$0xff] }
 0x3ec   : > { %2086 = vmatprep.subr.mxu1 %v549_v8  ;;  %2157 = vmatprep.subr.mxu0 %v805_v9  ;;  %v956_v7 = vld [vmem:[#allocation2 + $0xee0] sm:$0xff]  ;;  %v693_v8 = vld [vmem:[#allocation2 + $0x6a8] sm:$0xff] }
 0x3ed   : > { %2087 = vmatpush1.msra.mxu1 %v548_v34  ;;  %2158 = vmatpush1.msra.mxu0 %v804_v28  ;;  %v949_v9 = vld [vmem:[#allocation2 + $0xea8] sm:$0xff]  ;;  %v692_v34 = vld [vmem:[#allocation2 + $0x6a0] sm:$0xff] }
 0x3ee   : > { %2088 = vmatprep.subr.mxu1 %v541_v10  ;;  %2159 = vmatprep.subr.mxu0 %v797_v11  ;;  %v948_v28 = vld [vmem:[#allocation2 + $0xea0] sm:$0xff]  ;;  %v685_v10 = vld [vmem:[#allocation2 + $0x668] sm:$0xff] }
 0x3ef   : > { %2089 = vmatpush1.msra.mxu1 %v540_v12  ;;  %2160 = vmatpush1.msra.mxu0 %v796_v13  ;;  %v941_v11 = vld [vmem:[#allocation2 + $0xe68] sm:$0xff]  ;;  %v684_v12 = vld [vmem:[#allocation2 + $0x660] sm:$0xff] }
 0x3f0   : > { %2090 = vmatprep.subr.mxu1 %v533_v14  ;;  %2161 = vmatprep.subr.mxu0 %v789_v15  ;;  %v940_v13 = vld [vmem:[#allocation2 + $0xe60] sm:$0xff]  ;;  %v677_v14 = vld [vmem:[#allocation2 + $0x628] sm:$0xff] }
 0x3f1   : > { %2091 = vmatpush1.msra.mxu1 %v532_v16  ;;  %2162 = vmatpush1.msra.mxu0 %v788_v17  ;;  %v933_v15 = vld [vmem:[#allocation2 + $0xe28] sm:$0xff]  ;;  %v676_v16 = vld [vmem:[#allocation2 + $0x620] sm:$0xff] }
 0x3f2   : > { %2092 = vmatprep.subr.mxu1 %v525_v18  ;;  %2163 = vmatprep.subr.mxu0 %v781_v19  ;;  %v932_v17 = vld [vmem:[#allocation2 + $0xe20] sm:$0xff]  ;;  %v669_v18 = vld [vmem:[#allocation2 + $0x5e8] sm:$0xff] }
 0x3f3   : > { %2093 = vmatpush1.msra.mxu1 %v524_v20  ;;  %2164 = vmatpush1.msra.mxu0 %v780_v21  ;;  %v925_v19 = vld [vmem:[#allocation2 + $0xde8] sm:$0xff]  ;;  %v668_v20 = vld [vmem:[#allocation2 + $0x5e0] sm:$0xff] }
 0x3f4   : > { %2094 = vmatprep.subr.mxu1 %v517_v22  ;;  %2165 = vmatprep.subr.mxu0 %v773_v23  ;;  %v924_v21 = vld [vmem:[#allocation2 + $0xde0] sm:$0xff]  ;;  %v661_v22 = vld [vmem:[#allocation2 + $0x5a8] sm:$0xff] }
 0x3f5   : > { %2095 = vmatpush1.msra.mxu1 %v516_v24  ;;  %2166 = vmatpush1.msra.mxu0 %v772_v25  ;;  %v917_v23 = vld [vmem:[#allocation2 + $0xda8] sm:$0xff]  ;;  %v660_v24 = vld [vmem:[#allocation2 + $0x5a0] sm:$0xff] }
 0x3f6   : > { %2096 = vmatprep.subr.mxu1 %v509_v26  ;;  %2167 = vmatprep.subr.mxu0 %v765_v27  ;;  %v916_v25 = vld [vmem:[#allocation2 + $0xda0] sm:$0xff]  ;;  %v653_v26 = vld [vmem:[#allocation2 + $0x568] sm:$0xff] }
 0x3f7   : > { %2097 = vmatpush1.msra.mxu1 %v508_v30  ;;  %2168 = vmatpush1.msra.mxu0 %v764_v31  ;;  %v909_v27 = vld [vmem:[#allocation2 + $0xd68] sm:$0xff]  ;;  %v652_v30 = vld [vmem:[#allocation2 + $0x560] sm:$0xff] }
 0x3f8   : > { %2098 = vmatprep.subr.mxu1 %v501_v33  ;;  %2169 = vmatprep.subr.mxu0 %v757_v35  ;;  %v908_v31 = vld [vmem:[#allocation2 + $0xd60] sm:$0xff]  ;;  %v645_v33 = vld [vmem:[#allocation2 + $0x528] sm:$0xff] }
 0x3f9   : > { %2099 = vmatpush1.msra.mxu1 %v500_v36  ;;  %2170 = vmatpush1.msra.mxu0 %v756_v37  ;;  %v901_v35 = vld [vmem:[#allocation2 + $0xd28] sm:$0xff]  ;;  %v1570_v36 = vpop.f32.mrf.mxu1  ;;  %v1641_v37 = vpop.f32.mrf.mxu0 }
 0x3fa   : > { %2100 = vmatprep.subr.mxu1 %v493_v39  ;;  %2171 = vmatprep.subr.mxu0 %v749_v41  ;;  %v644_v39 = vld [vmem:[#allocation2 + $0x520] sm:$0xff] }
 0x3fb   : > { %2101 = vmatpush1.msra.mxu1 %v492_v42  ;;  %2172 = vmatpush1.msra.mxu0 %v748_v43  ;;  %v900_v41 = vld [vmem:[#allocation2 + $0xd20] sm:$0xff]  ;;  %v637_v42 = vld [vmem:[#allocation2 + $0x4e8] sm:$0xff] }
 0x3fc   : > { %2102 = vmatprep.subr.mxu1 %v485_v45  ;;  %2173 = vmatprep.subr.mxu0 %v741_v47  ;;  %v893_v43 = vld [vmem:[#allocation2 + $0xce8] sm:$0xff]  ;;  %v636_v45 = vld [vmem:[#allocation2 + $0x4e0] sm:$0xff] }
 0x3fd   : > { %2103 = vmatpush1.msra.mxu1 %v484_v48  ;;  %2174 = vmatpush1.msra.mxu0 %v740_v49  ;;  %v892_v47 = vld [vmem:[#allocation2 + $0xce0] sm:$0xff]  ;;  %v629_v48 = vld [vmem:[#allocation2 + $0x4a8] sm:$0xff] }
 0x3fe   : > { %2104 = vmatprep.subr.mxu1 %v733_v29  ;;  %2175 = vmatprep.subr.mxu0 %v989_v50  ;;  %v885_v49 = vld [vmem:[#allocation2 + $0xca8] sm:$0xff]  ;;  %v1572_v29 = vpop.f32.mrf.mxu1  ;;  %v1643_v50 = vpop.f32.mrf.mxu0 }
 0x3ff   : > { %2105 = vmatpush2.msra.mxu1 %v732_v38  ;;  %2176 = vmatpush2.msra.mxu0 %v988_v44  ;;  %v628_v38 = vld [vmem:[#allocation2 + $0x4a0] sm:$0xff] }
 0x400   : > { %2106 = vmatprep.subr.mxu1 %v725_v52  ;;  %2177 = vmatprep.subr.mxu0 %v981_v54  ;;  %v884_v44 = vld [vmem:[#allocation2 + $0xca0] sm:$0xff]  ;;  %v1642_v52 = vadd.f32 %v1641_v37, %v1570_v36  ;;  %v621_v54 = vld [vmem:[#allocation2 + $0x468] sm:$0xff] }
 0x401   : > { %2107 = vmatpush2.msra.mxu1 %v724_v56  ;;  %2178 = vmatpush2.msra.mxu0 %v980_v57  ;;  %v877_v56 = vld [vmem:[#allocation2 + $0xc68] sm:$0xff]  ;;  %v620_v57 = vld [vmem:[#allocation2 + $0x460] sm:$0xff] }
 0x402   : > { %2108 = vmatprep.subr.mxu1 %v717_v58  ;;  %2179 = vmatprep.subr.mxu0 %v973_v59  ;;  %v876_v58 = vld [vmem:[#allocation2 + $0xc60] sm:$0xff]  ;;  %v1069_v36 = vld [vmem:[#allocation2 + $0x1268] sm:$0xff] }
 0x403   : > { %2109 = vmatpush2.msra.mxu1 %v716_v60  ;;  %2180 = vmatpush2.msra.mxu0 %v972_v61  ;;  %v1644_v61 = vadd.f32 %v1643_v50, %v1572_v29  ;;  %v1325_v37 = vld [vmem:[#allocation2 + $0x1a68] sm:$0xff]  ;;  %v1052_v29 = vld [vmem:[#allocation2 + $0x11e0] sm:$0xff] }
 0x404   : > { %2110 = vmatprep.subr.mxu1 %v709_v62  ;;  %2181 = vmatprep.subr.mxu0 %v965_v63  ;;  %v613_v62 = vld [vmem:[#allocation2 + $0x428] sm:$0xff]  ;;  %v1308_v50 = vld [vmem:[#allocation2 + $0x19e0] sm:$0xff] }
 0x405   : > { %2111 = vmatpush2.msra.mxu1 %v708_v0  ;;  %2182 = vmatpush2.msra.mxu0 %v964_v1  ;;  %v869_v63 = vld [vmem:[#allocation2 + $0xc28] sm:$0xff]  ;;  %v612_v1 = vld [vmem:[#allocation2 + $0x420] sm:$0xff] }
 0x406   : > { %2112 = vmatprep.subr.mxu1 %v701_v4  ;;  %2183 = vmatprep.subr.mxu0 %v957_v5  ;;  %v868_v4 = vld [vmem:[#allocation2 + $0xc20] sm:$0xff] }
 0x407   : > { %2113 = vmatpush2.msra.mxu1 %v700_v6  ;;  %2184 = vmatpush2.msra.mxu0 %v956_v7 }
 0x408   : > { %2114 = vmatprep.subr.mxu1 %v693_v8  ;;  %2185 = vmatprep.subr.mxu0 %v949_v9  ;;  %v1117_v8 = vld [vmem:[#allocation2 + $0x13e8] sm:$0xff] }
 0x409   : > { %2115 = vmatpush2.msra.mxu1 %v692_v34  ;;  %2186 = vmatpush2.msra.mxu0 %v948_v28  ;;  %v1373_v9 = vld [vmem:[#allocation2 + $0x1be8] sm:$0xff]  ;;  %v1116_v28 = vld [vmem:[#allocation2 + $0x13e0] sm:$0xff] }
 0x40a   : > { %2116 = vmatprep.subr.mxu1 %v685_v10  ;;  %2187 = vmatprep.subr.mxu0 %v941_v11  ;;  %v1372_v11 = vld [vmem:[#allocation2 + $0x1be0] sm:$0xff] }
 0x40b   : > { %2117 = vmatpush2.msra.mxu1 %v684_v12  ;;  %2188 = vmatpush2.msra.mxu0 %v940_v13  ;;  %v1109_v12 = vld [vmem:[#allocation2 + $0x13a8] sm:$0xff] }
 0x40c   : > { %2118 = vmatprep.subr.mxu1 %v677_v14  ;;  %2189 = vmatprep.subr.mxu0 %v933_v15  ;;  %v1365_v13 = vld [vmem:[#allocation2 + $0x1ba8] sm:$0xff]  ;;  %v1108_v14 = vld [vmem:[#allocation2 + $0x13a0] sm:$0xff] }
 0x40d   : > { %2119 = vmatpush2.msra.mxu1 %v676_v16  ;;  %2190 = vmatpush2.msra.mxu0 %v932_v17  ;;  %v1364_v15 = vld [vmem:[#allocation2 + $0x1ba0] sm:$0xff]  ;;  %v1101_v16 = vld [vmem:[#allocation2 + $0x1368] sm:$0xff] }
 0x40e   : > { %2120 = vmatprep.subr.mxu1 %v669_v18  ;;  %2191 = vmatprep.subr.mxu0 %v925_v19  ;;  %v1357_v17 = vld [vmem:[#allocation2 + $0x1b68] sm:$0xff]  ;;  %v1100_v18 = vld [vmem:[#allocation2 + $0x1360] sm:$0xff] }
 0x40f   : > { %2121 = vmatpush2.msra.mxu1 %v668_v20  ;;  %2192 = vmatpush2.msra.mxu0 %v924_v21  ;;  %v1356_v19 = vld [vmem:[#allocation2 + $0x1b60] sm:$0xff]  ;;  %v1093_v20 = vld [vmem:[#allocation2 + $0x1328] sm:$0xff] }
 0x410   : > { %2122 = vmatprep.subr.mxu1 %v661_v22  ;;  %2193 = vmatprep.subr.mxu0 %v917_v23  ;;  %v1349_v21 = vld [vmem:[#allocation2 + $0x1b28] sm:$0xff]  ;;  %v1092_v22 = vld [vmem:[#allocation2 + $0x1320] sm:$0xff] }
 0x411   : > { %2123 = vmatpush2.msra.mxu1 %v660_v24  ;;  %2194 = vmatpush2.msra.mxu0 %v916_v25  ;;  %v1348_v23 = vld [vmem:[#allocation2 + $0x1b20] sm:$0xff]  ;;  %v1085_v24 = vld [vmem:[#allocation2 + $0x12e8] sm:$0xff] }
 0x412   : > { %2124 = vmatprep.subr.mxu1 %v653_v26  ;;  %2195 = vmatprep.subr.mxu0 %v909_v27  ;;  %v1341_v25 = vld [vmem:[#allocation2 + $0x1ae8] sm:$0xff]  ;;  %v1084_v26 = vld [vmem:[#allocation2 + $0x12e0] sm:$0xff] }
 0x413   : > { %2125 = vmatpush2.msra.mxu1 %v652_v30  ;;  %2196 = vmatpush2.msra.mxu0 %v908_v31  ;;  %v1340_v27 = vld [vmem:[#allocation2 + $0x1ae0] sm:$0xff]  ;;  %v1077_v30 = vld [vmem:[#allocation2 + $0x12a8] sm:$0xff] }
 0x414   : > { %2126 = vmatprep.subr.mxu1 %v645_v33  ;;  %2197 = vmatprep.subr.mxu0 %v901_v35  ;;  %v1333_v31 = vld [vmem:[#allocation2 + $0x1aa8] sm:$0xff]  ;;  %v1076_v33 = vld [vmem:[#allocation2 + $0x12a0] sm:$0xff] }
 0x415   : > { %2127 = vmatpush2.msra.mxu1 %v644_v39  ;;  %2198 = vmatpush2.msra.mxu0 %v900_v41  ;;  %v1332_v35 = vld [vmem:[#allocation2 + $0x1aa0] sm:$0xff] }
 0x416   : > { %2128 = vmatprep.subr.mxu1 %v637_v42  ;;  %2199 = vmatprep.subr.mxu0 %v893_v43  ;;  %v1068_v39 = vld [vmem:[#allocation2 + $0x1260] sm:$0xff]  ;;  %v1061_v42 = vld [vmem:[#allocation2 + $0x1228] sm:$0xff] }
 0x417   : > { %2129 = vmatpush2.msra.mxu1 %v636_v45  ;;  %2200 = vmatpush2.msra.mxu0 %v892_v47  ;;  %v1324_v41 = vld [vmem:[#allocation2 + $0x1a60] sm:$0xff]  ;;  %v1317_v43 = vld [vmem:[#allocation2 + $0x1a28] sm:$0xff] }
 0x418   : > { %2130 = vmatprep.subr.mxu1 %v629_v48  ;;  %2201 = vmatprep.subr.mxu0 %v885_v49  ;;  %v1712_v59 = vpop.f32.mrf.mxu1  ;;  %v1783_v60 = vpop.f32.mrf.mxu0  ;;  %v1060_v45 = vld [vmem:[#allocation2 + $0x1220] sm:$0xff]  ;;  %v1053_v48 = vld [vmem:[#allocation2 + $0x11e8] sm:$0xff] }
 0x419   : > { %2131 = vmatpush2.msra.mxu1 %v628_v38  ;;  %2202 = vmatpush2.msra.mxu0 %v884_v44  ;;  %v1713_v0 = vadd.f32 %v1712_v59, %v1642_v52  ;;  %v1316_v47 = vld [vmem:[#allocation2 + $0x1a20] sm:$0xff]  ;;  %v1309_v49 = vld [vmem:[#allocation2 + $0x19e8] sm:$0xff] }
 0x41a   : > { %2132 = vmatprep.subr.mxu1 %v621_v54  ;;  %2203 = vmatprep.subr.mxu0 %v877_v56  ;;  %v1714_v5 = vpop.f32.mrf.mxu1  ;;  %v1785_v34 = vpop.f32.mrf.mxu0  ;;  %v1045_v38 = vld [vmem:[#allocation2 + $0x11a8] sm:$0xff]  ;;  %v1044_v52 = vld [vmem:[#allocation2 + $0x11a0] sm:$0xff] }
 0x41b   : > { %2133 = vmatpush2.msra.mxu1 %v620_v57  ;;  %2204 = vmatpush2.msra.mxu0 %v876_v58  ;;  %v1784_v6 = vadd.f32 %v1783_v60, %v1713_v0  ;;  %v1715_v7 = vadd.f32 %v1714_v5, %v1644_v61  ;;  %v1301_v44 = vld [vmem:[#allocation2 + $0x19a8] sm:$0xff]  ;;  %v1300_v54 = vld [vmem:[#allocation2 + $0x19a0] sm:$0xff] }
 0x41c   : > { %2134 = vmatprep.subr.mxu1 %v613_v62  ;;  %2205 = vmatprep.subr.mxu0 %v869_v63  ;;  %v1037_v56 = vld [vmem:[#allocation2 + $0x1168] sm:$0xff]  ;;  %v1036_v58 = vld [vmem:[#allocation2 + $0x1160] sm:$0xff] }
 0x41d   : > { %2135 = vmatpush2.msra.mxu1 %v612_v1  ;;  %2206 = vmatpush2.msra.mxu0 %v868_v4  ;;  %2640 = vst [vmem:[%s3138_s23] sm:$0xff] %v1784_v6  ;;  %v1786_v10 = vadd.f32 %v1785_v34, %v1715_v7  ;;  %v1293_v57 = vld [vmem:[#allocation2 + $0x1968] sm:$0xff]  ;;  %v1292_v59 = vld [vmem:[#allocation2 + $0x1960] sm:$0xff] }
 0x41e   : > { %2137 = vmatmul.mubr.f32.vlgmr.msra.gmra.mxu1 %v3097_v40  ;;  %2208 = vmatmul.mubr.f32.vlgmr.msra.gmra.mxu0 %v3099_v46  ;;  %v1029_v60 = vld [vmem:[#allocation2 + $0x1128] sm:$0xff]  ;;  %v1028_v62 = vld [vmem:[#allocation2 + $0x1120] sm:$0xff] }
 0x41f   : > { %2214 = vmatprep.subr.mxu1 %v1117_v8  ;;  %2285 = vmatprep.subr.mxu0 %v1373_v9  ;;  %2641 = vst [vmem:[%s3138_s23 + $0x8] sm:$0xff] %v1786_v10  ;;  %v1285_v61 = vld [vmem:[#allocation2 + $0x1928] sm:$0xff]  ;;  %v1284_v63 = vld [vmem:[#allocation2 + $0x1920] sm:$0xff] }
 0x420   : > { %2215 = vmatpush1.msra.mxu1 %v1116_v28  ;;  %2278 = vmatprep.mubr.f32.mxu1 %v3105_v53  ;;  %v1021_v0 = vld [vmem:[#allocation2 + $0x10e8] sm:$0xff]  ;;  %v1020_v4 = vld [vmem:[#allocation2 + $0x10e0] sm:$0xff] }
 0x421   : > { %2286 = vmatpush1.msra.mxu0 %v1372_v11  ;;  %2349 = vmatprep.mubr.f32.mxu0 %v3107_v55  ;;  %v1277_v1 = vld [vmem:[#allocation2 + $0x18e8] sm:$0xff]  ;;  %v1276_v5 = vld [vmem:[#allocation2 + $0x18e0] sm:$0xff] }
 0x422   : > { %2216 = vmatprep.subr.mxu1 %v1109_v12  ;;  %2287 = vmatprep.subr.mxu0 %v1365_v13  ;;  %v1013_v6 = vld [vmem:[#allocation2 + $0x10a8] sm:$0xff]  ;;  %v1012_v8 = vld [vmem:[#allocation2 + $0x10a0] sm:$0xff] }
 0x423   : > { %2217 = vmatpush1.msra.mxu1 %v1108_v14  ;;  %2288 = vmatpush1.msra.mxu0 %v1364_v15  ;;  %v1269_v7 = vld [vmem:[#allocation2 + $0x18a8] sm:$0xff]  ;;  %v1268_v9 = vld [vmem:[#allocation2 + $0x18a0] sm:$0xff] }
 0x424   : > { %2218 = vmatprep.subr.mxu1 %v1101_v16  ;;  %2289 = vmatprep.subr.mxu0 %v1357_v17  ;;  %v1005_v34 = vld [vmem:[#allocation2 + $0x1068] sm:$0xff]  ;;  %v1004_v10 = vld [vmem:[#allocation2 + $0x1060] sm:$0xff] }
 0x425   : > { %2219 = vmatpush1.msra.mxu1 %v1100_v18  ;;  %2290 = vmatpush1.msra.mxu0 %v1356_v19  ;;  %v1261_v28 = vld [vmem:[#allocation2 + $0x1868] sm:$0xff]  ;;  %v1260_v11 = vld [vmem:[#allocation2 + $0x1860] sm:$0xff] }
 0x426   : > { %2220 = vmatprep.subr.mxu1 %v1093_v20  ;;  %2291 = vmatprep.subr.mxu0 %v1349_v21  ;;  %v997_v12 = vld [vmem:[#allocation2 + $0x1028] sm:$0xff]  ;;  %v996_v14 = vld [vmem:[#allocation2 + $0x1020] sm:$0xff] }
 0x427   : > { %2221 = vmatpush1.msra.mxu1 %v1092_v22  ;;  %2292 = vmatpush1.msra.mxu0 %v1348_v23  ;;  %v1253_v13 = vld [vmem:[#allocation2 + $0x1828] sm:$0xff]  ;;  %v1252_v15 = vld [vmem:[#allocation2 + $0x1820] sm:$0xff] }
 0x428   : > { %2222 = vmatprep.subr.mxu1 %v1085_v24  ;;  %2293 = vmatprep.subr.mxu0 %v1341_v25  ;;  %v1245_v16 = vld [vmem:[#allocation2 + $0x17e8] sm:$0xff]  ;;  %v1244_v18 = vld [vmem:[#allocation2 + $0x17e0] sm:$0xff] }
 0x429   : > { %2223 = vmatpush1.msra.mxu1 %v1084_v26  ;;  %2294 = vmatpush1.msra.mxu0 %v1340_v27  ;;  %v1501_v17 = vld [vmem:[#allocation2 + $0x1fe8] sm:$0xff]  ;;  %v1500_v19 = vld [vmem:[#allocation2 + $0x1fe0] sm:$0xff] }
 0x42a   : > { %2224 = vmatprep.subr.mxu1 %v1077_v30  ;;  %2295 = vmatprep.subr.mxu0 %v1333_v31  ;;  %v1237_v20 = vld [vmem:[#allocation2 + $0x17a8] sm:$0xff]  ;;  %v1236_v22 = vld [vmem:[#allocation2 + $0x17a0] sm:$0xff] }
 0x42b   : > { %2225 = vmatpush1.msra.mxu1 %v1076_v33  ;;  %2296 = vmatpush1.msra.mxu0 %v1332_v35  ;;  %v1493_v21 = vld [vmem:[#allocation2 + $0x1fa8] sm:$0xff]  ;;  %v1492_v23 = vld [vmem:[#allocation2 + $0x1fa0] sm:$0xff] }
 0x42c   : > { %2226 = vmatprep.subr.mxu1 %v1069_v36  ;;  %2297 = vmatprep.subr.mxu0 %v1325_v37  ;;  %v1229_v24 = vld [vmem:[#allocation2 + $0x1768] sm:$0xff]  ;;  %v1228_v26 = vld [vmem:[#allocation2 + $0x1760] sm:$0xff] }
 0x42d   : > { %2227 = vmatpush1.msra.mxu1 %v1068_v39  ;;  %2298 = vmatpush1.msra.mxu0 %v1324_v41  ;;  %v1485_v25 = vld [vmem:[#allocation2 + $0x1f68] sm:$0xff]  ;;  %v1484_v27 = vld [vmem:[#allocation2 + $0x1f60] sm:$0xff] }
 0x42e   : > { %2228 = vmatprep.subr.mxu1 %v1061_v42  ;;  %2299 = vmatprep.subr.mxu0 %v1317_v43  ;;  %v1221_v30 = vld [vmem:[#allocation2 + $0x1728] sm:$0xff]  ;;  %v1220_v33 = vld [vmem:[#allocation2 + $0x1720] sm:$0xff] }
 0x42f   : > { %2229 = vmatpush1.msra.mxu1 %v1060_v45  ;;  %2300 = vmatpush1.msra.mxu0 %v1316_v47  ;;  %v1477_v31 = vld [vmem:[#allocation2 + $0x1f28] sm:$0xff]  ;;  %v1476_v35 = vld [vmem:[#allocation2 + $0x1f20] sm:$0xff] }
 0x430   : > { %2230 = vmatprep.subr.mxu1 %v1053_v48  ;;  %2301 = vmatprep.subr.mxu0 %v1309_v49  ;;  %v1213_v36 = vld [vmem:[#allocation2 + $0x16e8] sm:$0xff]  ;;  %v1212_v39 = vld [vmem:[#allocation2 + $0x16e0] sm:$0xff] }
 0x431   : > { %2231 = vmatpush1.msra.mxu1 %v1052_v29  ;;  %2302 = vmatpush1.msra.mxu0 %v1308_v50  ;;  %v1469_v37 = vld [vmem:[#allocation2 + $0x1ee8] sm:$0xff]  ;;  %v1468_v41 = vld [vmem:[#allocation2 + $0x1ee0] sm:$0xff] }
 0x432   : > { %2232 = vmatprep.subr.mxu1 %v1045_v38  ;;  %2303 = vmatprep.subr.mxu0 %v1301_v44  ;;  %v1205_v42 = vld [vmem:[#allocation2 + $0x16a8] sm:$0xff]  ;;  %v1204_v45 = vld [vmem:[#allocation2 + $0x16a0] sm:$0xff] }
 0x433   : > { %2233 = vmatpush1.msra.mxu1 %v1044_v52  ;;  %2304 = vmatpush1.msra.mxu0 %v1300_v54  ;;  %v1461_v43 = vld [vmem:[#allocation2 + $0x1ea8] sm:$0xff]  ;;  %v1460_v47 = vld [vmem:[#allocation2 + $0x1ea0] sm:$0xff] }
 0x434   : > { %2234 = vmatprep.subr.mxu1 %v1037_v56  ;;  %2305 = vmatprep.subr.mxu0 %v1293_v57  ;;  %v1197_v48 = vld [vmem:[#allocation2 + $0x1668] sm:$0xff]  ;;  %v1196_v29 = vld [vmem:[#allocation2 + $0x1660] sm:$0xff] }
 0x435   : > { %2235 = vmatpush1.msra.mxu1 %v1036_v58  ;;  %2306 = vmatpush1.msra.mxu0 %v1292_v59  ;;  %v1453_v49 = vld [vmem:[#allocation2 + $0x1e68] sm:$0xff]  ;;  %v1452_v50 = vld [vmem:[#allocation2 + $0x1e60] sm:$0xff] }
 0x436   : > { %2236 = vmatprep.subr.mxu1 %v1029_v60  ;;  %2307 = vmatprep.subr.mxu0 %v1285_v61  ;;  %v1189_v38 = vld [vmem:[#allocation2 + $0x1628] sm:$0xff]  ;;  %v1188_v52 = vld [vmem:[#allocation2 + $0x1620] sm:$0xff] }
 0x437   : > { %2237 = vmatpush1.msra.mxu1 %v1028_v62  ;;  %2308 = vmatpush1.msra.mxu0 %v1284_v63  ;;  %v1445_v44 = vld [vmem:[#allocation2 + $0x1e28] sm:$0xff]  ;;  %v1444_v54 = vld [vmem:[#allocation2 + $0x1e20] sm:$0xff] }
 0x438   : > { %2238 = vmatprep.subr.mxu1 %v1021_v0  ;;  %2309 = vmatprep.subr.mxu0 %v1277_v1  ;;  %v1181_v56 = vld [vmem:[#allocation2 + $0x15e8] sm:$0xff]  ;;  %v1180_v58 = vld [vmem:[#allocation2 + $0x15e0] sm:$0xff] }
 0x439   : > { %2239 = vmatpush1.msra.mxu1 %v1020_v4  ;;  %2310 = vmatpush1.msra.mxu0 %v1276_v5  ;;  %v1437_v57 = vld [vmem:[#allocation2 + $0x1de8] sm:$0xff]  ;;  %v1436_v59 = vld [vmem:[#allocation2 + $0x1de0] sm:$0xff] }
 0x43a   : > { %2240 = vmatprep.subr.mxu1 %v1013_v6  ;;  %2311 = vmatprep.subr.mxu0 %v1269_v7  ;;  %v1173_v60 = vld [vmem:[#allocation2 + $0x15a8] sm:$0xff]  ;;  %v1172_v62 = vld [vmem:[#allocation2 + $0x15a0] sm:$0xff] }
 0x43b   : > { %2241 = vmatpush1.msra.mxu1 %v1012_v8  ;;  %2312 = vmatpush1.msra.mxu0 %v1268_v9  ;;  %v1429_v61 = vld [vmem:[#allocation2 + $0x1da8] sm:$0xff]  ;;  %v1428_v63 = vld [vmem:[#allocation2 + $0x1da0] sm:$0xff] }
 0x43c   : > { %2242 = vmatprep.subr.mxu1 %v1005_v34  ;;  %2313 = vmatprep.subr.mxu0 %v1261_v28  ;;  %v1165_v0 = vld [vmem:[#allocation2 + $0x1568] sm:$0xff]  ;;  %v1164_v4 = vld [vmem:[#allocation2 + $0x1560] sm:$0xff] }
 0x43d   : > { %2243 = vmatpush1.msra.mxu1 %v1004_v10  ;;  %2314 = vmatpush1.msra.mxu0 %v1260_v11  ;;  %v1421_v1 = vld [vmem:[#allocation2 + $0x1d68] sm:$0xff]  ;;  %v1420_v5 = vld [vmem:[#allocation2 + $0x1d60] sm:$0xff] }
 0x43e   : > { %2244 = vmatprep.subr.mxu1 %v997_v12  ;;  %2315 = vmatprep.subr.mxu0 %v1253_v13  ;;  %v1157_v6 = vld [vmem:[#allocation2 + $0x1528] sm:$0xff]  ;;  %v1156_v8 = vld [vmem:[#allocation2 + $0x1520] sm:$0xff] }
 0x43f   : > { %2245 = vmatpush1.msra.mxu1 %v996_v14  ;;  %2316 = vmatpush1.msra.mxu0 %v1252_v15  ;;  %v1413_v7 = vld [vmem:[#allocation2 + $0x1d28] sm:$0xff]  ;;  %v1412_v9 = vld [vmem:[#allocation2 + $0x1d20] sm:$0xff] }
 0x440   : > { %2246 = vmatprep.subr.mxu1 %v1245_v16  ;;  %2317 = vmatprep.subr.mxu0 %v1501_v17  ;;  %v1149_v34 = vld [vmem:[#allocation2 + $0x14e8] sm:$0xff]  ;;  %v1148_v10 = vld [vmem:[#allocation2 + $0x14e0] sm:$0xff] }
 0x441   : > { %2247 = vmatpush2.msra.mxu1 %v1244_v18  ;;  %2318 = vmatpush2.msra.mxu0 %v1500_v19  ;;  %v1405_v28 = vld [vmem:[#allocation2 + $0x1ce8] sm:$0xff]  ;;  %v1404_v11 = vld [vmem:[#allocation2 + $0x1ce0] sm:$0xff] }
 0x442   : > { %2248 = vmatprep.subr.mxu1 %v1237_v20  ;;  %2319 = vmatprep.subr.mxu0 %v1493_v21  ;;  %v1141_v12 = vld [vmem:[#allocation2 + $0x14a8] sm:$0xff]  ;;  %v1140_v14 = vld [vmem:[#allocation2 + $0x14a0] sm:$0xff] }
 0x443   : > { %2249 = vmatpush2.msra.mxu1 %v1236_v22  ;;  %2320 = vmatpush2.msra.mxu0 %v1492_v23  ;;  %v1397_v13 = vld [vmem:[#allocation2 + $0x1ca8] sm:$0xff]  ;;  %v1396_v15 = vld [vmem:[#allocation2 + $0x1ca0] sm:$0xff] }
 0x444   : > { %2250 = vmatprep.subr.mxu1 %v1229_v24  ;;  %2321 = vmatprep.subr.mxu0 %v1485_v25  ;;  %v1133_v16 = vld [vmem:[#allocation2 + $0x1468] sm:$0xff]  ;;  %v1132_v18 = vld [vmem:[#allocation2 + $0x1460] sm:$0xff]  ;;  %v607_v24 = vld [vmem:[#allocation2 + $0x3f8] sm:$0xff] }
 0x445   : > { %2251 = vmatpush2.msra.mxu1 %v1228_v26  ;;  %2322 = vmatpush2.msra.mxu0 %v1484_v27  ;;  %v1389_v17 = vld [vmem:[#allocation2 + $0x1c68] sm:$0xff]  ;;  %v1388_v19 = vld [vmem:[#allocation2 + $0x1c60] sm:$0xff]  ;;  %v863_v25 = vld [vmem:[#allocation2 + $0xbf8] sm:$0xff] }
 0x446   : > { %2252 = vmatprep.subr.mxu1 %v1221_v30  ;;  %2323 = vmatprep.subr.mxu0 %v1477_v31  ;;  %v1125_v20 = vld [vmem:[#allocation2 + $0x1428] sm:$0xff]  ;;  %v1124_v22 = vld [vmem:[#allocation2 + $0x1420] sm:$0xff]  ;;  %v606_v26 = vld [vmem:[#allocation2 + $0x3f0] sm:$0xff] }
 0x447   : > { %2253 = vmatpush2.msra.mxu1 %v1220_v33  ;;  %2324 = vmatpush2.msra.mxu0 %v1476_v35  ;;  %v1381_v21 = vld [vmem:[#allocation2 + $0x1c28] sm:$0xff]  ;;  %v1380_v23 = vld [vmem:[#allocation2 + $0x1c20] sm:$0xff]  ;;  %v862_v27 = vld [vmem:[#allocation2 + $0xbf0] sm:$0xff] }
 0x448   : > { %2254 = vmatprep.subr.mxu1 %v1213_v36  ;;  %2325 = vmatprep.subr.mxu0 %v1469_v37  ;;  %v599_v30 = vld [vmem:[#allocation2 + $0x3b8] sm:$0xff]  ;;  %v598_v33 = vld [vmem:[#allocation2 + $0x3b0] sm:$0xff] }
 0x449   : > { %2255 = vmatpush2.msra.mxu1 %v1212_v39  ;;  %2326 = vmatpush2.msra.mxu0 %v1468_v41  ;;  %v855_v31 = vld [vmem:[#allocation2 + $0xbb8] sm:$0xff]  ;;  %v854_v35 = vld [vmem:[#allocation2 + $0xbb0] sm:$0xff] }
 0x44a   : > { %2256 = vmatprep.subr.mxu1 %v1205_v42  ;;  %2327 = vmatprep.subr.mxu0 %v1461_v43  ;;  %v591_v36 = vld [vmem:[#allocation2 + $0x378] sm:$0xff]  ;;  %v590_v39 = vld [vmem:[#allocation2 + $0x370] sm:$0xff] }
 0x44b   : > { %2257 = vmatpush2.msra.mxu1 %v1204_v45  ;;  %2328 = vmatpush2.msra.mxu0 %v1460_v47  ;;  %v847_v37 = vld [vmem:[#allocation2 + $0xb78] sm:$0xff]  ;;  %v846_v41 = vld [vmem:[#allocation2 + $0xb70] sm:$0xff] }
 0x44c   : > { %2258 = vmatprep.subr.mxu1 %v1197_v48  ;;  %2329 = vmatprep.subr.mxu0 %v1453_v49  ;;  %v583_v42 = vld [vmem:[#allocation2 + $0x338] sm:$0xff]  ;;  %v582_v45 = vld [vmem:[#allocation2 + $0x330] sm:$0xff] }
 0x44d   : > { %2259 = vmatpush2.msra.mxu1 %v1196_v29  ;;  %2330 = vmatpush2.msra.mxu0 %v1452_v50  ;;  %v839_v43 = vld [vmem:[#allocation2 + $0xb38] sm:$0xff]  ;;  %v838_v47 = vld [vmem:[#allocation2 + $0xb30] sm:$0xff] }
 0x44e   : > { %2260 = vmatprep.subr.mxu1 %v1189_v38  ;;  %2331 = vmatprep.subr.mxu0 %v1445_v44  ;;  %v831_v48 = vld [vmem:[#allocation2 + $0xaf8] sm:$0xff]  ;;  %v830_v49 = vld [vmem:[#allocation2 + $0xaf0] sm:$0xff] }
 0x44f   : > { %2261 = vmatpush2.msra.mxu1 %v1188_v52  ;;  %2332 = vmatpush2.msra.mxu0 %v1444_v54  ;;  %v567_v29 = vld [vmem:[#allocation2 + $0x2b8] sm:$0xff]  ;;  %v566_v38 = vld [vmem:[#allocation2 + $0x2b0] sm:$0xff] }
 0x450   : > { %2262 = vmatprep.subr.mxu1 %v1181_v56  ;;  %2333 = vmatprep.subr.mxu0 %v1437_v57  ;;  %v823_v50 = vld [vmem:[#allocation2 + $0xab8] sm:$0xff]  ;;  %v822_v44 = vld [vmem:[#allocation2 + $0xab0] sm:$0xff] }
 0x451   : > { %2263 = vmatpush2.msra.mxu1 %v1180_v58  ;;  %2334 = vmatpush2.msra.mxu0 %v1436_v59  ;;  %v559_v52 = vld [vmem:[#allocation2 + $0x278] sm:$0xff]  ;;  %v558_v56 = vld [vmem:[#allocation2 + $0x270] sm:$0xff] }
 0x452   : > { %2264 = vmatprep.subr.mxu1 %v1173_v60  ;;  %2335 = vmatprep.subr.mxu0 %v1429_v61  ;;  %v815_v54 = vld [vmem:[#allocation2 + $0xa78] sm:$0xff]  ;;  %v814_v57 = vld [vmem:[#allocation2 + $0xa70] sm:$0xff] }
 0x453   : > { %2265 = vmatpush2.msra.mxu1 %v1172_v62  ;;  %2336 = vmatpush2.msra.mxu0 %v1428_v63  ;;  %v551_v58 = vld [vmem:[#allocation2 + $0x238] sm:$0xff]  ;;  %v550_v60 = vld [vmem:[#allocation2 + $0x230] sm:$0xff] }
 0x454   : > { %2266 = vmatprep.subr.mxu1 %v1165_v0  ;;  %2337 = vmatprep.subr.mxu0 %v1421_v1  ;;  %v807_v59 = vld [vmem:[#allocation2 + $0xa38] sm:$0xff]  ;;  %v806_v61 = vld [vmem:[#allocation2 + $0xa30] sm:$0xff] }
 0x455   : > { %2267 = vmatpush2.msra.mxu1 %v1164_v4  ;;  %2338 = vmatpush2.msra.mxu0 %v1420_v5  ;;  %v543_v62 = vld [vmem:[#allocation2 + $0x1f8] sm:$0xff]  ;;  %v542_v0 = vld [vmem:[#allocation2 + $0x1f0] sm:$0xff] }
 0x456   : > { %2268 = vmatprep.subr.mxu1 %v1157_v6  ;;  %2339 = vmatprep.subr.mxu0 %v1413_v7  ;;  %v799_v63 = vld [vmem:[#allocation2 + $0x9f8] sm:$0xff]  ;;  %v798_v1 = vld [vmem:[#allocation2 + $0x9f0] sm:$0xff] }
 0x457   : > { %2269 = vmatpush2.msra.mxu1 %v1156_v8  ;;  %2340 = vmatpush2.msra.mxu0 %v1412_v9  ;;  %v535_v4 = vld [vmem:[#allocation2 + $0x1b8] sm:$0xff]  ;;  %v534_v6 = vld [vmem:[#allocation2 + $0x1b0] sm:$0xff] }
 0x458   : > { %2270 = vmatprep.subr.mxu1 %v1149_v34  ;;  %2341 = vmatprep.subr.mxu0 %v1405_v28  ;;  %v791_v5 = vld [vmem:[#allocation2 + $0x9b8] sm:$0xff]  ;;  %v790_v7 = vld [vmem:[#allocation2 + $0x9b0] sm:$0xff] }
 0x459   : > { %2271 = vmatpush2.msra.mxu1 %v1148_v10  ;;  %2342 = vmatpush2.msra.mxu0 %v1404_v11  ;;  %v527_v8 = vld [vmem:[#allocation2 + $0x178] sm:$0xff]  ;;  %v526_v34 = vld [vmem:[#allocation2 + $0x170] sm:$0xff] }
 0x45a   : > { %2272 = vmatprep.subr.mxu1 %v1141_v12  ;;  %2343 = vmatprep.subr.mxu0 %v1397_v13  ;;  %v783_v9 = vld [vmem:[#allocation2 + $0x978] sm:$0xff]  ;;  %v782_v28 = vld [vmem:[#allocation2 + $0x970] sm:$0xff] }
 0x45b   : > { %2273 = vmatpush2.msra.mxu1 %v1140_v14  ;;  %2344 = vmatpush2.msra.mxu0 %v1396_v15  ;;  %v519_v10 = vld [vmem:[#allocation2 + $0x138] sm:$0xff]  ;;  %v518_v12 = vld [vmem:[#allocation2 + $0x130] sm:$0xff] }
 0x45c   : > { %2274 = vmatprep.subr.mxu1 %v1133_v16  ;;  %2345 = vmatprep.subr.mxu0 %v1389_v17  ;;  %v775_v11 = vld [vmem:[#allocation2 + $0x938] sm:$0xff]  ;;  %v774_v13 = vld [vmem:[#allocation2 + $0x930] sm:$0xff] }
 0x45d   : > { %2275 = vmatpush2.msra.mxu1 %v1132_v18  ;;  %2346 = vmatpush2.msra.mxu0 %v1388_v19  ;;  %v511_v14 = vld [vmem:[#allocation2 + $0xf8] sm:$0xff]  ;;  %v510_v16 = vld [vmem:[#allocation2 + $0xf0] sm:$0xff] }
 0x45e   : > { %2276 = vmatprep.subr.mxu1 %v1125_v20  ;;  %2347 = vmatprep.subr.mxu0 %v1381_v21  ;;  %v767_v15 = vld [vmem:[#allocation2 + $0x8f8] sm:$0xff]  ;;  %v766_v17 = vld [vmem:[#allocation2 + $0x8f0] sm:$0xff] }
 0x45f   : > { %2277 = vmatpush2.msra.mxu1 %v1124_v22  ;;  %2348 = vmatpush2.msra.mxu0 %v1380_v23  ;;  %v503_v18 = vld [vmem:[#allocation2 + $0xb8] sm:$0xff]  ;;  %v502_v20 = vld [vmem:[#allocation2 + $0xb0] sm:$0xff] }
 0x460   : > { %2279 = vmatmul.mubr.f32.vlgmr.msra.gmra.mxu1 %v3112_v2  ;;  %2350 = vmatmul.mubr.f32.vlgmr.msra.gmra.mxu0 %v3115_v3  ;;  %v759_v19 = vld [vmem:[#allocation2 + $0x8b8] sm:$0xff]  ;;  %v758_v21 = vld [vmem:[#allocation2 + $0x8b0] sm:$0xff] }
 0x461   : > { %2356 = vmatprep.subr.mxu1 %v607_v24  ;;  %2427 = vmatprep.subr.mxu0 %v863_v25  ;;  %v495_v22 = vld [vmem:[#allocation2 + $0x78] sm:$0xff]  ;;  %v494_v24 = vld [vmem:[#allocation2 + $0x70] sm:$0xff] }
 0x462   : > { %2357 = vmatpush1.msra.mxu1 %v606_v26  ;;  %2420 = vmatprep.mubr.f32.mxu1 %v3093_v32  ;;  %v575_v32 = vld [vmem:[#allocation2 + $0x2f8] sm:$0xff]  ;;  %v750_v25 = vld [vmem:[#allocation2 + $0x870] sm:$0xff] }
 0x463   : > { %2428 = vmatpush1.msra.mxu0 %v862_v27  ;;  %2491 = vmatprep.mubr.f32.mxu0 %v3095_v51  ;;  %v574_v51 = vld [vmem:[#allocation2 + $0x2f0] sm:$0xff]  ;;  %v751_v23 = vld [vmem:[#allocation2 + $0x878] sm:$0xff] }
 0x464   : > { %2358 = vmatprep.subr.mxu1 %v599_v30  ;;  %2429 = vmatprep.subr.mxu0 %v855_v31  ;;  %v487_v26 = vld [vmem:[#allocation2 + $0x38] sm:$0xff]  ;;  %v486_v30 = vld [vmem:[#allocation2 + $0x30] sm:$0xff] }
 0x465   : > { %2359 = vmatpush1.msra.mxu1 %v598_v33  ;;  %2430 = vmatpush1.msra.mxu0 %v854_v35  ;;  %v743_v27 = vld [vmem:[#allocation2 + $0x838] sm:$0xff]  ;;  %v742_v31 = vld [vmem:[#allocation2 + $0x830] sm:$0xff] }
 0x466   : > { %2360 = vmatprep.subr.mxu1 %v591_v36  ;;  %2431 = vmatprep.subr.mxu0 %v847_v37  ;;  %v735_v33 = vld [vmem:[#allocation2 + $0x7f8] sm:$0xff]  ;;  %v734_v36 = vld [vmem:[#allocation2 + $0x7f0] sm:$0xff] }
 0x467   : > { %2361 = vmatpush1.msra.mxu1 %v590_v39  ;;  %2432 = vmatpush1.msra.mxu0 %v846_v41  ;;  %v991_v35 = vld [vmem:[#allocation2 + $0xff8] sm:$0xff]  ;;  %v990_v37 = vld [vmem:[#allocation2 + $0xff0] sm:$0xff] }
 0x468   : > { %2362 = vmatprep.subr.mxu1 %v583_v42  ;;  %2433 = vmatprep.subr.mxu0 %v839_v43  ;;  %v727_v39 = vld [vmem:[#allocation2 + $0x7b8] sm:$0xff]  ;;  %v726_v42 = vld [vmem:[#allocation2 + $0x7b0] sm:$0xff] }
 0x469   : > { %2363 = vmatpush1.msra.mxu1 %v582_v45  ;;  %2434 = vmatpush1.msra.mxu0 %v838_v47  ;;  %v983_v41 = vld [vmem:[#allocation2 + $0xfb8] sm:$0xff]  ;;  %v982_v43 = vld [vmem:[#allocation2 + $0xfb0] sm:$0xff] }
 0x46a   : > { %2364 = vmatprep.subr.mxu1 %v575_v32  ;;  %2435 = vmatprep.subr.mxu0 %v831_v48  ;;  %v719_v45 = vld [vmem:[#allocation2 + $0x778] sm:$0xff]  ;;  %v718_v32 = vld [vmem:[#allocation2 + $0x770] sm:$0xff] }
 0x46b   : > { %2365 = vmatpush1.msra.mxu1 %v574_v51  ;;  %2436 = vmatpush1.msra.mxu0 %v830_v49  ;;  %v975_v47 = vld [vmem:[#allocation2 + $0xf78] sm:$0xff]  ;;  %v974_v48 = vld [vmem:[#allocation2 + $0xf70] sm:$0xff] }
 0x46c   : > { %2366 = vmatprep.subr.mxu1 %v567_v29  ;;  %2437 = vmatprep.subr.mxu0 %v823_v50  ;;  %v711_v51 = vld [vmem:[#allocation2 + $0x738] sm:$0xff]  ;;  %v710_v29 = vld [vmem:[#allocation2 + $0x730] sm:$0xff] }
 0x46d   : > { %2367 = vmatpush1.msra.mxu1 %v566_v38  ;;  %2438 = vmatpush1.msra.mxu0 %v822_v44  ;;  %v967_v49 = vld [vmem:[#allocation2 + $0xf38] sm:$0xff]  ;;  %v966_v50 = vld [vmem:[#allocation2 + $0xf30] sm:$0xff] }
 0x46e   : > { %2368 = vmatprep.subr.mxu1 %v559_v52  ;;  %2439 = vmatprep.subr.mxu0 %v815_v54  ;;  %v703_v38 = vld [vmem:[#allocation2 + $0x6f8] sm:$0xff]  ;;  %v702_v52 = vld [vmem:[#allocation2 + $0x6f0] sm:$0xff] }
 0x46f   : > { %2369 = vmatpush1.msra.mxu1 %v558_v56  ;;  %2440 = vmatpush1.msra.mxu0 %v814_v57  ;;  %v959_v44 = vld [vmem:[#allocation2 + $0xef8] sm:$0xff]  ;;  %v958_v54 = vld [vmem:[#allocation2 + $0xef0] sm:$0xff] }
 0x470   : > { %2370 = vmatprep.subr.mxu1 %v551_v58  ;;  %2441 = vmatprep.subr.mxu0 %v807_v59  ;;  %v695_v56 = vld [vmem:[#allocation2 + $0x6b8] sm:$0xff]  ;;  %v694_v58 = vld [vmem:[#allocation2 + $0x6b0] sm:$0xff] }
 0x471   : > { %2371 = vmatpush1.msra.mxu1 %v550_v60  ;;  %2442 = vmatpush1.msra.mxu0 %v806_v61  ;;  %v951_v57 = vld [vmem:[#allocation2 + $0xeb8] sm:$0xff]  ;;  %v950_v59 = vld [vmem:[#allocation2 + $0xeb0] sm:$0xff] }
 0x472   : > { %2372 = vmatprep.subr.mxu1 %v543_v62  ;;  %2443 = vmatprep.subr.mxu0 %v799_v63  ;;  %v687_v60 = vld [vmem:[#allocation2 + $0x678] sm:$0xff]  ;;  %v686_v62 = vld [vmem:[#allocation2 + $0x670] sm:$0xff] }
 0x473   : > { %2373 = vmatpush1.msra.mxu1 %v542_v0  ;;  %2444 = vmatpush1.msra.mxu0 %v798_v1  ;;  %v943_v61 = vld [vmem:[#allocation2 + $0xe78] sm:$0xff]  ;;  %v942_v63 = vld [vmem:[#allocation2 + $0xe70] sm:$0xff] }
 0x474   : > { %2374 = vmatprep.subr.mxu1 %v535_v4  ;;  %2445 = vmatprep.subr.mxu0 %v791_v5  ;;  %v679_v0 = vld [vmem:[#allocation2 + $0x638] sm:$0xff]  ;;  %v678_v4 = vld [vmem:[#allocation2 + $0x630] sm:$0xff] }
 0x475   : > { %2375 = vmatpush1.msra.mxu1 %v534_v6  ;;  %2446 = vmatpush1.msra.mxu0 %v790_v7  ;;  %v935_v1 = vld [vmem:[#allocation2 + $0xe38] sm:$0xff]  ;;  %v934_v5 = vld [vmem:[#allocation2 + $0xe30] sm:$0xff] }
 0x476   : > { %2376 = vmatprep.subr.mxu1 %v527_v8  ;;  %2447 = vmatprep.subr.mxu0 %v783_v9  ;;  %v671_v6 = vld [vmem:[#allocation2 + $0x5f8] sm:$0xff]  ;;  %v670_v8 = vld [vmem:[#allocation2 + $0x5f0] sm:$0xff] }
 0x477   : > { %2377 = vmatpush1.msra.mxu1 %v526_v34  ;;  %2448 = vmatpush1.msra.mxu0 %v782_v28  ;;  %v927_v7 = vld [vmem:[#allocation2 + $0xdf8] sm:$0xff]  ;;  %v926_v9 = vld [vmem:[#allocation2 + $0xdf0] sm:$0xff] }
 0x478   : > { %2378 = vmatprep.subr.mxu1 %v519_v10  ;;  %2449 = vmatprep.subr.mxu0 %v775_v11  ;;  %v663_v34 = vld [vmem:[#allocation2 + $0x5b8] sm:$0xff]  ;;  %v662_v10 = vld [vmem:[#allocation2 + $0x5b0] sm:$0xff] }
 0x479   : > { %2379 = vmatpush1.msra.mxu1 %v518_v12  ;;  %2450 = vmatpush1.msra.mxu0 %v774_v13  ;;  %v919_v28 = vld [vmem:[#allocation2 + $0xdb8] sm:$0xff]  ;;  %v918_v11 = vld [vmem:[#allocation2 + $0xdb0] sm:$0xff] }
 0x47a   : > { %2380 = vmatprep.subr.mxu1 %v511_v14  ;;  %2451 = vmatprep.subr.mxu0 %v767_v15  ;;  %v655_v12 = vld [vmem:[#allocation2 + $0x578] sm:$0xff]  ;;  %v654_v14 = vld [vmem:[#allocation2 + $0x570] sm:$0xff] }
 0x47b   : > { %2381 = vmatpush1.msra.mxu1 %v510_v16  ;;  %2452 = vmatpush1.msra.mxu0 %v766_v17  ;;  %v911_v13 = vld [vmem:[#allocation2 + $0xd78] sm:$0xff]  ;;  %v910_v15 = vld [vmem:[#allocation2 + $0xd70] sm:$0xff] }
 0x47c   : > { %2382 = vmatprep.subr.mxu1 %v503_v18  ;;  %2453 = vmatprep.subr.mxu0 %v759_v19  ;;  %v647_v16 = vld [vmem:[#allocation2 + $0x538] sm:$0xff]  ;;  %v1854_v18 = vpop.f32.mrf.mxu1  ;;  %v1925_v19 = vpop.f32.mrf.mxu0 }
 0x47d   : > { %2383 = vmatpush1.msra.mxu1 %v502_v20  ;;  %2454 = vmatpush1.msra.mxu0 %v758_v21  ;;  %v903_v17 = vld [vmem:[#allocation2 + $0xd38] sm:$0xff]  ;;  %v646_v20 = vld [vmem:[#allocation2 + $0x530] sm:$0xff] }
 0x47e   : > { %2384 = vmatprep.subr.mxu1 %v495_v22  ;;  %2455 = vmatprep.subr.mxu0 %v751_v23  ;;  %v902_v21 = vld [vmem:[#allocation2 + $0xd30] sm:$0xff]  ;;  %v639_v22 = vld [vmem:[#allocation2 + $0x4f8] sm:$0xff] }
 0x47f   : > { %2385 = vmatpush1.msra.mxu1 %v494_v24  ;;  %2456 = vmatpush1.msra.mxu0 %v750_v25  ;;  %v895_v23 = vld [vmem:[#allocation2 + $0xcf8] sm:$0xff]  ;;  %v638_v24 = vld [vmem:[#allocation2 + $0x4f0] sm:$0xff] }
 0x480   : > { %2386 = vmatprep.subr.mxu1 %v487_v26  ;;  %2457 = vmatprep.subr.mxu0 %v743_v27  ;;  %v894_v25 = vld [vmem:[#allocation2 + $0xcf0] sm:$0xff]  ;;  %v631_v26 = vld [vmem:[#allocation2 + $0x4b8] sm:$0xff] }
 0x481   : > { %2387 = vmatpush1.msra.mxu1 %v486_v30  ;;  %2458 = vmatpush1.msra.mxu0 %v742_v31  ;;  %v887_v27 = vld [vmem:[#allocation2 + $0xcb8] sm:$0xff]  ;;  %v1856_v30 = vpop.f32.mrf.mxu1  ;;  %v1927_v31 = vpop.f32.mrf.mxu0 }
 0x482   : > { %2388 = vmatprep.subr.mxu1 %v735_v33  ;;  %2459 = vmatprep.subr.mxu0 %v991_v35  ;;  %v630_v33 = vld [vmem:[#allocation2 + $0x4b0] sm:$0xff] }
 0x483   : > { %2389 = vmatpush2.msra.mxu1 %v734_v36  ;;  %2460 = vmatpush2.msra.mxu0 %v990_v37  ;;  %v886_v35 = vld [vmem:[#allocation2 + $0xcb0] sm:$0xff]  ;;  %v1926_v36 = vadd.f32 %v1925_v19, %v1854_v18  ;;  %v623_v37 = vld [vmem:[#allocation2 + $0x478] sm:$0xff] }
 0x484   : > { %2390 = vmatprep.subr.mxu1 %v727_v39  ;;  %2461 = vmatprep.subr.mxu0 %v983_v41  ;;  %v879_v39 = vld [vmem:[#allocation2 + $0xc78] sm:$0xff]  ;;  %v622_v41 = vld [vmem:[#allocation2 + $0x470] sm:$0xff] }
 0x485   : > { %2391 = vmatpush2.msra.mxu1 %v726_v42  ;;  %2462 = vmatpush2.msra.mxu0 %v982_v43  ;;  %v878_v42 = vld [vmem:[#allocation2 + $0xc70] sm:$0xff] }
 0x486   : > { %2392 = vmatprep.subr.mxu1 %v719_v45  ;;  %2463 = vmatprep.subr.mxu0 %v975_v47  ;;  %v1928_v47 = vadd.f32 %v1927_v31, %v1856_v30  ;;  %v1062_v18 = vld [vmem:[#allocation2 + $0x1230] sm:$0xff]  ;;  %v1039_v30 = vld [vmem:[#allocation2 + $0x1178] sm:$0xff] }
 0x487   : > { %2393 = vmatpush2.msra.mxu1 %v718_v32  ;;  %2464 = vmatpush2.msra.mxu0 %v974_v48  ;;  %v615_v32 = vld [vmem:[#allocation2 + $0x438] sm:$0xff]  ;;  %v1318_v19 = vld [vmem:[#allocation2 + $0x1a30] sm:$0xff] }
 0x488   : > { %2394 = vmatprep.subr.mxu1 %v711_v51  ;;  %2465 = vmatprep.subr.mxu0 %v967_v49  ;;  %v871_v48 = vld [vmem:[#allocation2 + $0xc38] sm:$0xff]  ;;  %v614_v49 = vld [vmem:[#allocation2 + $0x430] sm:$0xff] }
 0x489   : > { %2395 = vmatpush2.msra.mxu1 %v710_v29  ;;  %2466 = vmatpush2.msra.mxu0 %v966_v50  ;;  %v870_v29 = vld [vmem:[#allocation2 + $0xc30] sm:$0xff]  ;;  %v1295_v31 = vld [vmem:[#allocation2 + $0x1978] sm:$0xff] }
 0x48a   : > { %2396 = vmatprep.subr.mxu1 %v703_v38  ;;  %2467 = vmatprep.subr.mxu0 %v959_v44 }
 0x48b   : > { %2397 = vmatpush2.msra.mxu1 %v702_v52  ;;  %2468 = vmatpush2.msra.mxu0 %v958_v54  ;;  %v1119_v52 = vld [vmem:[#allocation2 + $0x13f8] sm:$0xff] }
 0x48c   : > { %2398 = vmatprep.subr.mxu1 %v695_v56  ;;  %2469 = vmatprep.subr.mxu0 %v951_v57  ;;  %v1375_v54 = vld [vmem:[#allocation2 + $0x1bf8] sm:$0xff]  ;;  %v1118_v57 = vld [vmem:[#allocation2 + $0x13f0] sm:$0xff] }
 0x48d   : > { %2399 = vmatpush2.msra.mxu1 %v694_v58  ;;  %2470 = vmatpush2.msra.mxu0 %v950_v59  ;;  %v1374_v59 = vld [vmem:[#allocation2 + $0x1bf0] sm:$0xff] }
 0x48e   : > { %2400 = vmatprep.subr.mxu1 %v687_v60  ;;  %2471 = vmatprep.subr.mxu0 %v943_v61  ;;  %v1111_v60 = vld [vmem:[#allocation2 + $0x13b8] sm:$0xff] }
 0x48f   : > { %2401 = vmatpush2.msra.mxu1 %v686_v62  ;;  %2472 = vmatpush2.msra.mxu0 %v942_v63  ;;  %v1367_v61 = vld [vmem:[#allocation2 + $0x1bb8] sm:$0xff]  ;;  %v1110_v62 = vld [vmem:[#allocation2 + $0x13b0] sm:$0xff] }
 0x490   : > { %2402 = vmatprep.subr.mxu1 %v679_v0  ;;  %2473 = vmatprep.subr.mxu0 %v935_v1  ;;  %v1366_v63 = vld [vmem:[#allocation2 + $0x1bb0] sm:$0xff]  ;;  %v1103_v0 = vld [vmem:[#allocation2 + $0x1378] sm:$0xff] }
 0x491   : > { %2403 = vmatpush2.msra.mxu1 %v678_v4  ;;  %2474 = vmatpush2.msra.mxu0 %v934_v5  ;;  %v1359_v1 = vld [vmem:[#allocation2 + $0x1b78] sm:$0xff] }
 0x492   : > { %2404 = vmatprep.subr.mxu1 %v671_v6  ;;  %2475 = vmatprep.subr.mxu0 %v927_v7  ;;  %v1095_v4 = vld [vmem:[#allocation2 + $0x1338] sm:$0xff]  ;;  %v1094_v6 = vld [vmem:[#allocation2 + $0x1330] sm:$0xff] }
 0x493   : > { %2405 = vmatpush2.msra.mxu1 %v670_v8  ;;  %2476 = vmatpush2.msra.mxu0 %v926_v9  ;;  %v1351_v5 = vld [vmem:[#allocation2 + $0x1b38] sm:$0xff]  ;;  %v1350_v7 = vld [vmem:[#allocation2 + $0x1b30] sm:$0xff] }
 0x494   : > { %2406 = vmatprep.subr.mxu1 %v663_v34  ;;  %2477 = vmatprep.subr.mxu0 %v919_v28  ;;  %v1343_v8 = vld [vmem:[#allocation2 + $0x1af8] sm:$0xff]  ;;  %v1342_v9 = vld [vmem:[#allocation2 + $0x1af0] sm:$0xff] }
 0x495   : > { %2407 = vmatpush2.msra.mxu1 %v662_v10  ;;  %2478 = vmatpush2.msra.mxu0 %v918_v11  ;;  %v1079_v34 = vld [vmem:[#allocation2 + $0x12b8] sm:$0xff]  ;;  %v1078_v10 = vld [vmem:[#allocation2 + $0x12b0] sm:$0xff] }
 0x496   : > { %2408 = vmatprep.subr.mxu1 %v655_v12  ;;  %2479 = vmatprep.subr.mxu0 %v911_v13  ;;  %v1335_v28 = vld [vmem:[#allocation2 + $0x1ab8] sm:$0xff]  ;;  %v1334_v11 = vld [vmem:[#allocation2 + $0x1ab0] sm:$0xff] }
 0x497   : > { %2409 = vmatpush2.msra.mxu1 %v654_v14  ;;  %2480 = vmatpush2.msra.mxu0 %v910_v15  ;;  %v1071_v12 = vld [vmem:[#allocation2 + $0x1278] sm:$0xff]  ;;  %v1070_v14 = vld [vmem:[#allocation2 + $0x1270] sm:$0xff] }
 0x498   : > { %2410 = vmatprep.subr.mxu1 %v647_v16  ;;  %2481 = vmatprep.subr.mxu0 %v903_v17  ;;  %v1327_v13 = vld [vmem:[#allocation2 + $0x1a78] sm:$0xff]  ;;  %v1326_v15 = vld [vmem:[#allocation2 + $0x1a70] sm:$0xff] }
 0x499   : > { %2411 = vmatpush2.msra.mxu1 %v646_v20  ;;  %2482 = vmatpush2.msra.mxu0 %v902_v21  ;;  %v1063_v16 = vld [vmem:[#allocation2 + $0x1238] sm:$0xff] }
 0x49a   : > { %2412 = vmatprep.subr.mxu1 %v639_v22  ;;  %2483 = vmatprep.subr.mxu0 %v895_v23  ;;  %v1319_v17 = vld [vmem:[#allocation2 + $0x1a38] sm:$0xff]  ;;  %v1054_v22 = vld [vmem:[#allocation2 + $0x11f0] sm:$0xff] }
 0x49b   : > { %2413 = vmatpush2.msra.mxu1 %v638_v24  ;;  %2484 = vmatpush2.msra.mxu0 %v894_v25  ;;  %v1055_v20 = vld [vmem:[#allocation2 + $0x11f8] sm:$0xff]  ;;  %v1310_v23 = vld [vmem:[#allocation2 + $0x19f0] sm:$0xff] }
 0x49c   : > { %2414 = vmatprep.subr.mxu1 %v631_v26  ;;  %2485 = vmatprep.subr.mxu0 %v887_v27  ;;  %v1996_v43 = vpop.f32.mrf.mxu1  ;;  %v2067_v45 = vpop.f32.mrf.mxu0  ;;  %v1311_v21 = vld [vmem:[#allocation2 + $0x19f8] sm:$0xff]  ;;  %v1046_v26 = vld [vmem:[#allocation2 + $0x11b0] sm:$0xff] }
 0x49d   : > { %2415 = vmatpush2.msra.mxu1 %v630_v33  ;;  %2486 = vmatpush2.msra.mxu0 %v886_v35  ;;  %v1997_v51 = vadd.f32 %v1996_v43, %v1926_v36  ;;  %v1047_v24 = vld [vmem:[#allocation2 + $0x11b8] sm:$0xff]  ;;  %v1302_v27 = vld [vmem:[#allocation2 + $0x19b0] sm:$0xff] }
 0x49e   : > { %2416 = vmatprep.subr.mxu1 %v623_v37  ;;  %2487 = vmatprep.subr.mxu0 %v879_v39  ;;  %v1998_v50 = vpop.f32.mrf.mxu1  ;;  %v2069_v56 = vpop.f32.mrf.mxu0  ;;  %v1303_v25 = vld [vmem:[#allocation2 + $0x19b8] sm:$0xff]  ;;  %v1038_v33 = vld [vmem:[#allocation2 + $0x1170] sm:$0xff] }
 0x49f   : > { %2417 = vmatpush2.msra.mxu1 %v622_v41  ;;  %2488 = vmatpush2.msra.mxu0 %v878_v42  ;;  %v2068_v38 = vadd.f32 %v2067_v45, %v1997_v51  ;;  %v1999_v44 = vadd.f32 %v1998_v50, %v1928_v47  ;;  %v1294_v35 = vld [vmem:[#allocation2 + $0x1970] sm:$0xff]  ;;  %v1031_v36 = vld [vmem:[#allocation2 + $0x1138] sm:$0xff] }
 0x4a0   : > { %2418 = vmatprep.subr.mxu1 %v615_v32  ;;  %2489 = vmatprep.subr.mxu0 %v871_v48  ;;  %v1287_v37 = vld [vmem:[#allocation2 + $0x1938] sm:$0xff]  ;;  %v1030_v39 = vld [vmem:[#allocation2 + $0x1130] sm:$0xff] }
 0x4a1   : > { %2419 = vmatpush2.msra.mxu1 %v614_v49  ;;  %2490 = vmatpush2.msra.mxu0 %v870_v29  ;;  %2642 = vst [vmem:[%s3138_s23 + $0x10] sm:$0xff] %v2068_v38  ;;  %v2070_v58 = vadd.f32 %v2069_v56, %v1999_v44  ;;  %v1286_v41 = vld [vmem:[#allocation2 + $0x1930] sm:$0xff]  ;;  %v1023_v42 = vld [vmem:[#allocation2 + $0x10f8] sm:$0xff] }
 0x4a2   : > { %2421 = vmatmul.mubr.f32.vlgmr.msra.gmra.mxu1 %v3097_v40  ;;  %2492 = vmatmul.mubr.f32.vlgmr.msra.gmra.mxu0 %v3099_v46  ;;  %v1102_v40 = vld [vmem:[#allocation2 + $0x1370] sm:$0xff]  ;;  %v1279_v43 = vld [vmem:[#allocation2 + $0x18f8] sm:$0xff] }
 0x4a3   : > { %2498 = vmatprep.subr.mxu1 %v1119_v52  ;;  %2569 = vmatprep.subr.mxu0 %v1375_v54  ;;  %2643 = vst [vmem:[%s3138_s23 + $0x18] sm:$0xff] %v2070_v58  ;;  %v1358_v46 = vld [vmem:[#allocation2 + $0x1b70] sm:$0xff]  ;;  %v1015_v32 = vld [vmem:[#allocation2 + $0x10b8] sm:$0xff] }
 0x4a4   : > { %2499 = vmatpush1.msra.mxu1 %v1118_v57  ;;  %2562 = vmatprep.mubr.f32.mxu1 %v3105_v53  ;;  %v1087_v53 = vld [vmem:[#allocation2 + $0x12f8] sm:$0xff]  ;;  %v1022_v45 = vld [vmem:[#allocation2 + $0x10f0] sm:$0xff] }
 0x4a5   : > { %2570 = vmatpush1.msra.mxu0 %v1374_v59  ;;  %2633 = vmatprep.mubr.f32.mxu0 %v3107_v55  ;;  %v1086_v55 = vld [vmem:[#allocation2 + $0x12f0] sm:$0xff]  ;;  %v1271_v48 = vld [vmem:[#allocation2 + $0x18b8] sm:$0xff] }
 0x4a6   : > { %2500 = vmatprep.subr.mxu1 %v1111_v60  ;;  %2571 = vmatprep.subr.mxu0 %v1367_v61  ;;  %v1278_v47 = vld [vmem:[#allocation2 + $0x18f0] sm:$0xff]  ;;  %v1007_v29 = vld [vmem:[#allocation2 + $0x1078] sm:$0xff] }
 0x4a7   : > { %2501 = vmatpush1.msra.mxu1 %v1110_v62  ;;  %2572 = vmatpush1.msra.mxu0 %v1366_v63  ;;  %v1014_v51 = vld [vmem:[#allocation2 + $0x10b0] sm:$0xff]  ;;  %v1263_v50 = vld [vmem:[#allocation2 + $0x1878] sm:$0xff] }
 0x4a8   : > { %2502 = vmatprep.subr.mxu1 %v1103_v0  ;;  %2573 = vmatprep.subr.mxu0 %v1359_v1  ;;  %v1270_v49 = vld [vmem:[#allocation2 + $0x18b0] sm:$0xff]  ;;  %v999_v52 = vld [vmem:[#allocation2 + $0x1038] sm:$0xff] }
 0x4a9   : > { %2503 = vmatpush1.msra.mxu1 %v1102_v40  ;;  %2574 = vmatpush1.msra.mxu0 %v1358_v46  ;;  %v1006_v38 = vld [vmem:[#allocation2 + $0x1070] sm:$0xff]  ;;  %v1255_v54 = vld [vmem:[#allocation2 + $0x1838] sm:$0xff] }
 0x4aa   : > { %2504 = vmatprep.subr.mxu1 %v1095_v4  ;;  %2575 = vmatprep.subr.mxu0 %v1351_v5  ;;  %v1262_v44 = vld [vmem:[#allocation2 + $0x1870] sm:$0xff]  ;;  %v1247_v58 = vld [vmem:[#allocation2 + $0x17f8] sm:$0xff] }
 0x4ab   : > { %2505 = vmatpush1.msra.mxu1 %v1094_v6  ;;  %2576 = vmatpush1.msra.mxu0 %v1350_v7  ;;  %v998_v56 = vld [vmem:[#allocation2 + $0x1030] sm:$0xff]  ;;  %v1503_v59 = vld [vmem:[#allocation2 + $0x1ff8] sm:$0xff] }
 0x4ac   : > { %2506 = vmatprep.subr.mxu1 %v1087_v53  ;;  %2577 = vmatprep.subr.mxu0 %v1343_v8  ;;  %v1254_v57 = vld [vmem:[#allocation2 + $0x1830] sm:$0xff]  ;;  %v1239_v62 = vld [vmem:[#allocation2 + $0x17b8] sm:$0xff] }
 0x4ad   : > { %2507 = vmatpush1.msra.mxu1 %v1086_v55  ;;  %2578 = vmatpush1.msra.mxu0 %v1342_v9  ;;  %v1246_v60 = vld [vmem:[#allocation2 + $0x17f0] sm:$0xff]  ;;  %v1495_v63 = vld [vmem:[#allocation2 + $0x1fb8] sm:$0xff] }
 0x4ae   : > { %2508 = vmatprep.subr.mxu1 %v1079_v34  ;;  %2579 = vmatprep.subr.mxu0 %v1335_v28  ;;  %v1502_v61 = vld [vmem:[#allocation2 + $0x1ff0] sm:$0xff]  ;;  %v1231_v40 = vld [vmem:[#allocation2 + $0x1778] sm:$0xff] }
 0x4af   : > { %2509 = vmatpush1.msra.mxu1 %v1078_v10  ;;  %2580 = vmatpush1.msra.mxu0 %v1334_v11  ;;  %v1238_v0 = vld [vmem:[#allocation2 + $0x17b0] sm:$0xff]  ;;  %v1487_v46 = vld [vmem:[#allocation2 + $0x1f78] sm:$0xff] }
 0x4b0   : > { %2510 = vmatprep.subr.mxu1 %v1071_v12  ;;  %2581 = vmatprep.subr.mxu0 %v1327_v13  ;;  %v1494_v1 = vld [vmem:[#allocation2 + $0x1fb0] sm:$0xff]  ;;  %v1223_v6 = vld [vmem:[#allocation2 + $0x1738] sm:$0xff] }
 0x4b1   : > { %2511 = vmatpush1.msra.mxu1 %v1070_v14  ;;  %2582 = vmatpush1.msra.mxu0 %v1326_v15  ;;  %v1230_v4 = vld [vmem:[#allocation2 + $0x1770] sm:$0xff]  ;;  %v1479_v7 = vld [vmem:[#allocation2 + $0x1f38] sm:$0xff] }
 0x4b2   : > { %2512 = vmatprep.subr.mxu1 %v1063_v16  ;;  %2583 = vmatprep.subr.mxu0 %v1319_v17  ;;  %v1486_v5 = vld [vmem:[#allocation2 + $0x1f70] sm:$0xff]  ;;  %v1215_v55 = vld [vmem:[#allocation2 + $0x16f8] sm:$0xff] }
 0x4b3   : > { %2513 = vmatpush1.msra.mxu1 %v1062_v18  ;;  %2584 = vmatpush1.msra.mxu0 %v1318_v19  ;;  %v1222_v53 = vld [vmem:[#allocation2 + $0x1730] sm:$0xff]  ;;  %v1471_v9 = vld [vmem:[#allocation2 + $0x1ef8] sm:$0xff] }
 0x4b4   : > { %2514 = vmatprep.subr.mxu1 %v1055_v20  ;;  %2585 = vmatprep.subr.mxu0 %v1311_v21  ;;  %v1478_v8 = vld [vmem:[#allocation2 + $0x1f30] sm:$0xff]  ;;  %v1207_v10 = vld [vmem:[#allocation2 + $0x16b8] sm:$0xff] }
 0x4b5   : > { %2515 = vmatpush1.msra.mxu1 %v1054_v22  ;;  %2586 = vmatpush1.msra.mxu0 %v1310_v23  ;;  %v1214_v34 = vld [vmem:[#allocation2 + $0x16f0] sm:$0xff]  ;;  %v1463_v11 = vld [vmem:[#allocation2 + $0x1eb8] sm:$0xff] }
 0x4b6   : > { %2516 = vmatprep.subr.mxu1 %v1047_v24  ;;  %2587 = vmatprep.subr.mxu0 %v1303_v25  ;;  %v1470_v28 = vld [vmem:[#allocation2 + $0x1ef0] sm:$0xff]  ;;  %v1199_v14 = vld [vmem:[#allocation2 + $0x1678] sm:$0xff] }
 0x4b7   : > { %2517 = vmatpush1.msra.mxu1 %v1046_v26  ;;  %2588 = vmatpush1.msra.mxu0 %v1302_v27  ;;  %v1206_v12 = vld [vmem:[#allocation2 + $0x16b0] sm:$0xff]  ;;  %v1455_v15 = vld [vmem:[#allocation2 + $0x1e78] sm:$0xff] }
 0x4b8   : > { %2518 = vmatprep.subr.mxu1 %v1039_v30  ;;  %2589 = vmatprep.subr.mxu0 %v1295_v31  ;;  %v1462_v13 = vld [vmem:[#allocation2 + $0x1eb0] sm:$0xff]  ;;  %v1191_v18 = vld [vmem:[#allocation2 + $0x1638] sm:$0xff] }
 0x4b9   : > { %2519 = vmatpush1.msra.mxu1 %v1038_v33  ;;  %2590 = vmatpush1.msra.mxu0 %v1294_v35  ;;  %v1198_v16 = vld [vmem:[#allocation2 + $0x1670] sm:$0xff]  ;;  %v1447_v19 = vld [vmem:[#allocation2 + $0x1e38] sm:$0xff] }
 0x4ba   : > { %2520 = vmatprep.subr.mxu1 %v1031_v36  ;;  %2591 = vmatprep.subr.mxu0 %v1287_v37  ;;  %v1454_v17 = vld [vmem:[#allocation2 + $0x1e70] sm:$0xff]  ;;  %v1183_v22 = vld [vmem:[#allocation2 + $0x15f8] sm:$0xff] }
 0x4bb   : > { %2521 = vmatpush1.msra.mxu1 %v1030_v39  ;;  %2592 = vmatpush1.msra.mxu0 %v1286_v41  ;;  %v1190_v20 = vld [vmem:[#allocation2 + $0x1630] sm:$0xff]  ;;  %v1439_v23 = vld [vmem:[#allocation2 + $0x1df8] sm:$0xff] }
 0x4bc   : > { %2522 = vmatprep.subr.mxu1 %v1023_v42  ;;  %2593 = vmatprep.subr.mxu0 %v1279_v43  ;;  %v1446_v21 = vld [vmem:[#allocation2 + $0x1e30] sm:$0xff]  ;;  %v1175_v26 = vld [vmem:[#allocation2 + $0x15b8] sm:$0xff] }
 0x4bd   : > { %2523 = vmatpush1.msra.mxu1 %v1022_v45  ;;  %2594 = vmatpush1.msra.mxu0 %v1278_v47  ;;  %v1182_v24 = vld [vmem:[#allocation2 + $0x15f0] sm:$0xff]  ;;  %v1431_v27 = vld [vmem:[#allocation2 + $0x1db8] sm:$0xff] }
 0x4be   : > { %2524 = vmatprep.subr.mxu1 %v1015_v32  ;;  %2595 = vmatprep.subr.mxu0 %v1271_v48  ;;  %v1438_v25 = vld [vmem:[#allocation2 + $0x1df0] sm:$0xff]  ;;  %v1167_v33 = vld [vmem:[#allocation2 + $0x1578] sm:$0xff] }
 0x4bf   : > { %2525 = vmatpush1.msra.mxu1 %v1014_v51  ;;  %2596 = vmatpush1.msra.mxu0 %v1270_v49  ;;  %v1174_v30 = vld [vmem:[#allocation2 + $0x15b0] sm:$0xff]  ;;  %v1423_v35 = vld [vmem:[#allocation2 + $0x1d78] sm:$0xff] }
 0x4c0   : > { %2526 = vmatprep.subr.mxu1 %v1007_v29  ;;  %2597 = vmatprep.subr.mxu0 %v1263_v50  ;;  %v1430_v31 = vld [vmem:[#allocation2 + $0x1db0] sm:$0xff]  ;;  %v1159_v39 = vld [vmem:[#allocation2 + $0x1538] sm:$0xff] }
 0x4c1   : > { %2527 = vmatpush1.msra.mxu1 %v1006_v38  ;;  %2598 = vmatpush1.msra.mxu0 %v1262_v44  ;;  %v1166_v36 = vld [vmem:[#allocation2 + $0x1570] sm:$0xff]  ;;  %v1415_v41 = vld [vmem:[#allocation2 + $0x1d38] sm:$0xff] }
 0x4c2   : > { %2528 = vmatprep.subr.mxu1 %v999_v52  ;;  %2599 = vmatprep.subr.mxu0 %v1255_v54  ;;  %v1422_v37 = vld [vmem:[#allocation2 + $0x1d70] sm:$0xff]  ;;  %v1151_v45 = vld [vmem:[#allocation2 + $0x14f8] sm:$0xff] }
 0x4c3   : > { %2529 = vmatpush1.msra.mxu1 %v998_v56  ;;  %2600 = vmatpush1.msra.mxu0 %v1254_v57  ;;  %v1158_v42 = vld [vmem:[#allocation2 + $0x1530] sm:$0xff]  ;;  %v1407_v47 = vld [vmem:[#allocation2 + $0x1cf8] sm:$0xff] }
 0x4c4   : > { %2530 = vmatprep.subr.mxu1 %v1247_v58  ;;  %2601 = vmatprep.subr.mxu0 %v1503_v59  ;;  %v1414_v43 = vld [vmem:[#allocation2 + $0x1d30] sm:$0xff]  ;;  %v1143_v51 = vld [vmem:[#allocation2 + $0x14b8] sm:$0xff] }
 0x4c5   : > { %2531 = vmatpush2.msra.mxu1 %v1246_v60  ;;  %2602 = vmatpush2.msra.mxu0 %v1502_v61  ;;  %v1150_v32 = vld [vmem:[#allocation2 + $0x14f0] sm:$0xff]  ;;  %v1399_v49 = vld [vmem:[#allocation2 + $0x1cb8] sm:$0xff] }
 0x4c6   : > { %2532 = vmatprep.subr.mxu1 %v1239_v62  ;;  %2603 = vmatprep.subr.mxu0 %v1495_v63  ;;  %v1406_v48 = vld [vmem:[#allocation2 + $0x1cf0] sm:$0xff]  ;;  %v1135_v38 = vld [vmem:[#allocation2 + $0x1478] sm:$0xff] }
 0x4c7   : > { %2533 = vmatpush2.msra.mxu1 %v1238_v0  ;;  %2604 = vmatpush2.msra.mxu0 %v1494_v1  ;;  %v1142_v29 = vld [vmem:[#allocation2 + $0x14b0] sm:$0xff]  ;;  %v1391_v44 = vld [vmem:[#allocation2 + $0x1c78] sm:$0xff] }
 0x4c8   : > { %2534 = vmatprep.subr.mxu1 %v1231_v40  ;;  %2605 = vmatprep.subr.mxu0 %v1487_v46  ;;  %v1398_v50 = vld [vmem:[#allocation2 + $0x1cb0] sm:$0xff]  ;;  %v1127_v56 = vld [vmem:[#allocation2 + $0x1438] sm:$0xff] }
 0x4c9   : > { %2535 = vmatpush2.msra.mxu1 %v1230_v4  ;;  %2606 = vmatpush2.msra.mxu0 %v1486_v5  ;;  %v1134_v52 = vld [vmem:[#allocation2 + $0x1470] sm:$0xff]  ;;  %v1383_v57 = vld [vmem:[#allocation2 + $0x1c38] sm:$0xff] }
 0x4ca   : > { %2536 = vmatprep.subr.mxu1 %v1223_v6  ;;  %2607 = vmatprep.subr.mxu0 %v1479_v7  ;;  %v1390_v54 = vld [vmem:[#allocation2 + $0x1c70] sm:$0xff] }
 0x4cb   : > { %2537 = vmatpush2.msra.mxu1 %v1222_v53  ;;  %2608 = vmatpush2.msra.mxu0 %v1478_v8  ;;  %v1126_v58 = vld [vmem:[#allocation2 + $0x1430] sm:$0xff] }
 0x4cc   : > { %2538 = vmatprep.subr.mxu1 %v1215_v55  ;;  %2609 = vmatprep.subr.mxu0 %v1471_v9  ;;  %v1382_v59 = vld [vmem:[#allocation2 + $0x1c30] sm:$0xff] }
 0x4cd   : > { %2539 = vmatpush2.msra.mxu1 %v1214_v34  ;;  %2610 = vmatpush2.msra.mxu0 %v1470_v28 }
 0x4ce   : > { %2540 = vmatprep.subr.mxu1 %v1207_v10  ;;  %2611 = vmatprep.subr.mxu0 %v1463_v11 }
 0x4cf   : > { %2541 = vmatpush2.msra.mxu1 %v1206_v12  ;;  %2612 = vmatpush2.msra.mxu0 %v1462_v13 }
 0x4d0   : > { %2542 = vmatprep.subr.mxu1 %v1199_v14  ;;  %2613 = vmatprep.subr.mxu0 %v1455_v15 }
 0x4d1   : > { %2543 = vmatpush2.msra.mxu1 %v1198_v16  ;;  %2614 = vmatpush2.msra.mxu0 %v1454_v17 }
 0x4d2   : > { %2544 = vmatprep.subr.mxu1 %v1191_v18  ;;  %2615 = vmatprep.subr.mxu0 %v1447_v19 }
 0x4d3   : > { %2545 = vmatpush2.msra.mxu1 %v1190_v20  ;;  %2616 = vmatpush2.msra.mxu0 %v1446_v21 }
 0x4d4   : > { %2546 = vmatprep.subr.mxu1 %v1183_v22  ;;  %2617 = vmatprep.subr.mxu0 %v1439_v23 }
 0x4d5   : > { %2547 = vmatpush2.msra.mxu1 %v1182_v24  ;;  %2618 = vmatpush2.msra.mxu0 %v1438_v25 }
 0x4d6   : > { %2548 = vmatprep.subr.mxu1 %v1175_v26  ;;  %2619 = vmatprep.subr.mxu0 %v1431_v27 }
 0x4d7   : > { %2549 = vmatpush2.msra.mxu1 %v1174_v30  ;;  %2620 = vmatpush2.msra.mxu0 %v1430_v31 }
 0x4d8   : > { %2550 = vmatprep.subr.mxu1 %v1167_v33  ;;  %2621 = vmatprep.subr.mxu0 %v1423_v35 }
 0x4d9   : > { %2551 = vmatpush2.msra.mxu1 %v1166_v36  ;;  %2622 = vmatpush2.msra.mxu0 %v1422_v37 }
 0x4da   : > { %2552 = vmatprep.subr.mxu1 %v1159_v39  ;;  %2623 = vmatprep.subr.mxu0 %v1415_v41 }
 0x4db   : > { %2553 = vmatpush2.msra.mxu1 %v1158_v42  ;;  %2624 = vmatpush2.msra.mxu0 %v1414_v43 }
 0x4dc   : > { %2554 = vmatprep.subr.mxu1 %v1151_v45  ;;  %2625 = vmatprep.subr.mxu0 %v1407_v47 }
 0x4dd   : > { %2555 = vmatpush2.msra.mxu1 %v1150_v32  ;;  %2626 = vmatpush2.msra.mxu0 %v1406_v48 }
 0x4de   : > { %2556 = vmatprep.subr.mxu1 %v1143_v51  ;;  %2627 = vmatprep.subr.mxu0 %v1399_v49  ;;  %v2138_v60 = vpop.f32.mrf.mxu1  ;;  %v2209_v61 = vpop.f32.mrf.mxu0 }
 0x4df   : > { %2557 = vmatpush2.msra.mxu1 %v1142_v29  ;;  %2628 = vmatpush2.msra.mxu0 %v1398_v50  ;;  %v2210_v0 = vadd.f32 %v2209_v61, %v2138_v60 }
 0x4e0   : > { %2558 = vmatprep.subr.mxu1 %v1135_v38  ;;  %2629 = vmatprep.subr.mxu0 %v1391_v44  ;;  %v2140_v62 = vpop.f32.mrf.mxu1  ;;  %v2211_v63 = vpop.f32.mrf.mxu0 }
 0x4e1   : > { %2559 = vmatpush2.msra.mxu1 %v1134_v52  ;;  %2630 = vmatpush2.msra.mxu0 %v1390_v54  ;;  %v2212_v46 = vadd.f32 %v2211_v63, %v2140_v62 }
 0x4e2   : > { %2560 = vmatprep.subr.mxu1 %v1127_v56  ;;  %2631 = vmatprep.subr.mxu0 %v1383_v57 }
 0x4e3   : > { %2561 = vmatpush2.msra.mxu1 %v1126_v58  ;;  %2632 = vmatpush2.msra.mxu0 %v1382_v59 }
 0x4e4   : > { %2563 = vmatmul.mubr.f32.vlgmr.msra.gmra.mxu1 %v3112_v2  ;;  %2634 = vmatmul.mubr.f32.vlgmr.msra.gmra.mxu0 %v3115_v3 }
 0x520   : > { %v2280_v1 = vpop.f32.mrf.mxu1  ;;  %v2351_v40 = vpop.f32.mrf.mxu0 }
 0x521   : > { %v2281_v4 = vadd.f32 %v2280_v1, %v2210_v0 }
 0x522   : > { %v2282_v5 = vpop.f32.mrf.mxu1  ;;  %v2353_v53 = vpop.f32.mrf.mxu0 }
 0x523   : > { %v2352_v6 = vadd.f32 %v2351_v40, %v2281_v4  ;;  %v2283_v7 = vadd.f32 %v2282_v5, %v2212_v46 }
 0x525   : > { %2644 = vst [vmem:[%s3138_s23 + $0x20] sm:$0xff] %v2352_v6  ;;  %v2354_v8 = vadd.f32 %v2353_v53, %v2283_v7 }
 0x527   : > { %2645 = vst [vmem:[%s3138_s23 + $0x28] sm:$0xff] %v2354_v8 }
 0x562   : > { %v2422_v2 = vpop.f32.mrf.mxu1  ;;  %v2493_v3 = vpop.f32.mrf.mxu0 }
 0x563   : > { %v2494_v34 = vadd.f32 %v2493_v3, %v2422_v2 }
 0x564   : > { %v2424_v55 = vpop.f32.mrf.mxu1  ;;  %v2495_v9 = vpop.f32.mrf.mxu0 }
 0x565   : > { %v2496_v11 = vadd.f32 %v2495_v9, %v2424_v55 }
 0x5a4   : > { %v2564_v28 = vpop.f32.mrf.mxu1  ;;  %v2635_v10 = vpop.f32.mrf.mxu0 }
 0x5a5   : > { %v2565_v12 = vadd.f32 %v2564_v28, %v2494_v34 }
 0x5a6   : > { %v2566_v13 = vpop.f32.mrf.mxu1  ;;  %v2637_v16 = vpop.f32.mrf.mxu0 }
 0x5a7   : > { %v2636_v14 = vadd.f32 %v2635_v10, %v2565_v12  ;;  %v2567_v15 = vadd.f32 %v2566_v13, %v2496_v11 }
 0x5a9   : > { %2646 = vst [vmem:[%s3138_s23 + $0x30] sm:$0xff] %v2636_v14  ;;  %v2638_v17 = vadd.f32 %v2637_v16, %v2567_v15 }
 0x5ab   : > { %2647 = vst [vmem:[%s3138_s23 + $0x38] sm:$0xff] %v2638_v17 }
 0x5ac PF: > { %s14_s16 = sadd.s32 1, %s2914_s16   ;;  %s3188_s12 = smov %s2906_s14 }
 0x5ad   : > { %p11_p4 = scmp.ge.s32.totalorder %s14_s16, 6   ;;  %s3189_s13 = smov %s2910_s15 }
 0x5ae   : > { %s3190_s14 = smov %s3193_s18  ;;  %s3191_s15 = smov %s3197_s19 }
 0x5af   :  { %13 = sbr.rel (!%p11_p4) target bundleno = 3 (0x3), region = 70 }
 0x5b4   :  { %2677 = vsyncpa [#allocation3], 1 }
 0x5b5   :  { %2679 = vsyncpa [#allocation3 + $0x1], 1 }

</bundles_post_ra>
